<compile_context>
chip_gen: v7x
topology: tpu7x:2x2x1
jax: 0.10.0
libtpu: 0.0.40
codegen_flags: <defaults>
</compile_context>

<pallas_src>
import numpy as np

import jax
import jax.numpy as jnp
from jax.experimental import pallas as pl
from jax.experimental.pallas import tpu as pltpu

f32 = jnp.float32


# ---------------------------------------------------------------------------
# Fused Detect-head kernel
# ---------------------------------------------------------------------------
def make_detect_kernel(level_cfg, na):
    """level_cfg: tuple of (hw, row_offset) per detection level."""
    nl = len(level_cfg)

    def kernel(*refs):
        o_ref = refs[-1]
        x_refs = refs[:nl]
        prm = refs[nl:-1]
        for i, (hw, off) in enumerate(level_cfg):
            w_ref, b_ref, a_ref, lin_ref, cst_ref = prm[5 * i:5 * (i + 1)]
            x = x_refs[i][0]                  # (hw, ch) feature block for this image
            lin = lin_ref[...]                # (1, no)   linear decode coefficient
            cst = cst_ref[...]                # (hw, no)  constant decode coeff (grid*stride)
            for a in range(na):               # na is tiny & static -> unrolled
                p = jnp.dot(x, w_ref[a], preferred_element_type=jnp.float32) + b_ref[a]
                s = jax.nn.sigmoid(p)         # (hw, no)
                # xy=(2s+grid)*stride, wh=(2s)^2*anchor, conf=s   ==   A*s^2 + B*s + C
                o_ref[0, off + a * hw: off + (a + 1) * hw, :] = (
                    a_ref[a] * (s * s) + lin * s + cst)

    return kernel


def detect_head(feats, conv_w, conv_b, anchors, strides):
    """Fused Detect-head forward (export mode, as AutoShape configures it).

    feats:   list of nl NHWC feature maps, feats[i]: (N, ny_i, nx_i, ch_i)
    conv_w:  list of nl 1x1 detection-conv weights, shape (na*no, ch_i) (PyTorch layout)
    conv_b:  list of nl detection-conv biases, shape (na*no,)
    anchors: (nl, na, 2) anchors in stride units (as stored in Detect.anchors)
    strides: (nl,) per-level strides
    Returns: (N, sum_i na*ny_i*nx_i, no)  ==  torch.cat(z, 1)
    """
    nl = len(feats)
    N = feats[0].shape[0]
    na = int(anchors.shape[1])
    no = int(conv_w[0].shape[0]) // na

    feat_in, prm_in, level_cfg = [], [], []
    off = 0
    for i in range(nl):
        x = jnp.asarray(feats[i], f32)
        _, ny, nx, ch = x.shape
        hw = ny * nx
        level_cfg.append((hw, off))
        feat_in.append(x.reshape(N, hw, ch))          # flatten spatial dims host-side

        # (na*no, ch) -> (na, ch, no): per-anchor weight planes (leading-axis slice in kernel)
        w = np.asarray(conv_w[i], np.float32).reshape(na, no, ch).transpose(0, 2, 1)
        b = np.asarray(conv_b[i], np.float32).reshape(na, 1, no)

        s = float(strides[i])
        ag = np.asarray(anchors[i], np.float32) * s   # anchor_grid, (na, 2)
        A = np.zeros((na, 1, no), np.float32)         # quadratic term (wh lanes)
        A[:, 0, 2] = 4.0 * ag[:, 0]
        A[:, 0, 3] = 4.0 * ag[:, 1]
        B = np.zeros((1, no), np.float32)             # linear term
        B[0, 0] = B[0, 1] = 2.0 * s                   # xy lanes
        B[0, 4:] = 1.0                                # obj/class lanes (plain sigmoid)
        yv, xv = np.meshgrid(np.arange(ny, dtype=np.float32),
                             np.arange(nx, dtype=np.float32), indexing="ij")
        C = np.zeros((hw, no), np.float32)            # constant term (grid offsets)
        C[:, 0] = (xv.reshape(-1) - 0.5) * s
        C[:, 1] = (yv.reshape(-1) - 0.5) * s

        prm_in += [jnp.asarray(w), jnp.asarray(b), jnp.asarray(A),
                   jnp.asarray(B), jnp.asarray(C)]
        off += na * hw
    total = off

    in_specs = [pl.BlockSpec((1,) + f.shape[1:], lambda n: (n, 0, 0)) for f in feat_in]
    in_specs += [pl.BlockSpec(p.shape, lambda n, _k=p.ndim: (0,) * _k) for p in prm_in]

    return pl.pallas_call(
        make_detect_kernel(tuple(level_cfg), na),
        out_shape=jax.ShapeDtypeStruct((N, total, no), f32),
        grid=(N,),
        in_specs=in_specs,
        out_specs=pl.BlockSpec((1, total, no), lambda n: (n, 0, 0)),
        compiler_params=pltpu.CompilerParams(dimension_semantics=("parallel",)),
    )(*feat_in, *prm_in)


# ---------------------------------------------------------------------------
# Pure-JAX reference (mirrors torch Detect.forward, export mode, non-Segment path)
# ---------------------------------------------------------------------------
def detect_reference(feats, conv_w, conv_b, anchors, strides):
    na = int(anchors.shape[1])
    no = int(conv_w[0].shape[0]) // na
    z = []
    for i, x in enumerate(feats):
        N, ny, nx, _ = x.shape
        s = float(strides[i])
        w = jnp.asarray(conv_w[i], f32)
        b = jnp.asarray(conv_b[i], f32)
        p = jnp.einsum("nyxc,oc->nyxo", jnp.asarray(x, f32), w,
                       precision=jax.lax.Precision.HIGHEST) + b
        p = jnp.transpose(p.reshape(N, ny, nx, na, no), (0, 3, 1, 2, 4))   # (N,na,ny,nx,no)
        sg = jax.nn.sigmoid(p)
        yv, xv = jnp.meshgrid(jnp.arange(ny, dtype=f32), jnp.arange(nx, dtype=f32),
                              indexing="ij")
        grid = jnp.stack((xv, yv), -1) - 0.5
        ag = (jnp.asarray(anchors[i], f32) * s).reshape(1, na, 1, 1, 2)
        xy = (sg[..., 0:2] * 2.0 + grid) * s
        wh = (sg[..., 2:4] * 2.0) ** 2 * ag
        y = jnp.concatenate((xy, wh, sg[..., 4:]), axis=-1)
        z.append(y.reshape(N, na * ny * nx, no))
    return jnp.concatenate(z, axis=1)


# ---------------------------------------------------------------------------
if __name__ == "__main__":
    key = jax.random.PRNGKey(0)

    # Small, Detect-consistent config: 3 levels, 3 anchors/level, nc=80 -> no=85.
    N = 2
    nc, na = 80, 3
    no = nc + 5
    ch = (32, 64, 128)
    sizes = ((16, 16), (8, 8), (4, 4))
    strides = np.array([8.0, 16.0, 32.0], np.float32)
    anchors_px = np.array([[[10, 13], [16, 30], [33, 23]],
                           [[30, 61], [62, 45], [59, 119]],
                           [[116, 90], [156, 198], [373, 326]]], np.float32)
    anchors = anchors_px / strides.reshape(-1, 1, 1)   # stored in stride units (Detect.anchors)

    keys = jax.random.split(key, 3 * len(ch))
    feats, conv_w, conv_b = [], [], []
    for i in range(len(ch)):
        k0, k1, k2 = keys[3 * i], keys[3 * i + 1], keys[3 * i + 2]
        ny, nx = sizes[i]
        feats.append(jax.random.normal(k0, (N, ny, nx, ch[i]), f32))
        conv_w.append(np.asarray(jax.random.normal(k1, (na * no, ch[i]), f32)) * 0.05)
        conv_b.append(np.asarray(jax.random.normal(k2, (na * no,), f32)) * 0.05)

    y = detect_head(feats, conv_w, conv_b, anchors, strides)
    y = jax.block_until_ready(y)

    y_ref = detect_reference(feats, conv_w, conv_b, anchors, strides)

    total = sum(na * ny * nx for ny, nx in sizes)
    assert y.shape == (N, total, no), y.shape
    assert bool(jnp.all(jnp.isfinite(y)))
    assert bool(jnp.allclose(y, y_ref, rtol=1e-2, atol=1e-2)), \
        float(jnp.max(jnp.abs(y - y_ref)))
    print("KERNEL_OK")
</pallas_src>

<mosaic_0001>
module attributes {stable_mosaic.version = 11 : i64} {
  func.func @kernel(%arg0: i32, %arg1: memref<1x256x32xf32, #tpu.memory_space<vmem>>, %arg2: memref<1x64x64xf32, #tpu.memory_space<vmem>>, %arg3: memref<1x16x128xf32, #tpu.memory_space<vmem>>, %arg4: memref<3x32x85xf32, #tpu.memory_space<vmem>>, %arg5: memref<3x1x85xf32, #tpu.memory_space<vmem>>, %arg6: memref<3x1x85xf32, #tpu.memory_space<vmem>>, %arg7: memref<1x85xf32, #tpu.memory_space<vmem>>, %arg8: memref<256x85xf32, #tpu.memory_space<vmem>>, %arg9: memref<3x64x85xf32, #tpu.memory_space<vmem>>, %arg10: memref<3x1x85xf32, #tpu.memory_space<vmem>>, %arg11: memref<3x1x85xf32, #tpu.memory_space<vmem>>, %arg12: memref<1x85xf32, #tpu.memory_space<vmem>>, %arg13: memref<64x85xf32, #tpu.memory_space<vmem>>, %arg14: memref<3x128x85xf32, #tpu.memory_space<vmem>>, %arg15: memref<3x1x85xf32, #tpu.memory_space<vmem>>, %arg16: memref<3x1x85xf32, #tpu.memory_space<vmem>>, %arg17: memref<1x85xf32, #tpu.memory_space<vmem>>, %arg18: memref<16x85xf32, #tpu.memory_space<vmem>>, %arg19: memref<1x1008x85xf32, #tpu.memory_space<vmem>>) attributes {dimension_semantics = [#tpu.dimension_semantics<parallel>], iteration_bounds = array<i64: 2>, scalar_prefetch = 0 : i64, scratch_operands = 0 : i64, tpu.core_type = #tpu.core_type<tc>, window_params = [{transform_indices = @transform_0, window_bounds = array<i64: 1, 256, 32>}, {transform_indices = @transform_1, window_bounds = array<i64: 1, 64, 64>}, {transform_indices = @transform_2, window_bounds = array<i64: 1, 16, 128>}, {pipeline_mode = #tpu.pipeline_mode<synchronous>, transform_indices = @transform_3, window_bounds = array<i64: 3, 32, 85>}, {pipeline_mode = #tpu.pipeline_mode<synchronous>, transform_indices = @transform_4, window_bounds = array<i64: 3, 1, 85>}, {pipeline_mode = #tpu.pipeline_mode<synchronous>, transform_indices = @transform_5, window_bounds = array<i64: 3, 1, 85>}, {pipeline_mode = #tpu.pipeline_mode<synchronous>, transform_indices = @transform_6, window_bounds = array<i64: 1, 85>}, {pipeline_mode = #tpu.pipeline_mode<synchronous>, transform_indices = @transform_7, window_bounds = array<i64: 256, 85>}, {pipeline_mode = #tpu.pipeline_mode<synchronous>, transform_indices = @transform_8, window_bounds = array<i64: 3, 64, 85>}, {pipeline_mode = #tpu.pipeline_mode<synchronous>, transform_indices = @transform_9, window_bounds = array<i64: 3, 1, 85>}, {pipeline_mode = #tpu.pipeline_mode<synchronous>, transform_indices = @transform_10, window_bounds = array<i64: 3, 1, 85>}, {pipeline_mode = #tpu.pipeline_mode<synchronous>, transform_indices = @transform_11, window_bounds = array<i64: 1, 85>}, {pipeline_mode = #tpu.pipeline_mode<synchronous>, transform_indices = @transform_12, window_bounds = array<i64: 64, 85>}, {pipeline_mode = #tpu.pipeline_mode<synchronous>, transform_indices = @transform_13, window_bounds = array<i64: 3, 128, 85>}, {pipeline_mode = #tpu.pipeline_mode<synchronous>, transform_indices = @transform_14, window_bounds = array<i64: 3, 1, 85>}, {pipeline_mode = #tpu.pipeline_mode<synchronous>, transform_indices = @transform_15, window_bounds = array<i64: 3, 1, 85>}, {pipeline_mode = #tpu.pipeline_mode<synchronous>, transform_indices = @transform_16, window_bounds = array<i64: 1, 85>}, {pipeline_mode = #tpu.pipeline_mode<synchronous>, transform_indices = @transform_17, window_bounds = array<i64: 16, 85>}, {transform_indices = @transform_18, window_bounds = array<i64: 1, 1008, 85>}]} {
    %c0 = arith.constant 0 : index
    %c0_0 = arith.constant 0 : index
    %c0_1 = arith.constant 0 : index
    %0 = vector.load %arg1[%c0, %c0_0, %c0_1] : memref<1x256x32xf32, #tpu.memory_space<vmem>>, vector<1x256x32xf32>
    %1 = vector.shape_cast %0 : vector<1x256x32xf32> to vector<256x32xf32>
    %c0_2 = arith.constant 0 : index
    %c0_3 = arith.constant 0 : index
    %2 = vector.load %arg7[%c0_2, %c0_3] : memref<1x85xf32, #tpu.memory_space<vmem>>, vector<1x85xf32>
    %c0_4 = arith.constant 0 : index
    %c0_5 = arith.constant 0 : index
    %3 = vector.load %arg8[%c0_4, %c0_5] : memref<256x85xf32, #tpu.memory_space<vmem>>, vector<256x85xf32>
    %c0_6 = arith.constant 0 : index
    %c0_7 = arith.constant 0 : index
    %c0_8 = arith.constant 0 : index
    %4 = vector.load %arg4[%c0_6, %c0_7, %c0_8] : memref<3x32x85xf32, #tpu.memory_space<vmem>>, vector<1x32x85xf32>
    %5 = vector.shape_cast %4 : vector<1x32x85xf32> to vector<32x85xf32>
    %cst = arith.constant dense<0.000000e+00> : vector<256x85xf32>
    %6 = tpu.matmul %1, %5, %cst {dimension_numbers = #tpu.dot_dimension_numbers<[1], [0], [0], [1], [0, 0, 1, 1], [], []>} : vector<256x32xf32>, vector<32x85xf32>, vector<256x85xf32> -> vector<256x85xf32>
    %c0_9 = arith.constant 0 : index
    %c0_10 = arith.constant 0 : index
    %c0_11 = arith.constant 0 : index
    %7 = vector.load %arg5[%c0_9, %c0_10, %c0_11] : memref<3x1x85xf32, #tpu.memory_space<vmem>>, vector<1x1x85xf32>
    %8 = vector.shape_cast %7 : vector<1x1x85xf32> to vector<1x85xf32>
    %9 = vector.broadcast %8 : vector<1x85xf32> to vector<256x85xf32>
    %10 = arith.addf %6, %9 : vector<256x85xf32>
    %11 = arith.negf %10 : vector<256x85xf32>
    %12 = math.exp %11 : vector<256x85xf32>
    %cst_12 = arith.constant 1.000000e+00 : f32
    %13 = vector.broadcast %cst_12 : f32 to vector<256x85xf32>
    %14 = arith.addf %13, %12 : vector<256x85xf32>
    %15 = arith.divf %13, %14 : vector<256x85xf32>
    %c0_13 = arith.constant 0 : index
    %c0_14 = arith.constant 0 : index
    %c0_15 = arith.constant 0 : index
    %16 = vector.load %arg6[%c0_13, %c0_14, %c0_15] : memref<3x1x85xf32, #tpu.memory_space<vmem>>, vector<1x1x85xf32>
    %17 = vector.shape_cast %16 : vector<1x1x85xf32> to vector<1x85xf32>
    %18 = arith.mulf %15, %15 : vector<256x85xf32>
    %19 = vector.broadcast %17 : vector<1x85xf32> to vector<256x85xf32>
    %20 = arith.mulf %19, %18 : vector<256x85xf32>
    %21 = vector.broadcast %2 : vector<1x85xf32> to vector<256x85xf32>
    %22 = arith.mulf %21, %15 : vector<256x85xf32>
    %23 = arith.addf %20, %22 : vector<256x85xf32>
    %24 = arith.addf %23, %3 : vector<256x85xf32>
    %c0_16 = arith.constant 0 : index
    %c0_17 = arith.constant 0 : index
    %c0_18 = arith.constant 0 : index
    %25 = vector.load %arg19[%c0_16, %c0_17, %c0_18] : memref<1x1008x85xf32, #tpu.memory_space<vmem>>, vector<1x256x85xf32>
    %26 = vector.shape_cast %25 : vector<1x256x85xf32> to vector<256x85xf32>
    %27 = vector.shape_cast %24 : vector<256x85xf32> to vector<1x256x85xf32>
    tpu.vector_store %arg19[%c0_16, %c0_17, %c0_18], %27 {strides = array<i32>} : memref<1x1008x85xf32, #tpu.memory_space<vmem>>, vector<1x256x85xf32>,
    %c1 = arith.constant 1 : index
    %c0_19 = arith.constant 0 : index
    %c0_20 = arith.constant 0 : index
    %28 = vector.load %arg4[%c1, %c0_19, %c0_20] : memref<3x32x85xf32, #tpu.memory_space<vmem>>, vector<1x32x85xf32>
    %29 = vector.shape_cast %28 : vector<1x32x85xf32> to vector<32x85xf32>
    %cst_21 = arith.constant dense<0.000000e+00> : vector<256x85xf32>
    %30 = tpu.matmul %1, %29, %cst_21 {dimension_numbers = #tpu.dot_dimension_numbers<[1], [0], [0], [1], [0, 0, 1, 1], [], []>} : vector<256x32xf32>, vector<32x85xf32>, vector<256x85xf32> -> vector<256x85xf32>
    %c1_22 = arith.constant 1 : index
    %c0_23 = arith.constant 0 : index
    %c0_24 = arith.constant 0 : index
    %31 = vector.load %arg5[%c1_22, %c0_23, %c0_24] : memref<3x1x85xf32, #tpu.memory_space<vmem>>, vector<1x1x85xf32>
    %32 = vector.shape_cast %31 : vector<1x1x85xf32> to vector<1x85xf32>
    %33 = vector.broadcast %32 : vector<1x85xf32> to vector<256x85xf32>
    %34 = arith.addf %30, %33 : vector<256x85xf32>
    %35 = arith.negf %34 : vector<256x85xf32>
    %36 = math.exp %35 : vector<256x85xf32>
    %cst_25 = arith.constant 1.000000e+00 : f32
    %37 = vector.broadcast %cst_25 : f32 to vector<256x85xf32>
    %38 = arith.addf %37, %36 : vector<256x85xf32>
    %39 = arith.divf %37, %38 : vector<256x85xf32>
    %c1_26 = arith.constant 1 : index
    %c0_27 = arith.constant 0 : index
    %c0_28 = arith.constant 0 : index
    %40 = vector.load %arg6[%c1_26, %c0_27, %c0_28] : memref<3x1x85xf32, #tpu.memory_space<vmem>>, vector<1x1x85xf32>
    %41 = vector.shape_cast %40 : vector<1x1x85xf32> to vector<1x85xf32>
    %42 = arith.mulf %39, %39 : vector<256x85xf32>
    %43 = vector.broadcast %41 : vector<1x85xf32> to vector<256x85xf32>
    %44 = arith.mulf %43, %42 : vector<256x85xf32>
    %45 = vector.broadcast %2 : vector<1x85xf32> to vector<256x85xf32>
    %46 = arith.mulf %45, %39 : vector<256x85xf32>
    %47 = arith.addf %44, %46 : vector<256x85xf32>
    %48 = arith.addf %47, %3 : vector<256x85xf32>
    %c0_29 = arith.constant 0 : index
    %c256 = arith.constant 256 : index
    %c0_30 = arith.constant 0 : index
    %49 = vector.load %arg19[%c0_29, %c256, %c0_30] : memref<1x1008x85xf32, #tpu.memory_space<vmem>>, vector<1x256x85xf32>
    %50 = vector.shape_cast %49 : vector<1x256x85xf32> to vector<256x85xf32>
    %51 = vector.shape_cast %48 : vector<256x85xf32> to vector<1x256x85xf32>
    tpu.vector_store %arg19[%c0_29, %c256, %c0_30], %51 {strides = array<i32>} : memref<1x1008x85xf32, #tpu.memory_space<vmem>>, vector<1x256x85xf32>,
    %c2 = arith.constant 2 : index
    %c0_31 = arith.constant 0 : index
    %c0_32 = arith.constant 0 : index
    %52 = vector.load %arg4[%c2, %c0_31, %c0_32] : memref<3x32x85xf32, #tpu.memory_space<vmem>>, vector<1x32x85xf32>
    %53 = vector.shape_cast %52 : vector<1x32x85xf32> to vector<32x85xf32>
    %cst_33 = arith.constant dense<0.000000e+00> : vector<256x85xf32>
    %54 = tpu.matmul %1, %53, %cst_33 {dimension_numbers = #tpu.dot_dimension_numbers<[1], [0], [0], [1], [0, 0, 1, 1], [], []>} : vector<256x32xf32>, vector<32x85xf32>, vector<256x85xf32> -> vector<256x85xf32>
    %c2_34 = arith.constant 2 : index
    %c0_35 = arith.constant 0 : index
    %c0_36 = arith.constant 0 : index
    %55 = vector.load %arg5[%c2_34, %c0_35, %c0_36] : memref<3x1x85xf32, #tpu.memory_space<vmem>>, vector<1x1x85xf32>
    %56 = vector.shape_cast %55 : vector<1x1x85xf32> to vector<1x85xf32>
    %57 = vector.broadcast %56 : vector<1x85xf32> to vector<256x85xf32>
    %58 = arith.addf %54, %57 : vector<256x85xf32>
    %59 = arith.negf %58 : vector<256x85xf32>
    %60 = math.exp %59 : vector<256x85xf32>
    %cst_37 = arith.constant 1.000000e+00 : f32
    %61 = vector.broadcast %cst_37 : f32 to vector<256x85xf32>
    %62 = arith.addf %61, %60 : vector<256x85xf32>
    %63 = arith.divf %61, %62 : vector<256x85xf32>
    %c2_38 = arith.constant 2 : index
    %c0_39 = arith.constant 0 : index
    %c0_40 = arith.constant 0 : index
    %64 = vector.load %arg6[%c2_38, %c0_39, %c0_40] : memref<3x1x85xf32, #tpu.memory_space<vmem>>, vector<1x1x85xf32>
    %65 = vector.shape_cast %64 : vector<1x1x85xf32> to vector<1x85xf32>
    %66 = arith.mulf %63, %63 : vector<256x85xf32>
    %67 = vector.broadcast %65 : vector<1x85xf32> to vector<256x85xf32>
    %68 = arith.mulf %67, %66 : vector<256x85xf32>
    %69 = vector.broadcast %2 : vector<1x85xf32> to vector<256x85xf32>
    %70 = arith.mulf %69, %63 : vector<256x85xf32>
    %71 = arith.addf %68, %70 : vector<256x85xf32>
    %72 = arith.addf %71, %3 : vector<256x85xf32>
    %c0_41 = arith.constant 0 : index
    %c512 = arith.constant 512 : index
    %c0_42 = arith.constant 0 : index
    %73 = vector.load %arg19[%c0_41, %c512, %c0_42] : memref<1x1008x85xf32, #tpu.memory_space<vmem>>, vector<1x256x85xf32>
    %74 = vector.shape_cast %73 : vector<1x256x85xf32> to vector<256x85xf32>
    %75 = vector.shape_cast %72 : vector<256x85xf32> to vector<1x256x85xf32>
    tpu.vector_store %arg19[%c0_41, %c512, %c0_42], %75 {strides = array<i32>} : memref<1x1008x85xf32, #tpu.memory_space<vmem>>, vector<1x256x85xf32>,
    %c0_43 = arith.constant 0 : index
    %c0_44 = arith.constant 0 : index
    %c0_45 = arith.constant 0 : index
    %76 = vector.load %arg2[%c0_43, %c0_44, %c0_45] : memref<1x64x64xf32, #tpu.memory_space<vmem>>, vector<1x64x64xf32>
    %77 = vector.shape_cast %76 : vector<1x64x64xf32> to vector<64x64xf32>
    %c0_46 = arith.constant 0 : index
    %c0_47 = arith.constant 0 : index
    %78 = vector.load %arg12[%c0_46, %c0_47] : memref<1x85xf32, #tpu.memory_space<vmem>>, vector<1x85xf32>
    %c0_48 = arith.constant 0 : index
    %c0_49 = arith.constant 0 : index
    %79 = vector.load %arg13[%c0_48, %c0_49] : memref<64x85xf32, #tpu.memory_space<vmem>>, vector<64x85xf32>
    %c0_50 = arith.constant 0 : index
    %c0_51 = arith.constant 0 : index
    %c0_52 = arith.constant 0 : index
    %80 = vector.load %arg9[%c0_50, %c0_51, %c0_52] : memref<3x64x85xf32, #tpu.memory_space<vmem>>, vector<1x64x85xf32>
    %81 = vector.shape_cast %80 : vector<1x64x85xf32> to vector<64x85xf32>
    %cst_53 = arith.constant dense<0.000000e+00> : vector<64x85xf32>
    %82 = tpu.matmul %77, %81, %cst_53 {dimension_numbers = #tpu.dot_dimension_numbers<[1], [0], [0], [1], [0, 0, 1, 1], [], []>} : vector<64x64xf32>, vector<64x85xf32>, vector<64x85xf32> -> vector<64x85xf32>
    %c0_54 = arith.constant 0 : index
    %c0_55 = arith.constant 0 : index
    %c0_56 = arith.constant 0 : index
    %83 = vector.load %arg10[%c0_54, %c0_55, %c0_56] : memref<3x1x85xf32, #tpu.memory_space<vmem>>, vector<1x1x85xf32>
    %84 = vector.shape_cast %83 : vector<1x1x85xf32> to vector<1x85xf32>
    %85 = vector.broadcast %84 : vector<1x85xf32> to vector<64x85xf32>
    %86 = arith.addf %82, %85 : vector<64x85xf32>
    %87 = arith.negf %86 : vector<64x85xf32>
    %88 = math.exp %87 : vector<64x85xf32>
    %cst_57 = arith.constant 1.000000e+00 : f32
    %89 = vector.broadcast %cst_57 : f32 to vector<64x85xf32>
    %90 = arith.addf %89, %88 : vector<64x85xf32>
    %91 = arith.divf %89, %90 : vector<64x85xf32>
    %c0_58 = arith.constant 0 : index
    %c0_59 = arith.constant 0 : index
    %c0_60 = arith.constant 0 : index
    %92 = vector.load %arg11[%c0_58, %c0_59, %c0_60] : memref<3x1x85xf32, #tpu.memory_space<vmem>>, vector<1x1x85xf32>
    %93 = vector.shape_cast %92 : vector<1x1x85xf32> to vector<1x85xf32>
    %94 = arith.mulf %91, %91 : vector<64x85xf32>
    %95 = vector.broadcast %93 : vector<1x85xf32> to vector<64x85xf32>
    %96 = arith.mulf %95, %94 : vector<64x85xf32>
    %97 = vector.broadcast %78 : vector<1x85xf32> to vector<64x85xf32>
    %98 = arith.mulf %97, %91 : vector<64x85xf32>
    %99 = arith.addf %96, %98 : vector<64x85xf32>
    %100 = arith.addf %99, %79 : vector<64x85xf32>
    %c0_61 = arith.constant 0 : index
    %c768 = arith.constant 768 : index
    %c0_62 = arith.constant 0 : index
    %101 = vector.load %arg19[%c0_61, %c768, %c0_62] : memref<1x1008x85xf32, #tpu.memory_space<vmem>>, vector<1x64x85xf32>
    %102 = vector.shape_cast %101 : vector<1x64x85xf32> to vector<64x85xf32>
    %103 = vector.shape_cast %100 : vector<64x85xf32> to vector<1x64x85xf32>
    tpu.vector_store %arg19[%c0_61, %c768, %c0_62], %103 {strides = array<i32>} : memref<1x1008x85xf32, #tpu.memory_space<vmem>>, vector<1x64x85xf32>,
    %c1_63 = arith.constant 1 : index
    %c0_64 = arith.constant 0 : index
    %c0_65 = arith.constant 0 : index
    %104 = vector.load %arg9[%c1_63, %c0_64, %c0_65] : memref<3x64x85xf32, #tpu.memory_space<vmem>>, vector<1x64x85xf32>
    %105 = vector.shape_cast %104 : vector<1x64x85xf32> to vector<64x85xf32>
    %cst_66 = arith.constant dense<0.000000e+00> : vector<64x85xf32>
    %106 = tpu.matmul %77, %105, %cst_66 {dimension_numbers = #tpu.dot_dimension_numbers<[1], [0], [0], [1], [0, 0, 1, 1], [], []>} : vector<64x64xf32>, vector<64x85xf32>, vector<64x85xf32> -> vector<64x85xf32>
    %c1_67 = arith.constant 1 : index
    %c0_68 = arith.constant 0 : index
    %c0_69 = arith.constant 0 : index
    %107 = vector.load %arg10[%c1_67, %c0_68, %c0_69] : memref<3x1x85xf32, #tpu.memory_space<vmem>>, vector<1x1x85xf32>
    %108 = vector.shape_cast %107 : vector<1x1x85xf32> to vector<1x85xf32>
    %109 = vector.broadcast %108 : vector<1x85xf32> to vector<64x85xf32>
    %110 = arith.addf %106, %109 : vector<64x85xf32>
    %111 = arith.negf %110 : vector<64x85xf32>
    %112 = math.exp %111 : vector<64x85xf32>
    %cst_70 = arith.constant 1.000000e+00 : f32
    %113 = vector.broadcast %cst_70 : f32 to vector<64x85xf32>
    %114 = arith.addf %113, %112 : vector<64x85xf32>
    %115 = arith.divf %113, %114 : vector<64x85xf32>
    %c1_71 = arith.constant 1 : index
    %c0_72 = arith.constant 0 : index
    %c0_73 = arith.constant 0 : index
    %116 = vector.load %arg11[%c1_71, %c0_72, %c0_73] : memref<3x1x85xf32, #tpu.memory_space<vmem>>, vector<1x1x85xf32>
    %117 = vector.shape_cast %116 : vector<1x1x85xf32> to vector<1x85xf32>
    %118 = arith.mulf %115, %115 : vector<64x85xf32>
    %119 = vector.broadcast %117 : vector<1x85xf32> to vector<64x85xf32>
    %120 = arith.mulf %119, %118 : vector<64x85xf32>
    %121 = vector.broadcast %78 : vector<1x85xf32> to vector<64x85xf32>
    %122 = arith.mulf %121, %115 : vector<64x85xf32>
    %123 = arith.addf %120, %122 : vector<64x85xf32>
    %124 = arith.addf %123, %79 : vector<64x85xf32>
    %c0_74 = arith.constant 0 : index
    %c832 = arith.constant 832 : index
    %c0_75 = arith.constant 0 : index
    %125 = vector.load %arg19[%c0_74, %c832, %c0_75] : memref<1x1008x85xf32, #tpu.memory_space<vmem>>, vector<1x64x85xf32>
    %126 = vector.shape_cast %125 : vector<1x64x85xf32> to vector<64x85xf32>
    %127 = vector.shape_cast %124 : vector<64x85xf32> to vector<1x64x85xf32>
    tpu.vector_store %arg19[%c0_74, %c832, %c0_75], %127 {strides = array<i32>} : memref<1x1008x85xf32, #tpu.memory_space<vmem>>, vector<1x64x85xf32>,
    %c2_76 = arith.constant 2 : index
    %c0_77 = arith.constant 0 : index
    %c0_78 = arith.constant 0 : index
    %128 = vector.load %arg9[%c2_76, %c0_77, %c0_78] : memref<3x64x85xf32, #tpu.memory_space<vmem>>, vector<1x64x85xf32>
    %129 = vector.shape_cast %128 : vector<1x64x85xf32> to vector<64x85xf32>
    %cst_79 = arith.constant dense<0.000000e+00> : vector<64x85xf32>
    %130 = tpu.matmul %77, %129, %cst_79 {dimension_numbers = #tpu.dot_dimension_numbers<[1], [0], [0], [1], [0, 0, 1, 1], [], []>} : vector<64x64xf32>, vector<64x85xf32>, vector<64x85xf32> -> vector<64x85xf32>
    %c2_80 = arith.constant 2 : index
    %c0_81 = arith.constant 0 : index
    %c0_82 = arith.constant 0 : index
    %131 = vector.load %arg10[%c2_80, %c0_81, %c0_82] : memref<3x1x85xf32, #tpu.memory_space<vmem>>, vector<1x1x85xf32>
    %132 = vector.shape_cast %131 : vector<1x1x85xf32> to vector<1x85xf32>
    %133 = vector.broadcast %132 : vector<1x85xf32> to vector<64x85xf32>
    %134 = arith.addf %130, %133 : vector<64x85xf32>
    %135 = arith.negf %134 : vector<64x85xf32>
    %136 = math.exp %135 : vector<64x85xf32>
    %cst_83 = arith.constant 1.000000e+00 : f32
    %137 = vector.broadcast %cst_83 : f32 to vector<64x85xf32>
    %138 = arith.addf %137, %136 : vector<64x85xf32>
    %139 = arith.divf %137, %138 : vector<64x85xf32>
    %c2_84 = arith.constant 2 : index
    %c0_85 = arith.constant 0 : index
    %c0_86 = arith.constant 0 : index
    %140 = vector.load %arg11[%c2_84, %c0_85, %c0_86] : memref<3x1x85xf32, #tpu.memory_space<vmem>>, vector<1x1x85xf32>
    %141 = vector.shape_cast %140 : vector<1x1x85xf32> to vector<1x85xf32>
    %142 = arith.mulf %139, %139 : vector<64x85xf32>
    %143 = vector.broadcast %141 : vector<1x85xf32> to vector<64x85xf32>
    %144 = arith.mulf %143, %142 : vector<64x85xf32>
    %145 = vector.broadcast %78 : vector<1x85xf32> to vector<64x85xf32>
    %146 = arith.mulf %145, %139 : vector<64x85xf32>
    %147 = arith.addf %144, %146 : vector<64x85xf32>
    %148 = arith.addf %147, %79 : vector<64x85xf32>
    %c0_87 = arith.constant 0 : index
    %c896 = arith.constant 896 : index
    %c0_88 = arith.constant 0 : index
    %149 = vector.load %arg19[%c0_87, %c896, %c0_88] : memref<1x1008x85xf32, #tpu.memory_space<vmem>>, vector<1x64x85xf32>
    %150 = vector.shape_cast %149 : vector<1x64x85xf32> to vector<64x85xf32>
    %151 = vector.shape_cast %148 : vector<64x85xf32> to vector<1x64x85xf32>
    tpu.vector_store %arg19[%c0_87, %c896, %c0_88], %151 {strides = array<i32>} : memref<1x1008x85xf32, #tpu.memory_space<vmem>>, vector<1x64x85xf32>,
    %c0_89 = arith.constant 0 : index
    %c0_90 = arith.constant 0 : index
    %c0_91 = arith.constant 0 : index
    %152 = vector.load %arg3[%c0_89, %c0_90, %c0_91] : memref<1x16x128xf32, #tpu.memory_space<vmem>>, vector<1x16x128xf32>
    %153 = vector.shape_cast %152 : vector<1x16x128xf32> to vector<16x128xf32>
    %c0_92 = arith.constant 0 : index
    %c0_93 = arith.constant 0 : index
    %154 = vector.load %arg17[%c0_92, %c0_93] : memref<1x85xf32, #tpu.memory_space<vmem>>, vector<1x85xf32>
    %c0_94 = arith.constant 0 : index
    %c0_95 = arith.constant 0 : index
    %155 = vector.load %arg18[%c0_94, %c0_95] : memref<16x85xf32, #tpu.memory_space<vmem>>, vector<16x85xf32>
    %c0_96 = arith.constant 0 : index
    %c0_97 = arith.constant 0 : index
    %c0_98 = arith.constant 0 : index
    %156 = vector.load %arg14[%c0_96, %c0_97, %c0_98] : memref<3x128x85xf32, #tpu.memory_space<vmem>>, vector<1x128x85xf32>
    %157 = vector.shape_cast %156 : vector<1x128x85xf32> to vector<128x85xf32>
    %cst_99 = arith.constant dense<0.000000e+00> : vector<16x85xf32>
    %158 = tpu.matmul %153, %157, %cst_99 {dimension_numbers = #tpu.dot_dimension_numbers<[1], [0], [0], [1], [0, 0, 1, 1], [], []>} : vector<16x128xf32>, vector<128x85xf32>, vector<16x85xf32> -> vector<16x85xf32>
    %c0_100 = arith.constant 0 : index
    %c0_101 = arith.constant 0 : index
    %c0_102 = arith.constant 0 : index
    %159 = vector.load %arg15[%c0_100, %c0_101, %c0_102] : memref<3x1x85xf32, #tpu.memory_space<vmem>>, vector<1x1x85xf32>
    %160 = vector.shape_cast %159 : vector<1x1x85xf32> to vector<1x85xf32>
    %161 = vector.broadcast %160 : vector<1x85xf32> to vector<16x85xf32>
    %162 = arith.addf %158, %161 : vector<16x85xf32>
    %163 = arith.negf %162 : vector<16x85xf32>
    %164 = math.exp %163 : vector<16x85xf32>
    %cst_103 = arith.constant 1.000000e+00 : f32
    %165 = vector.broadcast %cst_103 : f32 to vector<16x85xf32>
    %166 = arith.addf %165, %164 : vector<16x85xf32>
    %167 = arith.divf %165, %166 : vector<16x85xf32>
    %c0_104 = arith.constant 0 : index
    %c0_105 = arith.constant 0 : index
    %c0_106 = arith.constant 0 : index
    %168 = vector.load %arg16[%c0_104, %c0_105, %c0_106] : memref<3x1x85xf32, #tpu.memory_space<vmem>>, vector<1x1x85xf32>
    %169 = vector.shape_cast %168 : vector<1x1x85xf32> to vector<1x85xf32>
    %170 = arith.mulf %167, %167 : vector<16x85xf32>
    %171 = vector.broadcast %169 : vector<1x85xf32> to vector<16x85xf32>
    %172 = arith.mulf %171, %170 : vector<16x85xf32>
    %173 = vector.broadcast %154 : vector<1x85xf32> to vector<16x85xf32>
    %174 = arith.mulf %173, %167 : vector<16x85xf32>
    %175 = arith.addf %172, %174 : vector<16x85xf32>
    %176 = arith.addf %175, %155 : vector<16x85xf32>
    %c0_107 = arith.constant 0 : index
    %c960 = arith.constant 960 : index
    %c0_108 = arith.constant 0 : index
    %177 = vector.load %arg19[%c0_107, %c960, %c0_108] : memref<1x1008x85xf32, #tpu.memory_space<vmem>>, vector<1x16x85xf32>
    %178 = vector.shape_cast %177 : vector<1x16x85xf32> to vector<16x85xf32>
    %179 = vector.shape_cast %176 : vector<16x85xf32> to vector<1x16x85xf32>
    tpu.vector_store %arg19[%c0_107, %c960, %c0_108], %179 {strides = array<i32>} : memref<1x1008x85xf32, #tpu.memory_space<vmem>>, vector<1x16x85xf32>,
    %c1_109 = arith.constant 1 : index
    %c0_110 = arith.constant 0 : index
    %c0_111 = arith.constant 0 : index
    %180 = vector.load %arg14[%c1_109, %c0_110, %c0_111] : memref<3x128x85xf32, #tpu.memory_space<vmem>>, vector<1x128x85xf32>
    %181 = vector.shape_cast %180 : vector<1x128x85xf32> to vector<128x85xf32>
    %cst_112 = arith.constant dense<0.000000e+00> : vector<16x85xf32>
    %182 = tpu.matmul %153, %181, %cst_112 {dimension_numbers = #tpu.dot_dimension_numbers<[1], [0], [0], [1], [0, 0, 1, 1], [], []>} : vector<16x128xf32>, vector<128x85xf32>, vector<16x85xf32> -> vector<16x85xf32>
    %c1_113 = arith.constant 1 : index
    %c0_114 = arith.constant 0 : index
    %c0_115 = arith.constant 0 : index
    %183 = vector.load %arg15[%c1_113, %c0_114, %c0_115] : memref<3x1x85xf32, #tpu.memory_space<vmem>>, vector<1x1x85xf32>
    %184 = vector.shape_cast %183 : vector<1x1x85xf32> to vector<1x85xf32>
    %185 = vector.broadcast %184 : vector<1x85xf32> to vector<16x85xf32>
    %186 = arith.addf %182, %185 : vector<16x85xf32>
    %187 = arith.negf %186 : vector<16x85xf32>
    %188 = math.exp %187 : vector<16x85xf32>
    %cst_116 = arith.constant 1.000000e+00 : f32
    %189 = vector.broadcast %cst_116 : f32 to vector<16x85xf32>
    %190 = arith.addf %189, %188 : vector<16x85xf32>
    %191 = arith.divf %189, %190 : vector<16x85xf32>
    %c1_117 = arith.constant 1 : index
    %c0_118 = arith.constant 0 : index
    %c0_119 = arith.constant 0 : index
    %192 = vector.load %arg16[%c1_117, %c0_118, %c0_119] : memref<3x1x85xf32, #tpu.memory_space<vmem>>, vector<1x1x85xf32>
    %193 = vector.shape_cast %192 : vector<1x1x85xf32> to vector<1x85xf32>
    %194 = arith.mulf %191, %191 : vector<16x85xf32>
    %195 = vector.broadcast %193 : vector<1x85xf32> to vector<16x85xf32>
    %196 = arith.mulf %195, %194 : vector<16x85xf32>
    %197 = vector.broadcast %154 : vector<1x85xf32> to vector<16x85xf32>
    %198 = arith.mulf %197, %191 : vector<16x85xf32>
    %199 = arith.addf %196, %198 : vector<16x85xf32>
    %200 = arith.addf %199, %155 : vector<16x85xf32>
    %c0_120 = arith.constant 0 : index
    %c976 = arith.constant 976 : index
    %c0_121 = arith.constant 0 : index
    %201 = vector.load %arg19[%c0_120, %c976, %c0_121] : memref<1x1008x85xf32, #tpu.memory_space<vmem>>, vector<1x16x85xf32>
    %202 = vector.shape_cast %201 : vector<1x16x85xf32> to vector<16x85xf32>
    %203 = vector.shape_cast %200 : vector<16x85xf32> to vector<1x16x85xf32>
    tpu.vector_store %arg19[%c0_120, %c976, %c0_121], %203 {strides = array<i32>} : memref<1x1008x85xf32, #tpu.memory_space<vmem>>, vector<1x16x85xf32>,
    %c2_122 = arith.constant 2 : index
    %c0_123 = arith.constant 0 : index
    %c0_124 = arith.constant 0 : index
    %204 = vector.load %arg14[%c2_122, %c0_123, %c0_124] : memref<3x128x85xf32, #tpu.memory_space<vmem>>, vector<1x128x85xf32>
    %205 = vector.shape_cast %204 : vector<1x128x85xf32> to vector<128x85xf32>
    %cst_125 = arith.constant dense<0.000000e+00> : vector<16x85xf32>
    %206 = tpu.matmul %153, %205, %cst_125 {dimension_numbers = #tpu.dot_dimension_numbers<[1], [0], [0], [1], [0, 0, 1, 1], [], []>} : vector<16x128xf32>, vector<128x85xf32>, vector<16x85xf32> -> vector<16x85xf32>
    %c2_126 = arith.constant 2 : index
    %c0_127 = arith.constant 0 : index
    %c0_128 = arith.constant 0 : index
    %207 = vector.load %arg15[%c2_126, %c0_127, %c0_128] : memref<3x1x85xf32, #tpu.memory_space<vmem>>, vector<1x1x85xf32>
    %208 = vector.shape_cast %207 : vector<1x1x85xf32> to vector<1x85xf32>
    %209 = vector.broadcast %208 : vector<1x85xf32> to vector<16x85xf32>
    %210 = arith.addf %206, %209 : vector<16x85xf32>
    %211 = arith.negf %210 : vector<16x85xf32>
    %212 = math.exp %211 : vector<16x85xf32>
    %cst_129 = arith.constant 1.000000e+00 : f32
    %213 = vector.broadcast %cst_129 : f32 to vector<16x85xf32>
    %214 = arith.addf %213, %212 : vector<16x85xf32>
    %215 = arith.divf %213, %214 : vector<16x85xf32>
    %c2_130 = arith.constant 2 : index
    %c0_131 = arith.constant 0 : index
    %c0_132 = arith.constant 0 : index
    %216 = vector.load %arg16[%c2_130, %c0_131, %c0_132] : memref<3x1x85xf32, #tpu.memory_space<vmem>>, vector<1x1x85xf32>
    %217 = vector.shape_cast %216 : vector<1x1x85xf32> to vector<1x85xf32>
    %218 = arith.mulf %215, %215 : vector<16x85xf32>
    %219 = vector.broadcast %217 : vector<1x85xf32> to vector<16x85xf32>
    %220 = arith.mulf %219, %218 : vector<16x85xf32>
    %221 = vector.broadcast %154 : vector<1x85xf32> to vector<16x85xf32>
    %222 = arith.mulf %221, %215 : vector<16x85xf32>
    %223 = arith.addf %220, %222 : vector<16x85xf32>
    %224 = arith.addf %223, %155 : vector<16x85xf32>
    %c0_133 = arith.constant 0 : index
    %c992 = arith.constant 992 : index
    %c0_134 = arith.constant 0 : index
    %225 = vector.load %arg19[%c0_133, %c992, %c0_134] : memref<1x1008x85xf32, #tpu.memory_space<vmem>>, vector<1x16x85xf32>
    %226 = vector.shape_cast %225 : vector<1x16x85xf32> to vector<16x85xf32>
    %227 = vector.shape_cast %224 : vector<16x85xf32> to vector<1x16x85xf32>
    tpu.vector_store %arg19[%c0_133, %c992, %c0_134], %227 {strides = array<i32>} : memref<1x1008x85xf32, #tpu.memory_space<vmem>>, vector<1x16x85xf32>,
    return
  }
  func.func @transform_0(%arg0: i32) -> (i32, i32, i32) {
    %c0_i32 = arith.constant 0 : i32
    %c0_i32_0 = arith.constant 0 : i32
    %c0_i32_1 = arith.constant 0 : i32
    return %arg0, %c0_i32, %c0_i32_0 : i32, i32, i32
  }
  func.func @transform_1(%arg0: i32) -> (i32, i32, i32) {
    %c0_i32 = arith.constant 0 : i32
    %c0_i32_0 = arith.constant 0 : i32
    %c0_i32_1 = arith.constant 0 : i32
    return %arg0, %c0_i32, %c0_i32_0 : i32, i32, i32
  }
  func.func @transform_2(%arg0: i32) -> (i32, i32, i32) {
    %c0_i32 = arith.constant 0 : i32
    %c0_i32_0 = arith.constant 0 : i32
    %c0_i32_1 = arith.constant 0 : i32
    return %arg0, %c0_i32, %c0_i32_0 : i32, i32, i32
  }
  func.func @transform_3(%arg0: i32) -> (i32, i32, i32) {
    %c0_i32 = arith.constant 0 : i32
    %c0_i32_0 = arith.constant 0 : i32
    %c0_i32_1 = arith.constant 0 : i32
    %c0_i32_2 = arith.constant 0 : i32
    return %c0_i32, %c0_i32_0, %c0_i32_1 : i32, i32, i32
  }
  func.func @transform_4(%arg0: i32) -> (i32, i32, i32) {
    %c0_i32 = arith.constant 0 : i32
    %c0_i32_0 = arith.constant 0 : i32
    %c0_i32_1 = arith.constant 0 : i32
    %c0_i32_2 = arith.constant 0 : i32
    return %c0_i32, %c0_i32_0, %c0_i32_1 : i32, i32, i32
  }
  func.func @transform_5(%arg0: i32) -> (i32, i32, i32) {
    %c0_i32 = arith.constant 0 : i32
    %c0_i32_0 = arith.constant 0 : i32
    %c0_i32_1 = arith.constant 0 : i32
    %c0_i32_2 = arith.constant 0 : i32
    return %c0_i32, %c0_i32_0, %c0_i32_1 : i32, i32, i32
  }
  func.func @transform_6(%arg0: i32) -> (i32, i32) {
    %c0_i32 = arith.constant 0 : i32
    %c0_i32_0 = arith.constant 0 : i32
    %c0_i32_1 = arith.constant 0 : i32
    return %c0_i32, %c0_i32_0 : i32, i32
  }
  func.func @transform_7(%arg0: i32) -> (i32, i32) {
    %c0_i32 = arith.constant 0 : i32
    %c0_i32_0 = arith.constant 0 : i32
    %c0_i32_1 = arith.constant 0 : i32
    return %c0_i32, %c0_i32_0 : i32, i32
  }
  func.func @transform_8(%arg0: i32) -> (i32, i32, i32) {
    %c0_i32 = arith.constant 0 : i32
    %c0_i32_0 = arith.constant 0 : i32
    %c0_i32_1 = arith.constant 0 : i32
    %c0_i32_2 = arith.constant 0 : i32
    return %c0_i32, %c0_i32_0, %c0_i32_1 : i32, i32, i32
  }
  func.func @transform_9(%arg0: i32) -> (i32, i32, i32) {
    %c0_i32 = arith.constant 0 : i32
    %c0_i32_0 = arith.constant 0 : i32
    %c0_i32_1 = arith.constant 0 : i32
    %c0_i32_2 = arith.constant 0 : i32
    return %c0_i32, %c0_i32_0, %c0_i32_1 : i32, i32, i32
  }
  func.func @transform_10(%arg0: i32) -> (i32, i32, i32) {
    %c0_i32 = arith.constant 0 : i32
    %c0_i32_0 = arith.constant 0 : i32
    %c0_i32_1 = arith.constant 0 : i32
    %c0_i32_2 = arith.constant 0 : i32
    return %c0_i32, %c0_i32_0, %c0_i32_1 : i32, i32, i32
  }
  func.func @transform_11(%arg0: i32) -> (i32, i32) {
    %c0_i32 = arith.constant 0 : i32
    %c0_i32_0 = arith.constant 0 : i32
    %c0_i32_1 = arith.constant 0 : i32
    return %c0_i32, %c0_i32_0 : i32, i32
  }
  func.func @transform_12(%arg0: i32) -> (i32, i32) {
    %c0_i32 = arith.constant 0 : i32
    %c0_i32_0 = arith.constant 0 : i32
    %c0_i32_1 = arith.constant 0 : i32
    return %c0_i32, %c0_i32_0 : i32, i32
  }
  func.func @transform_13(%arg0: i32) -> (i32, i32, i32) {
    %c0_i32 = arith.constant 0 : i32
    %c0_i32_0 = arith.constant 0 : i32
    %c0_i32_1 = arith.constant 0 : i32
    %c0_i32_2 = arith.constant 0 : i32
    return %c0_i32, %c0_i32_0, %c0_i32_1 : i32, i32, i32
  }
  func.func @transform_14(%arg0: i32) -> (i32, i32, i32) {
    %c0_i32 = arith.constant 0 : i32
    %c0_i32_0 = arith.constant 0 : i32
    %c0_i32_1 = arith.constant 0 : i32
    %c0_i32_2 = arith.constant 0 : i32
    return %c0_i32, %c0_i32_0, %c0_i32_1 : i32, i32, i32
  }
  func.func @transform_15(%arg0: i32) -> (i32, i32, i32) {
    %c0_i32 = arith.constant 0 : i32
    %c0_i32_0 = arith.constant 0 : i32
    %c0_i32_1 = arith.constant 0 : i32
    %c0_i32_2 = arith.constant 0 : i32
    return %c0_i32, %c0_i32_0, %c0_i32_1 : i32, i32, i32
  }
  func.func @transform_16(%arg0: i32) -> (i32, i32) {
    %c0_i32 = arith.constant 0 : i32
    %c0_i32_0 = arith.constant 0 : i32
    %c0_i32_1 = arith.constant 0 : i32
    return %c0_i32, %c0_i32_0 : i32, i32
  }
  func.func @transform_17(%arg0: i32) -> (i32, i32) {
    %c0_i32 = arith.constant 0 : i32
    %c0_i32_0 = arith.constant 0 : i32
    %c0_i32_1 = arith.constant 0 : i32
    return %c0_i32, %c0_i32_0 : i32, i32
  }
  func.func @transform_18(%arg0: i32) -> (i32, i32, i32) {
    %c0_i32 = arith.constant 0 : i32
    %c0_i32_0 = arith.constant 0 : i32
    %c0_i32_1 = arith.constant 0 : i32
    return %arg0, %c0_i32, %c0_i32_0 : i32, i32, i32
  }
}

</mosaic_0001>

<bundles_post_ra>
// kernel: tpu_custom_call.1
= control target key start
LH: loop header
LB: loop body
LE: loop exit
PB: predicated region body
PF: predicated region fallthrough
CT: control target
= control target key end

     0   :  { %s5625_s27 = smov 0   ;;  %s7939_s0 = inlined_call_operand.vmem [shape: f32[2,256,32], index: 0, kind: input, shape index: {}]   ;;  %s7940_s1 = inlined_call_operand.vmem [shape: f32[2,64,64], index: 1, kind: input, shape index: {}]   ;;  %s7941_s2 = inlined_call_operand.vmem [shape: f32[2,16,128], index: 2, kind: input, shape index: {}]   ;;  %s7942_s3 = inlined_call_operand.vmem [shape: f32[3,32,85], index: 3, kind: input, shape index: {}]   ;;  %s7943_s4 = inlined_call_operand.vmem [shape: f32[3,1,85], index: 4, kind: input, shape index: {}]   ;;  %s7944_s5 = inlined_call_operand.vmem [shape: f32[3,1,85], index: 5, kind: input, shape index: {}]   ;;  %s7945_s6 = inlined_call_operand.vmem [shape: f32[1,85], index: 6, kind: input, shape index: {}]   ;;  %s7946_s7 = inlined_call_operand.vmem [shape: f32[256,85], index: 7, kind: input, shape index: {}]   ;;  %s7947_s8 = inlined_call_operand.vmem [shape: f32[3,64,85], index: 8, kind: input, shape index: {}]   ;;  %s7948_s9 = inlined_call_operand.vmem [shape: f32[3,1,85], index: 9, kind: input, shape index: {}]   ;;  %s7949_s10 = inlined_call_operand.vmem [shape: f32[3,1,85], index: 10, kind: input, shape index: {}]   ;;  %s7950_s11 = inlined_call_operand.vmem [shape: f32[1,85], index: 11, kind: input, shape index: {}]   ;;  %s7951_s12 = inlined_call_operand.vmem [shape: f32[64,85], index: 12, kind: input, shape index: {}]   ;;  %s7952_s13 = inlined_call_operand.vmem [shape: f32[3,128,85], index: 13, kind: input, shape index: {}]   ;;  %s7953_s14 = inlined_call_operand.vmem [shape: f32[3,1,85], index: 14, kind: input, shape index: {}]   ;;  %s7954_s15 = inlined_call_operand.vmem [shape: f32[3,1,85], index: 15, kind: input, shape index: {}]   ;;  %s7955_s16 = inlined_call_operand.vmem [shape: f32[1,85], index: 16, kind: input, shape index: {}]   ;;  %s7956_s17 = inlined_call_operand.vmem [shape: f32[16,85], index: 17, kind: input, shape index: {}]   ;;  %s7957_s18 = inlined_call_operand.vmem [shape: f32[2,1008,85], index: 18, kind: output, shape index: {}]  }
   0x1   :  { %7958 = sst [smem:[#allocation29_spill]] %s7939_s0 }
   0x2   :  { %7959 = sst [smem:[#allocation30_spill]] %s7940_s1 }
   0x3   :  { %7960 = sst [smem:[#allocation31_spill]] %s7941_s2 }
   0x4 LB: > { %s3878_s28 = sadd.s32 4294967295, %s5528_s27   ;;  %p3882_p0 = scmp.ge.s32.totalorder %s5528_s27, 1  ;;  %s5528_s27 = sphi %s5625_s27, %s28_s27  }
   0x5   : > { %p532_p1 = scmp.lt.s32.totalorder %s5528_s27, 3 }
   0x7   : > { %p533_p2 = pnand %p3882_p0, %p532_p1 }
   0x9   : > { %536 = sbr.rel (%p533_p2) target bundleno = 618 (0x26a), region = 92 }
  0x10   : > { %v681_v0 = vld [vmem:[%s7942_s3] sm:$0xff]  ;;  %v682_v1 = vld [vmem:[%s7942_s3 + $0x8] sm:$0xff]  ;;  %v683_v2 = vld [vmem:[%s7942_s3 + $0x10] sm:$0xff]  ;;  %p596_p3 = scmp.lt.s32.totalorder %s3878_s28, 1  ;;  %vm692_vm0 = vcmask 261120   ;;  %s7961_s21 = sld [smem:[#allocation29_spill]] }
  0x11   : > { %v4797_v3 = vpack.c.bf16 %v682_v1, %v681_v0  ;;  %v684_v4 = vld [vmem:[%s7942_s3 + $0x18] sm:$0xff]  ;;  %v3957_v5 = vld [vmem:[%s7942_s3 + $0x20] sm:$0xff]  ;;  %v3958_v7 = vld [vmem:[%s7942_s3 + $0x28] sm:$0xff]  ;;  %s7962_s2 = sld [smem:[#allocation30_spill]]  ;;  %vm2704_vm1 = vcmask 523264   ;;  %vm1379_vm2 = vcmask 695296  }
  0x12   : > { %v4801_v6 = vpack.c.bf16 %v684_v4, %v683_v2  ;;  %s8025_s28 = smov (!%p596_p3, %s3878_s28), 1  ;;  %v4029_v8 = vld [vmem:[%s7942_s3 + $0x40] sm:$0xff]  ;;  %v4030_v9 = vld [vmem:[%s7942_s3 + $0x48] sm:$0xff]  ;;  %v4805_v10 = vpack.c.bf16 %v3958_v7, %v3957_v5  ;;  %v3959_v14 = vld [vmem:[%s7942_s3 + $0x30] sm:$0xff] }
  0x13   : > { %4798 = vmatprep.subr.bf16.mxu0 %v4797_v3  ;;  %4965 = vmatprep.subr.bf16.mxu1 %v4797_v3  ;;  %s4227_s19 = sshll.u32 %s8025_s28, 8  ;;  %v4813_v11 = vpack.c.bf16 %v4030_v9, %v4029_v8  ;;  %v3960_v15 = vld [vmem:[%s7942_s3 + $0x38] sm:$0xff]  ;;  %v4031_v16 = vld [vmem:[%s7942_s3 + $0x50] sm:$0xff]  ;;  %v2689_v24 = vld [vmem:[%s7947_s8] sm:$0xff]  ;;  %s4228_s30 = sshll.u32 %s8025_s28, 6 }
  0x14   : > { %4800 = vmatpush3.bf16.msra.mxu0 %v4797_v3  ;;  %4967 = vmatpush3.bf16.msra.mxu1 %v4797_v3  ;;  %v4032_v17 = vld [vmem:[%s7942_s3 + $0x58] sm:$0xff]  ;;  %v4809_v22 = vpack.c.bf16 %v3960_v15, %v3959_v14  ;;  %v2690_v25 = vld [vmem:[%s7947_s8 + $0x8] sm:$0xff]  ;;  %v3400_v33 = vld [vmem:[%s7952_s13] sm:$0xff]  ;;  %s4229_s1 = sshll.u32 %s8025_s28, 4  ;;  %s4969_s29 = smul.u32 1008, %s8025_s28 }
  0x15   : > { %4802 = vmatprep.subr.bf16.mxu0 %v4801_v6  ;;  %4966 = vmatprep.subr.bf16.mxu1 %v4801_v6  ;;  %v4817_v23 = vpack.c.bf16 %v4032_v17, %v4031_v16  ;;  %v4821_v30 = vpack.c.bf16 %v2690_v25, %v2689_v24  ;;  %v3401_v36 = vld [vmem:[%s7952_s13 + $0x8] sm:$0xff]  ;;  %v2691_v41 = vld [vmem:[%s7947_s8 + $0x10] sm:$0xff]  ;;  %v2692_v42 = vld [vmem:[%s7947_s8 + $0x18] sm:$0xff] }
  0x16   : > { %s5663_s22 = scalar_lea.vmem %s7961_s21, %s4227_s19  ;;  %v5751_v37 = vpack.c.bf16 %v3401_v36, %v3400_v33  ;;  %v4825_v45 = vpack.c.bf16 %v2692_v42, %v2691_v41  ;;  %v2693_v46 = vld [vmem:[%s7947_s8 + $0x20] sm:$0xff]  ;;  %v2694_v47 = vld [vmem:[%s7947_s8 + $0x28] sm:$0xff]  ;;  %v2695_v51 = vld [vmem:[%s7947_s8 + $0x30] sm:$0xff]  ;;  %s6391_s20 = scalar_lea.vmem %s7957_s18, %s4969_s29 }
  0x17   : > { %v5666_v12 = vld [vmem:[%s5663_s22] sm:$0xff]  ;;  %v5688_v18 = vld [vmem:[%s5663_s22 + $0x8] sm:$0xff]  ;;  %v5694_v20 = vld [vmem:[%s5663_s22 + $0x10] sm:$0xff]  ;;  %v4829_v50 = vpack.c.bf16 %v2694_v47, %v2693_v46  ;;  %s6010_s23 = scalar_lea.vmem %s7962_s2, %s4228_s30 }
  0x18   : > { %v5669_v13 = vld [vmem:[%s5663_s22 + $0xc0] sm:$0xff]  ;;  %4448 = vmatprep.mubr.msk.f32.mxu0 %vm692_vm0, %v5666_v12  ;;  %4804 = vmatpush3.bf16.msra.mxu0 %v4801_v6  ;;  %v5691_v19 = vld [vmem:[%s5663_s22 + $0xc8] sm:$0xff]  ;;  %v5697_v21 = vld [vmem:[%s5663_s22 + $0xd0] sm:$0xff] }
  0x19   : > { %4484 = vmatprep.mubr.msk.f32.mxu1 %vm692_vm0, %v5669_v13  ;;  %4968 = vmatpush3.bf16.msra.mxu1 %v4801_v6  ;;  %v5710_v26 = vld [vmem:[%s5663_s22 + $0x18] sm:$0xff]  ;;  %v5720_v28 = vld [vmem:[%s5663_s22 + $0x20] sm:$0xff]  ;;  %v5734_v31 = vld [vmem:[%s5663_s22 + $0x28] sm:$0xff] }
  0x1a   : > { %4806 = vmatprep.subr.bf16.mxu1 %v4805_v10  ;;  %4814 = vmatprep.subr.bf16.mxu0 %v4813_v11  ;;  %v5713_v27 = vld [vmem:[%s5663_s22 + $0xd8] sm:$0xff]  ;;  %v5723_v29 = vld [vmem:[%s5663_s22 + $0xe0] sm:$0xff]  ;;  %v5737_v32 = vld [vmem:[%s5663_s22 + $0xe8] sm:$0xff] }
  0x1b   : > { %4449 = vmatmul.mubr.msk.f32.vlgmr.msra.gmra.mrb[0].mxu0 %vm692_vm0, %v5688_v18  ;;  %v5743_v34 = vld [vmem:[%s5663_s22 + $0x30] sm:$0xff]  ;;  %v5762_v38 = vld [vmem:[%s5663_s22 + $0x38] sm:$0xff]  ;;  %v5768_v40 = vld [vmem:[%s5663_s22 + $0x40] sm:$0xff] }
  0x1c   : > { %4485 = vmatmul.mubr.msk.f32.vlgmr.msra.gmra.mrb[0].mxu1 %vm692_vm0, %v5691_v19  ;;  %4816 = vmatpush3.bf16.msra.mxu0 %v4813_v11  ;;  %v5746_v35 = vld [vmem:[%s5663_s22 + $0xf0] sm:$0xff]  ;;  %v5765_v39 = vld [vmem:[%s5663_s22 + $0xf8] sm:$0xff]  ;;  %v5786_v43 = vld [vmem:[%s5663_s22 + $0x48] sm:$0xff] }
  0x1d   : > { %4808 = vmatpush3.bf16.msra.mxu1 %v4805_v10  ;;  %4451 = vmatprep.mubr.msk.f32.mxu0 %vm692_vm0, %v5694_v20  ;;  %v5789_v44 = vld [vmem:[%s5663_s22 + $0x50] sm:$0xff]  ;;  %v5804_v48 = vld [vmem:[%s5663_s22 + $0x58] sm:$0xff]  ;;  %v5809_v49 = vld [vmem:[%s5663_s22 + $0x60] sm:$0xff] }
  0x1e   : > { %4487 = vmatprep.mubr.msk.f32.mxu1 %vm692_vm0, %v5697_v21  ;;  %4810 = vmatprep.subr.bf16.mxu1 %v4809_v22  ;;  %v2696_v52 = vld [vmem:[%s7947_s8 + $0x38] sm:$0xff]  ;;  %v5826_v53 = vld [vmem:[%s5663_s22 + $0x68] sm:$0xff]  ;;  %v5829_v54 = vld [vmem:[%s5663_s22 + $0x70] sm:$0xff] }
  0x1f   : > { %4818 = vmatprep.subr.bf16.mxu0 %v4817_v23  ;;  %4452 = vmatmul.mubr.msk.f32.gmra.mrb[2].mxu0 %vm692_vm0, %v5710_v26  ;;  %v4833_v55 = vpack.c.bf16 %v2696_v52, %v2695_v51  ;;  %v4120_v56 = vld [vmem:[%s7947_s8 + $0x40] sm:$0xff]  ;;  %v4121_v57 = vld [vmem:[%s7947_s8 + $0x48] sm:$0xff]  ;;  %v5846_v58 = vld [vmem:[%s5663_s22 + $0x78] sm:$0xff] }
  0x20   : > { %4488 = vmatmul.mubr.msk.f32.gmra.mrb[2].mxu1 %vm692_vm0, %v5713_v27  ;;  %4454 = vmatprep.mubr.msk.f32.mxu0 %vm692_vm0, %v5720_v28  ;;  %v5849_v59 = vld [vmem:[%s5663_s22 + $0x80] sm:$0xff]  ;;  %v5851_v60 = vpack.c.bf16 %v4121_v57, %v4120_v56  ;;  %v5862_v61 = vld [vmem:[%s5663_s22 + $0x88] sm:$0xff]  ;;  %v5865_v62 = vld [vmem:[%s5663_s22 + $0x90] sm:$0xff] }
  0x21   : > { %4490 = vmatprep.mubr.msk.f32.mxu1 %vm692_vm0, %v5723_v29  ;;  %4812 = vmatpush3.bf16.msra.mxu1 %v4809_v22  ;;  %v5877_v63 = vld [vmem:[%s5663_s22 + $0x98] sm:$0xff]  ;;  %v5880_v0 = vld [vmem:[%s5663_s22 + $0xa0] sm:$0xff]  ;;  %v5891_v1 = vld [vmem:[%s5663_s22 + $0xa8] sm:$0xff] }
  0x22   : > { %4820 = vmatpush3.bf16.msra.mxu0 %v4817_v23  ;;  %4822 = vmatprep.subr.bf16.mxu1 %v4821_v30  ;;  %v5894_v2 = vld [vmem:[%s5663_s22 + $0xb0] sm:$0xff]  ;;  %v5905_v3 = vld [vmem:[%s5663_s22 + $0xb8] sm:$0xff]  ;;  %v3404_v7 = vld [vmem:[%s7952_s13 + $0x20] sm:$0xff]  ;;  %s7963_s22 = sld [smem:[#allocation31_spill]] }
  0x23   : > { %4455 = vmatmul.mubr.msk.f32.gmra.mrb[4].mxu0 %vm692_vm0, %v5734_v31  ;;  %4870 = vmatprep.subr.bf16.mxu0 %v5751_v37  ;;  %v3402_v4 = vld [vmem:[%s7952_s13 + $0x10] sm:$0xff]  ;;  %v3403_v5 = vld [vmem:[%s7952_s13 + $0x18] sm:$0xff]  ;;  %v3405_v8 = vld [vmem:[%s7952_s13 + $0x28] sm:$0xff] }
  0x24   : > { %4491 = vmatmul.mubr.msk.f32.gmra.mrb[4].mxu1 %vm692_vm0, %v5737_v32  ;;  %4457 = vmatprep.mubr.msk.f32.mxu0 %vm692_vm0, %v5743_v34  ;;  %v4873_v6 = vpack.c.bf16 %v3403_v5, %v3402_v4  ;;  %v4877_v9 = vpack.c.bf16 %v3405_v8, %v3404_v7  ;;  %v3406_v10 = vld [vmem:[%s7952_s13 + $0x30] sm:$0xff]  ;;  %v3407_v11 = vld [vmem:[%s7952_s13 + $0x38] sm:$0xff]  ;;  %v3408_v14 = vld [vmem:[%s7952_s13 + $0x40] sm:$0xff] }
  0x25   : > { %4493 = vmatprep.mubr.msk.f32.mxu1 %vm692_vm0, %v5746_v35  ;;  %v3409_v15 = vld [vmem:[%s7952_s13 + $0x48] sm:$0xff]  ;;  %v3410_v17 = vld [vmem:[%s7952_s13 + $0x50] sm:$0xff]  ;;  %v3412_v22 = vld [vmem:[%s7952_s13 + $0x60] sm:$0xff] }
  0x26   : > { %v4885_v16 = vpack.c.bf16 %v3409_v15, %v3408_v14  ;;  %v3413_v23 = vld [vmem:[%s7952_s13 + $0x68] sm:$0xff]  ;;  %v3414_v25 = vld [vmem:[%s7952_s13 + $0x70] sm:$0xff]  ;;  %v6027_v33 = vld [vmem:[%s6010_s23] sm:$0xff] }
  0x27   : > { %4458 = vmatmul.mubr.msk.f32.gmra.mrb[6].mxu0 %vm692_vm0, %v5762_v38  ;;  %v4893_v24 = vpack.c.bf16 %v3413_v23, %v3412_v22  ;;  %v4123_v36 = vld [vmem:[%s7947_s8 + $0x58] sm:$0xff]  ;;  %v6049_v41 = vld [vmem:[%s6010_s23 + $0x10] sm:$0xff]  ;;  %v4124_v42 = vld [vmem:[%s7947_s8 + $0x60] sm:$0xff] }
  0x28   : > { %4494 = vmatmul.mubr.msk.f32.gmra.mrb[6].mxu1 %vm692_vm0, %v5765_v39  ;;  %4460 = vmatprep.mubr.msk.f32.mxu0 %vm692_vm0, %v5768_v40  ;;  %v6071_v46 = vld [vmem:[%s6010_s23 + $0x20] sm:$0xff]  ;;  %v4126_v47 = vld [vmem:[%s7947_s8 + $0x70] sm:$0xff]  ;;  %v4151_v57 = vld [vmem:[%s7947_s8 + $0x98] sm:$0xff]  ;;  %s610_s2 = scalar_lea.vmem %s7963_s22, %s4229_s1 }
  0x29   : > { %4504 = vmatprep.mubr.msk.f32.mxu1 %vm692_vm0, %v5666_v12  ;;  %v6091_v51 = vld [vmem:[%s6010_s23 + $0x30] sm:$0xff]  ;;  %v4148_v52 = vld [vmem:[%s7947_s8 + $0x80] sm:$0xff]  ;;  %v4208_v7 = vld [vmem:[%s7952_s13 + $0x128] sm:$0xff] }
  0x2a   : > { %v4150_v56 = vld [vmem:[%s7947_s8 + $0x90] sm:$0xff]  ;;  %v4185_v5 = vld [vmem:[%s7952_s13 + $0xa0] sm:$0xff]  ;;  %v4210_v14 = vld [vmem:[%s7952_s13 + $0x138] sm:$0xff] }
  0x2b   : > { %4461 = vmatmul.mubr.msk.f32.gmra.mrb[8].mxu0 %vm692_vm0, %v5786_v43  ;;  %v4212_v22 = vld [vmem:[%s7952_s13 + $0x148] sm:$0xff] }
  0x2c   : > { %4505 = vmatmul.mubr.msk.f32.vlgmr.msra.gmra.mrb[8].mxu1 %vm692_vm0, %v5688_v18  ;;  %4463 = vmatprep.mubr.msk.f32.mxu0 %vm692_vm0, %v5789_v44 }
  0x2d   : > { %4824 = vmatpush3.bf16.msra.mxu1 %v4821_v30  ;;  %4507 = vmatprep.mubr.msk.f32.mxu1 %vm692_vm0, %v5694_v20  ;;  %v4203_v30 = vld [vmem:[%s7952_s13 + $0x100] sm:$0xff] }
  0x2e   : > { %4826 = vmatprep.subr.bf16.mxu1 %v4825_v45 }
  0x2f   : > { %4464 = vmatmul.mubr.msk.f32.gmra.mrb[10].mxu0 %vm692_vm0, %v5804_v48 }
  0x30   : > { %4508 = vmatmul.mubr.msk.f32.gmra.mrb[10].mxu1 %vm692_vm0, %v5710_v26  ;;  %4466 = vmatprep.mubr.msk.f32.mxu0 %vm692_vm0, %v5809_v49 }
  0x31   : > { %4510 = vmatprep.mubr.msk.f32.mxu1 %vm692_vm0, %v5720_v28  ;;  %4828 = vmatpush3.bf16.msra.mxu1 %v4825_v45 }
  0x32   : > { %4830 = vmatprep.subr.bf16.mxu1 %v4829_v50 }
  0x33   : > { %4467 = vmatmul.mubr.msk.f32.gmra.mrb[12].mxu0 %vm692_vm0, %v5826_v53 }
  0x34   : > { %4511 = vmatmul.mubr.msk.f32.gmra.mrb[12].mxu1 %vm692_vm0, %v5734_v31  ;;  %4469 = vmatprep.mubr.msk.f32.mxu0 %vm692_vm0, %v5829_v54 }
  0x35   : > { %4513 = vmatprep.mubr.msk.f32.mxu1 %vm692_vm0, %v5743_v34  ;;  %4832 = vmatpush3.bf16.msra.mxu1 %v4829_v50 }
  0x36   : > { %4834 = vmatprep.subr.bf16.mxu1 %v4833_v55 }
  0x37   : > { %4470 = vmatmul.mubr.msk.f32.gmra.mrb[14].mxu0 %vm692_vm0, %v5846_v58 }
  0x38   : > { %4514 = vmatmul.mubr.msk.f32.gmra.mrb[14].mxu1 %vm692_vm0, %v5762_v38  ;;  %4472 = vmatprep.mubr.msk.f32.mxu0 %vm692_vm0, %v5849_v59 }
  0x39   : > { %4516 = vmatprep.mubr.msk.f32.mxu1 %vm692_vm0, %v5768_v40  ;;  %4836 = vmatpush3.bf16.msra.mxu1 %v4833_v55 }
  0x3a   : > { %4838 = vmatprep.subr.bf16.mxu1 %v5851_v60 }
  0x3b   : > { %4473 = vmatmul.mubr.msk.f32.gmra.mrb[16].mxu0 %vm692_vm0, %v5862_v61 }
  0x3c   : > { %4517 = vmatmul.mubr.msk.f32.gmra.mrb[16].mxu1 %vm692_vm0, %v5786_v43  ;;  %4475 = vmatprep.mubr.msk.f32.mxu0 %vm692_vm0, %v5865_v62 }
  0x3d   : > { %4519 = vmatprep.mubr.msk.f32.mxu1 %vm692_vm0, %v5789_v44 }
  0x3f   : > { %4476 = vmatmul.mubr.msk.f32.gmra.mrb[18].mxu0 %vm692_vm0, %v5877_v63 }
  0x40   : > { %4520 = vmatmul.mubr.msk.f32.gmra.mrb[18].mxu1 %vm692_vm0, %v5804_v48  ;;  %4478 = vmatprep.mubr.msk.f32.mxu0 %vm692_vm0, %v5880_v0 }
  0x41   : > { %4522 = vmatprep.mubr.msk.f32.mxu1 %vm692_vm0, %v5809_v49 }
  0x43   : > { %4479 = vmatmul.mubr.msk.f32.gmra.mrb[20].mxu0 %vm692_vm0, %v5891_v1 }
  0x44   : > { %4523 = vmatmul.mubr.msk.f32.gmra.mrb[20].mxu1 %vm692_vm0, %v5826_v53  ;;  %4481 = vmatprep.mubr.msk.f32.mxu0 %vm692_vm0, %v5894_v2 }
  0x45   : > { %4525 = vmatprep.mubr.msk.f32.mxu1 %vm692_vm0, %v5829_v54 }
  0x47   : > { %4482 = vmatmul.mubr.msk.f32.gmra.mrb[22].mxu0 %vm692_vm0, %v5905_v3 }
  0x48   : > { %4526 = vmatmul.mubr.msk.f32.gmra.mrb[22].mxu1 %vm692_vm0, %v5846_v58  ;;  %4560 = vmatprep.mubr.msk.f32.mxu0 %vm692_vm0, %v5666_v12  ;;  %v4881_v12 = vpack.c.bf16 %v3407_v11, %v3406_v10  ;;  %v4187_v10 = vld [vmem:[%s7952_s13 + $0xb0] sm:$0xff]  ;;  %v4188_v11 = vld [vmem:[%s7952_s13 + $0xb8] sm:$0xff] }
  0x49   : > { %4528 = vmatprep.mubr.msk.f32.mxu1 %vm692_vm0, %v5849_v59  ;;  %v4913_v15 = vpack.c.bf16 %v4188_v11, %v4187_v10 }
  0x4b   : > { %4561 = vmatmul.mubr.msk.f32.vlgmr.msra.gmra.mrb[24].mxu0 %vm692_vm0, %v5688_v18  ;;  %v3411_v18 = vld [vmem:[%s7952_s13 + $0x58] sm:$0xff] }
  0x4c   : > { %4529 = vmatmul.mubr.msk.f32.gmra.mrb[24].mxu1 %vm692_vm0, %v5862_v61  ;;  %4872 = vmatpush3.bf16.msra.mxu0 %v5751_v37 }
  0x4d   : > { %4531 = vmatprep.mubr.msk.f32.mxu1 %vm692_vm0, %v5865_v62  ;;  %4563 = vmatprep.mubr.msk.f32.mxu0 %vm692_vm0, %v5694_v20  ;;  %v4889_v20 = vpack.c.bf16 %v3411_v18, %v3410_v17  ;;  %v4189_v17 = vld [vmem:[%s7952_s13 + $0xc0] sm:$0xff]  ;;  %v4190_v18 = vld [vmem:[%s7952_s13 + $0xc8] sm:$0xff] }
  0x4e   : > { %4874 = vmatprep.subr.bf16.mxu0 %v4873_v6  ;;  %v4917_v23 = vpack.c.bf16 %v4190_v18, %v4189_v17 }
  0x4f   : > { %4564 = vmatmul.mubr.msk.f32.gmra.mrb[26].mxu0 %vm692_vm0, %v5710_v26  ;;  %v3415_v26 = vld [vmem:[%s7952_s13 + $0x78] sm:$0xff] }
  0x50   : > { %4532 = vmatmul.mubr.msk.f32.gmra.mrb[26].mxu1 %vm692_vm0, %v5877_v63  ;;  %4566 = vmatprep.mubr.msk.f32.mxu0 %vm692_vm0, %v5720_v28  ;;  %v4897_v28 = vpack.c.bf16 %v3415_v26, %v3414_v25  ;;  %v4191_v25 = vld [vmem:[%s7952_s13 + $0xd0] sm:$0xff]  ;;  %v4192_v26 = vld [vmem:[%s7952_s13 + $0xd8] sm:$0xff] }
  0x51   : > { %4534 = vmatprep.mubr.msk.f32.mxu1 %vm692_vm0, %v5880_v0  ;;  %4876 = vmatpush3.bf16.msra.mxu0 %v4873_v6  ;;  %v4207_v6 = vld [vmem:[%s7952_s13 + $0x120] sm:$0xff] }
  0x52   : > { %4878 = vmatprep.subr.bf16.mxu0 %v4877_v9 }
  0x53   : > { %4567 = vmatmul.mubr.msk.f32.gmra.mrb[28].mxu0 %vm692_vm0, %v5734_v31  ;;  %v4204_v31 = vld [vmem:[%s7952_s13 + $0x108] sm:$0xff] }
  0x54   : > { %4535 = vmatmul.mubr.msk.f32.gmra.mrb[28].mxu1 %vm692_vm0, %v5891_v1  ;;  %4569 = vmatprep.mubr.msk.f32.mxu0 %vm692_vm0, %v5743_v34  ;;  %v4122_v34 = vld [vmem:[%s7947_s8 + $0x50] sm:$0xff]  ;;  %v6035_v37 = vpack.c.bf16 %v4204_v31, %v4203_v30  ;;  %v4214_v30 = vld [vmem:[%s7952_s13 + $0x158] sm:$0xff]  ;;  %v4921_v31 = vpack.c.bf16 %v4192_v26, %v4191_v25 }
  0x55   : > { %4537 = vmatprep.mubr.msk.f32.mxu1 %vm692_vm0, %v5894_v2  ;;  %4880 = vmatpush3.bf16.msra.mxu0 %v4877_v9  ;;  %v4941_v9 = vpack.c.bf16 %v4208_v7, %v4207_v6 }
  0x56   : > { %4882 = vmatprep.subr.bf16.mxu0 %v4881_v12 }
  0x57   : > { %4570 = vmatmul.mubr.msk.f32.gmra.mrb[30].mxu0 %vm692_vm0, %v5762_v38  ;;  %v6046_v38 = vld [vmem:[%s6010_s23 + $0x8] sm:$0xff] }
  0x58   : > { %4538 = vmatmul.mubr.msk.f32.gmra.mrb[30].mxu1 %vm692_vm0, %v5905_v3  ;;  %4572 = vmatprep.mubr.msk.f32.mxu0 %vm692_vm0, %v5768_v40  ;;  %v4841_v40 = vpack.c.bf16 %v4123_v36, %v4122_v34  ;;  %v4193_v34 = vld [vmem:[%s7952_s13 + $0xe0] sm:$0xff]  ;;  %v4194_v36 = vld [vmem:[%s7952_s13 + $0xe8] sm:$0xff] }
  0x59   : > { %4540 = vmatprep.mubr.msk.f32.mxu1 %vm692_vm0, %v5669_v13  ;;  %4884 = vmatpush3.bf16.msra.mxu0 %v4881_v12  ;;  %v4209_v12 = vld [vmem:[%s7952_s13 + $0x130] sm:$0xff] }
  0x5a   : > { %4886 = vmatprep.subr.bf16.mxu0 %v4885_v16 }
  0x5b   : > { %4573 = vmatmul.mubr.msk.f32.gmra.mrb[32].mxu0 %vm692_vm0, %v5786_v43  ;;  %v4125_v43 = vld [vmem:[%s7947_s8 + $0x68] sm:$0xff] }
  0x5c   : > { %4541 = vmatmul.mubr.msk.f32.gmra.mrb[32].mxu1 %vm692_vm0, %v5691_v19  ;;  %4575 = vmatprep.mubr.msk.f32.mxu0 %vm692_vm0, %v5789_v44  ;;  %v6066_v44 = vld [vmem:[%s6010_s23 + $0x18] sm:$0xff]  ;;  %v4845_v45 = vpack.c.bf16 %v4125_v43, %v4124_v42  ;;  %v4195_v42 = vld [vmem:[%s7952_s13 + $0xf0] sm:$0xff] }
  0x5d   : > { %4543 = vmatprep.mubr.msk.f32.mxu1 %vm692_vm0, %v5697_v21  ;;  %4888 = vmatpush3.bf16.msra.mxu0 %v4885_v16  ;;  %v4945_v16 = vpack.c.bf16 %v4210_v14, %v4209_v12  ;;  %v4196_v43 = vld [vmem:[%s7952_s13 + $0xf8] sm:$0xff] }
  0x5e   : > { %4890 = vmatprep.subr.bf16.mxu0 %v4889_v20 }
  0x5f   : > { %4576 = vmatmul.mubr.msk.f32.gmra.mrb[34].mxu0 %vm692_vm0, %v5804_v48  ;;  %v4127_v48 = vld [vmem:[%s7947_s8 + $0x78] sm:$0xff] }
  0x60   : > { %4544 = vmatmul.mubr.msk.f32.gmra.mrb[34].mxu1 %vm692_vm0, %v5713_v27  ;;  %4578 = vmatprep.mubr.msk.f32.mxu0 %vm692_vm0, %v5809_v49  ;;  %v6086_v49 = vld [vmem:[%s6010_s23 + $0x28] sm:$0xff]  ;;  %v4849_v50 = vpack.c.bf16 %v4127_v48, %v4126_v47  ;;  %v6288_v48 = vld [vmem:[%s7943_s4] ss:$0 sm:$0xff] }
  0x61   : > { %4546 = vmatprep.mubr.msk.f32.mxu1 %vm692_vm0, %v5723_v29  ;;  %4892 = vmatpush3.bf16.msra.mxu0 %v4889_v20  ;;  %v4211_v20 = vld [vmem:[%s7952_s13 + $0x140] sm:$0xff] }
  0x62   : > { %4894 = vmatprep.subr.bf16.mxu0 %v4893_v24 }
  0x63   : > { %4579 = vmatmul.mubr.msk.f32.gmra.mrb[36].mxu0 %vm692_vm0, %v5826_v53  ;;  %v4149_v53 = vld [vmem:[%s7947_s8 + $0x88] sm:$0xff] }
  0x64   : > { %4547 = vmatmul.mubr.msk.f32.gmra.mrb[36].mxu1 %vm692_vm0, %v5737_v32  ;;  %4581 = vmatprep.mubr.msk.f32.mxu0 %vm692_vm0, %v5829_v54  ;;  %v6106_v54 = vld [vmem:[%s6010_s23 + $0x38] sm:$0xff]  ;;  %v4853_v55 = vpack.c.bf16 %v4149_v53, %v4148_v52 }
  0x65   : > { %4549 = vmatprep.mubr.msk.f32.mxu1 %vm692_vm0, %v5746_v35  ;;  %4896 = vmatpush3.bf16.msra.mxu0 %v4893_v24  ;;  %v4949_v24 = vpack.c.bf16 %v4212_v22, %v4211_v20 }
  0x66   : > { %4898 = vmatprep.subr.bf16.mxu0 %v4897_v28 }
  0x67   : > { %4582 = vmatmul.mubr.msk.f32.gmra.mrb[38].mxu0 %vm692_vm0, %v5846_v58  ;;  %v4857_v58 = vpack.c.bf16 %v4151_v57, %v4150_v56 }
  0x68   : > { %4550 = vmatmul.mubr.msk.f32.gmra.mrb[38].mxu1 %vm692_vm0, %v5765_v39  ;;  %4584 = vmatprep.mubr.msk.f32.mxu0 %vm692_vm0, %v5849_v59  ;;  %v4152_v59 = vld [vmem:[%s7947_s8 + $0xa0] sm:$0xff] }
  0x69   : > { %4624 = vmatprep.mubr.msk.f32.mxu1 %vm2704_vm1, %v6027_v33  ;;  %4900 = vmatpush3.bf16.msra.mxu0 %v4897_v28  ;;  %v4213_v28 = vld [vmem:[%s7952_s13 + $0x150] sm:$0xff] }
  0x6a   : > { %4934 = vmatprep.subr.bf16.mxu0 %v6035_v37 }
  0x6b   : > { %4585 = vmatmul.mubr.msk.f32.gmra.mrb[40].mxu0 %vm692_vm0, %v5862_v61  ;;  %v4154_v61 = vld [vmem:[%s7947_s8 + $0xb0] sm:$0xff] }
  0x6c   : > { %4625 = vmatmul.mubr.msk.f32.vlgmr.msra.gmra.mrb[40].mxu1 %vm2704_vm1, %v6046_v38  ;;  %4587 = vmatprep.mubr.msk.f32.mxu0 %vm692_vm0, %v5865_v62  ;;  %v4182_v62 = vld [vmem:[%s7952_s13 + $0x88] sm:$0xff] }
  0x6d   : > { %4840 = vmatpush3.bf16.msra.mxu1 %v5851_v60  ;;  %4627 = vmatprep.mubr.msk.f32.mxu1 %vm2704_vm1, %v6049_v41  ;;  %v4153_v60 = vld [vmem:[%s7947_s8 + $0xa8] sm:$0xff] }
  0x6e   : > { %4842 = vmatprep.subr.bf16.mxu1 %v4841_v40 }
  0x6f   : > { %4588 = vmatmul.mubr.msk.f32.gmra.mrb[42].mxu0 %vm692_vm0, %v5877_v63 }
  0x70   : > { %4628 = vmatmul.mubr.msk.f32.gmra.mrb[42].mxu1 %vm2704_vm1, %v6066_v44  ;;  %4590 = vmatprep.mubr.msk.f32.mxu0 %vm692_vm0, %v5880_v0  ;;  %v4183_v0 = vld [vmem:[%s7952_s13 + $0x90] sm:$0xff] }
  0x71   : > { %4844 = vmatpush3.bf16.msra.mxu1 %v4841_v40  ;;  %4630 = vmatprep.mubr.msk.f32.mxu1 %vm2704_vm1, %v6071_v46  ;;  %v4925_v40 = vpack.c.bf16 %v4194_v36, %v4193_v34 }
  0x72   : > { %4846 = vmatprep.subr.bf16.mxu1 %v4845_v45 }
  0x73   : > { %4591 = vmatmul.mubr.msk.f32.gmra.mrb[44].mxu0 %vm692_vm0, %v5891_v1  ;;  %v4205_v1 = vld [vmem:[%s7952_s13 + $0x110] sm:$0xff] }
  0x74   : > { %4631 = vmatmul.mubr.msk.f32.gmra.mrb[44].mxu1 %vm2704_vm1, %v6086_v49  ;;  %4593 = vmatprep.mubr.msk.f32.mxu0 %vm692_vm0, %v5894_v2  ;;  %v6190_v2 = vld [vmem:[%s610_s2 + $0x8] sm:$0xff] }
  0x75   : > { %4848 = vmatpush3.bf16.msra.mxu1 %v4845_v45  ;;  %4633 = vmatprep.mubr.msk.f32.mxu1 %vm2704_vm1, %v6091_v51  ;;  %v4218_v45 = vld [vmem:[%s7952_s13 + $0x178] sm:$0xff] }
  0x76   : > { %4850 = vmatprep.subr.bf16.mxu1 %v4849_v50 }
  0x77   : > { %4594 = vmatmul.mubr.msk.f32.gmra.mrb[46].mxu0 %vm692_vm0, %v5905_v3 }
  0x78   : > { %4634 = vmatmul.mubr.msk.f32.gmra.mrb[46].mxu1 %vm2704_vm1, %v6106_v54  ;;  %4596 = vmatprep.mubr.msk.f32.mxu0 %vm692_vm0, %v5669_v13  ;;  %v4861_v13 = vpack.c.bf16 %v4153_v60, %v4152_v59 }
  0x79   : > { %4852 = vmatpush3.bf16.msra.mxu1 %v4849_v50  ;;  %4652 = vmatprep.mubr.msk.f32.mxu1 %vm2704_vm1, %v6027_v33 }
  0x7a   : > { %4854 = vmatprep.subr.bf16.mxu1 %v4853_v55 }
  0x7b   : > { %4597 = vmatmul.mubr.msk.f32.gmra.mrb[48].mxu0 %vm692_vm0, %v5691_v19  ;;  %v4155_v19 = vld [vmem:[%s7947_s8 + $0xb8] sm:$0xff] }
  0x7c   : > { %4653 = vmatmul.mubr.msk.f32.vlgmr.msra.gmra.mrb[48].mxu1 %vm2704_vm1, %v6046_v38  ;;  %4599 = vmatprep.mubr.msk.f32.mxu0 %vm692_vm0, %v5697_v21  ;;  %v4865_v21 = vpack.c.bf16 %v4155_v19, %v4154_v61 }
  0x7d   : > { %4856 = vmatpush3.bf16.msra.mxu1 %v4853_v55  ;;  %4655 = vmatprep.mubr.msk.f32.mxu1 %vm2704_vm1, %v6049_v41 }
  0x7e   : > { %4858 = vmatprep.subr.bf16.mxu1 %v4857_v58 }
  0x7f   : > { %4600 = vmatmul.mubr.msk.f32.gmra.mrb[50].mxu0 %vm692_vm0, %v5713_v27  ;;  %v4181_v27 = vld [vmem:[%s7952_s13 + $0x80] sm:$0xff] }
  0x80   : > { %4656 = vmatmul.mubr.msk.f32.gmra.mrb[50].mxu1 %vm2704_vm1, %v6066_v44  ;;  %4602 = vmatprep.mubr.msk.f32.mxu0 %vm692_vm0, %v5723_v29  ;;  %v6170_v29 = vld [vmem:[%s610_s2] sm:$0xff]  ;;  %v4901_v63 = vpack.c.bf16 %v4182_v62, %v4181_v27 }
  0x81   : > { %4860 = vmatpush3.bf16.msra.mxu1 %v4857_v58  ;;  %4658 = vmatprep.mubr.msk.f32.mxu1 %vm2704_vm1, %v6071_v46 }
  0x82   : > { %4862 = vmatprep.subr.bf16.mxu1 %v4861_v13 }
  0x83   : > { %4603 = vmatmul.mubr.msk.f32.gmra.mrb[52].mxu0 %vm692_vm0, %v5737_v32  ;;  %v4184_v32 = vld [vmem:[%s7952_s13 + $0x98] sm:$0xff] }
  0x84   : > { %4659 = vmatmul.mubr.msk.f32.gmra.mrb[52].mxu1 %vm2704_vm1, %v6086_v49  ;;  %4605 = vmatprep.mubr.msk.f32.mxu0 %vm692_vm0, %v5746_v35  ;;  %v4206_v35 = vld [vmem:[%s7952_s13 + $0x118] sm:$0xff]  ;;  %v4905_v3 = vpack.c.bf16 %v4184_v32, %v4183_v0 }
  0x85   : > { %4864 = vmatpush3.bf16.msra.mxu1 %v4861_v13  ;;  %4661 = vmatprep.mubr.msk.f32.mxu1 %vm2704_vm1, %v6091_v51  ;;  %v4937_v4 = vpack.c.bf16 %v4206_v35, %v4205_v1 }
  0x86   : > { %4866 = vmatprep.subr.bf16.mxu1 %v4865_v21 }
  0x87   : > { %4606 = vmatmul.mubr.msk.f32.gmra.mrb[54].mxu0 %vm692_vm0, %v5765_v39  ;;  %v4186_v39 = vld [vmem:[%s7952_s13 + $0xa8] sm:$0xff] }
  0x88   : > { %4662 = vmatmul.mubr.msk.f32.gmra.mrb[54].mxu1 %vm2704_vm1, %v6106_v54  ;;  %4724 = vmatprep.mubr.f32.mxu0 %v6170_v29  ;;  %v4909_v8 = vpack.c.bf16 %v4186_v39, %v4185_v5 }
  0x89   : > { %4868 = vmatpush3.bf16.msra.mxu1 %v4865_v21  ;;  %4680 = vmatprep.mubr.msk.f32.mxu1 %vm2704_vm1, %v6027_v33  ;;  %v4953_v33 = vpack.c.bf16 %v4214_v30, %v4213_v28 }
  0x8a   : > { %4902 = vmatprep.subr.bf16.mxu1 %v4901_v63 }
  0x8b   : > { %4725 = vmatmul.mubr.f32.vlgmr.msra.gmra.mrb[56].mxu0 %v6190_v2 }
  0x8c   : > { %4681 = vmatmul.mubr.msk.f32.vlgmr.msra.gmra.mrb[56].mxu1 %vm2704_vm1, %v6046_v38  ;;  %4936 = vmatpush3.bf16.msra.mxu0 %v6035_v37  ;;  %v4215_v37 = vld [vmem:[%s7952_s13 + $0x160] sm:$0xff]  ;;  %v4216_v38 = vld [vmem:[%s7952_s13 + $0x168] sm:$0xff] }
  0x8d   : > { %4904 = vmatpush3.bf16.msra.mxu1 %v4901_v63  ;;  %4938 = vmatprep.subr.bf16.mxu0 %v4937_v4 }
  0x8e   : > { %4906 = vmatprep.subr.bf16.mxu1 %v4905_v3  ;;  %4683 = vmatprep.mubr.msk.f32.mxu1 %vm2704_vm1, %v6049_v41  ;;  %v4957_v41 = vpack.c.bf16 %v4216_v38, %v4215_v37 }
  0x8f   : > { %4794 = vmatprep.mubr.f32.mxu0 %v6170_v29 }
  0x90   : > { %4684 = vmatmul.mubr.msk.f32.gmra.mrb[58].mxu1 %vm2704_vm1, %v6066_v44  ;;  %4940 = vmatpush3.bf16.msra.mxu0 %v4937_v4  ;;  %v4217_v44 = vld [vmem:[%s7952_s13 + $0x170] sm:$0xff] }
  0x91   : > { %4908 = vmatpush3.bf16.msra.mxu1 %v4905_v3  ;;  %4942 = vmatprep.subr.bf16.mxu0 %v4941_v9  ;;  %v4961_v47 = vpack.c.bf16 %v4218_v45, %v4217_v44 }
  0x92   : > { %4910 = vmatprep.subr.bf16.mxu1 %v4909_v8  ;;  %4686 = vmatprep.mubr.msk.f32.mxu1 %vm2704_vm1, %v6071_v46  ;;  %v4929_v46 = vpack.c.bf16 %v4196_v43, %v4195_v42 }
  0x94   : > { %4687 = vmatmul.mubr.msk.f32.gmra.mrb[60].mxu1 %vm2704_vm1, %v6086_v49  ;;  %4944 = vmatpush3.bf16.msra.mxu0 %v4941_v9 }
  0x95   : > { %4912 = vmatpush3.bf16.msra.mxu1 %v4909_v8  ;;  %4946 = vmatprep.subr.bf16.mxu0 %v4945_v16 }
  0x96   : > { %4914 = vmatprep.subr.bf16.mxu1 %v4913_v15  ;;  %4689 = vmatprep.mubr.msk.f32.mxu1 %vm2704_vm1, %v6091_v51 }
  0x98   : > { %4690 = vmatmul.mubr.msk.f32.gmra.mrb[62].mxu1 %vm2704_vm1, %v6106_v54  ;;  %4948 = vmatpush3.bf16.msra.mxu0 %v4945_v16 }
  0x99   : > { %4916 = vmatpush3.bf16.msra.mxu1 %v4913_v15  ;;  %4950 = vmatprep.subr.bf16.mxu0 %v4949_v24 }
  0x9a   : > { %4918 = vmatprep.subr.bf16.mxu1 %v4917_v23  ;;  %4759 = vmatprep.mubr.f32.mxu1 %v6170_v29 }
  0x9c   : > { %4952 = vmatpush3.bf16.msra.mxu0 %v4949_v24 }
  0x9d   : > { %4920 = vmatpush3.bf16.msra.mxu1 %v4917_v23  ;;  %4954 = vmatprep.subr.bf16.mxu0 %v4953_v33 }
  0x9e   : > { %4922 = vmatprep.subr.bf16.mxu1 %v4921_v31 }
  0xa0   : > { %4956 = vmatpush3.bf16.msra.mxu0 %v4953_v33 }
  0xa1   : > { %4924 = vmatpush3.bf16.msra.mxu1 %v4921_v31  ;;  %4958 = vmatprep.subr.bf16.mxu0 %v4957_v41 }
  0xa2   : > { %4926 = vmatprep.subr.bf16.mxu1 %v4925_v40 }
  0xa4   : > { %4960 = vmatpush3.bf16.msra.mxu0 %v4957_v41 }
  0xa5   : > { %4928 = vmatpush3.bf16.msra.mxu1 %v4925_v40  ;;  %4962 = vmatprep.subr.bf16.mxu0 %v4961_v47  ;;  %v6306_v40 = vld [vmem:[%s7943_s4 + $0x1] ss:$0 sm:$0xff] }
  0xa6   : > { %4930 = vmatprep.subr.bf16.mxu1 %v4929_v46 }
  0xa8   : > { %4964 = vmatpush3.bf16.msra.mxu0 %v4961_v47 }
  0xa9   : > { %4932 = vmatpush3.bf16.msra.mxu1 %v4929_v46 }
  0xab   : > { %4795 = vmatmul.mubr.f32.vlgmr.msra.gmra.mrb[58].mxu0 %v6190_v2 }
  0xac   : > { %4760 = vmatmul.mubr.f32.vlgmr.msra.gmra.mrb[64].mxu1 %v6190_v2 }
  0xee   : > { %v4450_v49 = vpop.f32.mrb[0].mxu0 }
  0xef   : > { %v4486_v50 = vpop.f32.mrb[0].mxu1  ;;  %v861_v51 = vadd.f32 %v4450_v49, %v6288_v48  ;;  %v855_v53 = vpop.f32.mrb[1].mxu0 }
  0xf0   : > { %v981_v52 = vadd.f32 %v4486_v50, %v6288_v48  ;;  %v975_v54 = vpop.f32.mrb[1].mxu1  ;;  %v856_v55 = vadd.f32 %v6288_v48, %v855_v53 }
  0xf1   : > { %v976_v56 = vadd.f32 %v6288_v48, %v975_v54  ;;  %v3924_v57 = vmul.f32 -1.442695, %v861_v51 }
  0xf2   : > { %v3948_v58 = vmul.f32 -1.442695, %v981_v52  ;;  %v3923_v59 = vmul.f32 -1.442695, %v856_v55  ;;  %v4453_v13 = vpop.f32.mrb[2].mxu0 }
  0xf3   : > { %v3947_v60 = vmul.f32 -1.442695, %v976_v56  ;;  %v4489_v61 = vpop.f32.mrb[2].mxu1  ;;  %4978 = vpow2.f32 %v3924_v57  ;;  %v871_v19 = vadd.f32 %v4453_v13, %v6288_v48  ;;  %v865_v27 = vpop.f32.mrb[3].mxu0 }
  0xf4   : > { %v991_v21 = vadd.f32 %v4489_v61, %v6288_v48  ;;  %v985_v62 = vpop.f32.mrb[3].mxu1  ;;  %4980 = vpow2.f32 %v3948_v58  ;;  %v866_v29 = vadd.f32 %v6288_v48, %v865_v27  ;;  %v6320_v61 = vld [vmem:[%s7945_s6] ss:$0 sm:$0xff] }
  0xf5   : > { %v986_v63 = vadd.f32 %v6288_v48, %v985_v62  ;;  %4982 = vpow2.f32 %v3923_v59  ;;  %v3926_v0 = vmul.f32 -1.442695, %v871_v19 }
  0xf6   : > { %v3950_v32 = vmul.f32 -1.442695, %v991_v21  ;;  %4984 = vpow2.f32 %v3947_v60  ;;  %v3925_v1 = vmul.f32 -1.442695, %v866_v29  ;;  %v4456_v2 = vpop.f32.mrb[4].mxu0 }
  0xf7   : > { %v3949_v35 = vmul.f32 -1.442695, %v986_v63  ;;  %v4492_v3 = vpop.f32.mrb[4].mxu1  ;;  %4986 = vpow2.f32 %v3926_v0  ;;  %v881_v4 = vadd.f32 %v4456_v2, %v6288_v48  ;;  %v875_v39 = vpop.f32.mrb[5].mxu0 }
  0xf8   : > { %v1001_v5 = vadd.f32 %v4492_v3, %v6288_v48  ;;  %v995_v6 = vpop.f32.mrb[5].mxu1  ;;  %4988 = vpow2.f32 %v3950_v32  ;;  %v876_v7 = vadd.f32 %v6288_v48, %v875_v39 }
  0xf9   : > { %v996_v8 = vadd.f32 %v6288_v48, %v995_v6  ;;  %4990 = vpow2.f32 %v3925_v1  ;;  %v3928_v9 = vmul.f32 -1.442695, %v881_v4 }
  0xfa   : > { %v3952_v10 = vmul.f32 -1.442695, %v1001_v5  ;;  %4992 = vpow2.f32 %v3949_v35  ;;  %v3927_v11 = vmul.f32 -1.442695, %v876_v7  ;;  %v4459_v14 = vpop.f32.mrb[6].mxu0 }
  0xfb   : > { %v3951_v12 = vmul.f32 -1.442695, %v996_v8  ;;  %v4495_v15 = vpop.f32.mrb[6].mxu1  ;;  %4994 = vpow2.f32 %v3928_v9  ;;  %v891_v16 = vadd.f32 %v4459_v14, %v6288_v48  ;;  %v885_v17 = vpop.f32.mrb[7].mxu0 }
  0xfc   : > { %v1005_v18 = vpop.f32.mrb[7].mxu1  ;;  %4996 = vpow2.f32 %v3952_v10  ;;  %v1011_v43 = vadd.f32 %v4495_v15, %v6288_v48  ;;  %v886_v44 = vadd.f32 %v6288_v48, %v885_v17 }
  0xfd   : > { %v4979_v20 = vpop.eup %4978  ;;  %4998 = vpow2.f32 %v3927_v11  ;;  %v3930_v22 = vmul.f32 -1.442695, %v891_v16  ;;  %v1006_v49 = vadd.f32 %v6288_v48, %v1005_v18  ;;  %v6344_v11 = vld [vmem:[%s7944_s5] ss:$0 sm:$0xff] }
  0xfe   : > { %v4981_v23 = vpop.eup %4980  ;;  %v1111_v24 = vadd.f32 1.0, %v4979_v20  ;;  %5000 = vpow2.f32 %v3951_v12  ;;  %v4462_v25 = vpop.f32.mrb[8].mxu0  ;;  %v3954_v21 = vmul.f32 -1.442695, %v1011_v43  ;;  %v3929_v27 = vmul.f32 -1.442695, %v886_v44 }
  0xff   : > { %v4983_v26 = vpop.eup %4982  ;;  %v1135_v28 = vadd.f32 1.0, %v4981_v23  ;;  %5002 = vpow2.f32 %v3930_v22  ;;  %v4506_v30 = vpop.f32.mrb[8].mxu1  ;;  %v901_v54 = vadd.f32 %v4462_v25, %v6288_v48  ;;  %v6324_v0 = vmul.f32 -1.442695, %v1006_v49 }
 0x100   : > { %v895_v31 = vpop.f32.mrb[9].mxu0  ;;  %v4985_v33 = vpop.eup %4984  ;;  %5004 = vrcp.f32 %v1111_v24  ;;  %v1110_v34 = vadd.f32 1.0, %v4983_v26  ;;  %v1497_v55 = vadd.f32 %v4506_v30, %v6306_v40 }
 0x101   : > { %v1491_v36 = vpop.f32.mrb[9].mxu1  ;;  %v4987_v37 = vpop.eup %4986  ;;  %5006 = vrcp.f32 %v1135_v28  ;;  %v1134_v38 = vadd.f32 1.0, %v4985_v33  ;;  %v896_v59 = vadd.f32 %v6288_v48, %v895_v31  ;;  %v6331_v4 = vmul.f32 -1.442695, %v901_v54 }
 0x102   : > { %v4989_v41 = vpop.eup %4988  ;;  %5008 = vrcp.f32 %v1110_v34  ;;  %v1113_v42 = vadd.f32 1.0, %v4987_v37  ;;  %v4465_v45 = vpop.f32.mrb[10].mxu0  ;;  %v1492_v60 = vadd.f32 %v6306_v40, %v1491_v36  ;;  %v6333_v5 = vmul.f32 -1.442695, %v1497_v55 }
 0x103   : > { %v4991_v46 = vpop.eup %4990  ;;  %5010 = vrcp.f32 %v1134_v38  ;;  %v1137_v47 = vadd.f32 1.0, %v4989_v41  ;;  %v4509_v50 = vpop.f32.mrb[10].mxu1  ;;  %v911_v32 = vadd.f32 %v4465_v45, %v6288_v48  ;;  %v6337_v8 = vmul.f32 -1.442695, %v896_v59  ;;  %v6371_v41 = vld [vmem:[%s7946_s7 + $0x8] sm:$0xff]  ;;  %v6396_v59 = vld [vmem:[%s7946_s7] sm:$0xff] }
 0x104   : > { %v905_v51 = vpop.f32.mrb[11].mxu0  ;;  %v4993_v52 = vpop.eup %4992  ;;  %5012 = vrcp.f32 %v1113_v42  ;;  %v1112_v53 = vadd.f32 1.0, %v4991_v46  ;;  %v6339_v9 = vmul.f32 -1.442695, %v1492_v60  ;;  %v6347_v14 = vadd.f32 %v4509_v50, %v6306_v40  ;;  %v674_v50 = vld [vmem:[%s7946_s7 + $0xc8] sm:$0xff] }
 0x105   : > { %v6313_v56 = vpop.f32.mrb[11].mxu1  ;;  %v4995_v57 = vpop.eup %4994  ;;  %5014 = vrcp.f32 %v1137_v47  ;;  %v1136_v58 = vadd.f32 1.0, %v4993_v52  ;;  %v6350_v15 = vadd.f32 %v6288_v48, %v905_v51  ;;  %v6353_v22 = vmul.f32 -1.442695, %v911_v32 }
 0x106   : > { %v4997_v13 = vpop.eup %4996  ;;  %5016 = vrcp.f32 %v1112_v53  ;;  %v1115_v19 = vadd.f32 1.0, %v4995_v57  ;;  %v6322_v62 = vpop.f32.mrb[12].mxu0 }
 0x107   : > { %v4999_v29 = vpop.eup %4998  ;;  %5018 = vrcp.f32 %v1136_v58  ;;  %v1139_v63 = vadd.f32 1.0, %v4997_v13  ;;  %v6327_v1 = vpop.f32.mrb[12].mxu1 }
 0x108   : > { %v6329_v35 = vpop.f32.mrb[13].mxu0  ;;  %v5001_v2 = vpop.eup %5000  ;;  %5020 = vrcp.f32 %v1115_v19  ;;  %v1114_v3 = vadd.f32 1.0, %v4999_v29 }
 0x109   : > { %v6335_v39 = vpop.f32.mrb[13].mxu1  ;;  %v5003_v6 = vpop.eup %5002  ;;  %5022 = vrcp.f32 %v1139_v63  ;;  %v1138_v7 = vadd.f32 1.0, %v5001_v2  ;;  %v673_v63 = vld [vmem:[%s7946_s7 + $0xc0] sm:$0xff] }
 0x10a   : > { %v5005_v10 = vpop.eup %5004  ;;  %5024 = vrcp.f32 %v1114_v3  ;;  %v1117_v12 = vadd.f32 1.0, %v5003_v6  ;;  %v4471_v16 = vpop.f32.mrb[14].mxu0 }
 0x10b   : > { %v5007_v17 = vpop.eup %5006  ;;  %v1208_v18 = vmul.f32 %v5005_v10, %v5005_v10  ;;  %v1284_v20 = vmul.f32 %v5005_v10, %v6320_v61  ;;  %5026 = vrcp.f32 %v1138_v7  ;;  %v6355_v23 = vpop.f32.mrb[14].mxu1  ;;  %v6362_v30 = vadd.f32 %v4471_v16, %v6288_v48  ;;  %v6408_v10 = vld [vmem:[%s7946_s7 + $0x18] sm:$0xff] }
 0x10c   : > { %v6357_v24 = vpop.f32.mrb[15].mxu0  ;;  %v5009_v25 = vpop.eup %5008  ;;  %v1232_v26 = vmul.f32 %v5007_v17, %v5007_v17  ;;  %v1308_v28 = vmul.f32 %v5007_v17, %v6320_v61  ;;  %5028 = vrcp.f32 %v1117_v12 }
 0x10d   : > { %v6364_v31 = vpop.f32.mrb[15].mxu1  ;;  %v5011_v33 = vpop.eup %5010  ;;  %v1246_v34 = vmul.f32 %v6344_v11, %v1208_v18  ;;  %v1207_v36 = vmul.f32 %v5009_v25, %v5009_v25  ;;  %v1283_v37 = vmul.f32 %v5009_v25, %v6320_v61  ;;  %5030 = vpow2.f32 %v3954_v21 }
 0x10e   : > { %v5013_v38 = vpop.eup %5012  ;;  %v1270_v42 = vmul.f32 %v6344_v11, %v1232_v26  ;;  %v1231_v43 = vmul.f32 %v5011_v33, %v5011_v33  ;;  %v1307_v44 = vmul.f32 %v5011_v33, %v6320_v61  ;;  %5032 = vpow2.f32 %v3929_v27  ;;  %v6375_v45 = vpop.f32.mrb[16].mxu0 }
 0x10f   : > { %v6377_v46 = vpop.f32.mrb[16].mxu1  ;;  %v5015_v47 = vpop.eup %5014  ;;  %v1316_v49 = vadd.f32 %v1284_v20, %v1246_v34  ;;  %v1245_v51 = vmul.f32 %v6344_v11, %v1207_v36  ;;  %v1210_v52 = vmul.f32 %v5013_v38, %v5013_v38  ;;  %v1286_v53 = vmul.f32 %v5013_v38, %v6320_v61 }
 0x110   : > { %v6384_v54 = vpop.f32.mrb[17].mxu0  ;;  %v6386_v55 = vpop.f32.mrb[17].mxu1  ;;  %v1340_v58 = vadd.f32 %v1308_v28, %v1270_v42  ;;  %v1269_v60 = vmul.f32 %v6344_v11, %v1231_v43  ;;  %v1234_v13 = vmul.f32 %v5015_v47, %v5015_v47  ;;  %v1310_v19 = vmul.f32 %v5015_v47, %v6320_v61  ;;  %v676_v28 = vld [vmem:[%s7946_s7 + $0xd8] sm:$0xff] }
 0x111   : > { %v5017_v57 = vpop.eup %5016  ;;  %v1348_v27 = vadd.f32 %v1316_v49, %v6371_v41  ;;  %v1315_v29 = vadd.f32 %v1283_v37, %v1245_v51  ;;  %v1248_v32 = vmul.f32 %v6344_v11, %v1210_v52  ;;  %5034 = vpow2.f32 %v6324_v0 }
 0x112   : > { %v5019_v21 = vpop.eup %5018  ;;  %v1209_v2 = vmul.f32 %v5017_v57, %v5017_v57  ;;  %v1372_v6 = vadd.f32 %v1340_v58, %v674_v50  ;;  %v1339_v7 = vadd.f32 %v1307_v44, %v1269_v60  ;;  %v1272_v12 = vmul.f32 %v6344_v11, %v1234_v13  ;;  %v6412_v17 = vpop.f32.mrb[18].mxu0  ;;  %v6432_v44 = vld [vmem:[%s7946_s7 + $0x10] sm:$0xff] }
 0x113   : > { %v5021_v3 = vpop.eup %5020  ;;  %v1285_v16 = vmul.f32 %v5017_v57, %v6320_v61  ;;  %v6414_v18 = vpop.f32.mrb[18].mxu1  ;;  %1381 = vst.msk [vmem:[%s6391_s20 + $0x8] sm:$0xff] %vm1379_vm2, %v1348_v27  ;;  %v1347_v25 = vadd.f32 %v1315_v29, %v6396_v59  ;;  %v1318_v26 = vadd.f32 %v1286_v53, %v1248_v32  ;;  %v1233_v34 = vmul.f32 %v5019_v21, %v5019_v21  ;;  %v675_v13 = vld [vmem:[%s7946_s7 + $0xd0] sm:$0xff] }
 0x114   : > { %v5023_v20 = vpop.eup %5022  ;;  %v1247_v33 = vmul.f32 %v6344_v11, %v1209_v2  ;;  %v6423_v36 = vpop.f32.mrb[19].mxu0  ;;  %1405 = vst.msk [vmem:[%s6391_s20 + $0xc8] sm:$0xff] %vm1379_vm2, %v1372_v6  ;;  %v1371_v42 = vadd.f32 %v1339_v7, %v673_v63  ;;  %v1342_v43 = vadd.f32 %v1310_v19, %v1272_v12  ;;  %v1309_v47 = vmul.f32 %v5019_v21, %v6320_v61  ;;  %v6457_v6 = vld [vmem:[%s7946_s7 + $0x28] sm:$0xff] }
 0x115   : > { %v6425_v37 = vpop.f32.mrb[19].mxu1  ;;  %v5025_v38 = vpop.eup %5024  ;;  %v1212_v49 = vmul.f32 %v5021_v3, %v5021_v3  ;;  %1380 = vst.msk [vmem:[%s6391_s20] sm:$0xff] %vm1379_vm2, %v1347_v25  ;;  %v1350_v51 = vadd.f32 %v1318_v26, %v6408_v10  ;;  %v1271_v53 = vmul.f32 %v6344_v11, %v1233_v34  ;;  %v1288_v57 = vmul.f32 %v5021_v3, %v6320_v61 }
 0x116   : > { %v5027_v50 = vpop.eup %5026  ;;  %v1317_v52 = vadd.f32 %v1285_v16, %v1247_v33  ;;  %1404 = vst.msk [vmem:[%s6391_s20 + $0xc0] sm:$0xff] %vm1379_vm2, %v1371_v42  ;;  %v1374_v60 = vadd.f32 %v1342_v43, %v676_v28  ;;  %v1236_v21 = vmul.f32 %v5023_v20, %v5023_v20  ;;  %v1312_v27 = vmul.f32 %v5023_v20, %v6320_v61  ;;  %v6447_v29 = vpop.f32.mrb[20].mxu0 }
 0x117   : > { %v5029_v58 = vpop.eup %5028  ;;  %v1250_v19 = vmul.f32 %v6344_v11, %v1212_v49  ;;  %v6449_v63 = vpop.f32.mrb[20].mxu1  ;;  %1383 = vst.msk [vmem:[%s6391_s20 + $0x18] sm:$0xff] %vm1379_vm2, %v1350_v51  ;;  %v1341_v3 = vadd.f32 %v1309_v47, %v1271_v53  ;;  %v1211_v7 = vmul.f32 %v5025_v38, %v5025_v38  ;;  %v1287_v12 = vmul.f32 %v5025_v38, %v6320_v61  ;;  %v678_v38 = vld [vmem:[%s7946_s7 + $0xe8] sm:$0xff] }
 0x118   : > { %v5031_v32 = vpop.eup %5030  ;;  %v1349_v2 = vadd.f32 %v1317_v52, %v6432_v44  ;;  %v6460_v16 = vpop.f32.mrb[21].mxu0  ;;  %1407 = vst.msk [vmem:[%s6391_s20 + $0xd8] sm:$0xff] %vm1379_vm2, %v1374_v60  ;;  %v1274_v28 = vmul.f32 %v6344_v11, %v1236_v21  ;;  %v1235_v33 = vmul.f32 %v5027_v50, %v5027_v50  ;;  %v1311_v34 = vmul.f32 %v5027_v50, %v6320_v61  ;;  %v6479_v50 = vld [vmem:[%s7946_s7 + $0x20] sm:$0xff] }
 0x119   : > { %v6462_v20 = vpop.f32.mrb[21].mxu1  ;;  %v5033_v25 = vpop.eup %5032  ;;  %v1320_v26 = vadd.f32 %v1288_v57, %v1250_v19  ;;  %v1373_v42 = vadd.f32 %v1341_v3, %v675_v13  ;;  %v1249_v43 = vmul.f32 %v6344_v11, %v1211_v7  ;;  %v1214_v47 = vmul.f32 %v5029_v58, %v5029_v58 }
 0x11a   : > { %1382 = vst.msk [vmem:[%s6391_s20 + $0x10] sm:$0xff] %vm1379_vm2, %v1349_v2  ;;  %v1290_v49 = vmul.f32 %v5029_v58, %v6320_v61  ;;  %v1344_v52 = vadd.f32 %v1312_v27, %v1274_v28  ;;  %v1273_v53 = vmul.f32 %v6344_v11, %v1235_v33  ;;  %v1141_v57 = vadd.f32 1.0, %v5031_v32  ;;  %v6482_v60 = vpop.f32.mrb[22].mxu0  ;;  %v677_v58 = vld [vmem:[%s7946_s7 + $0xe0] sm:$0xff] }
 0x11b   : > { %v1352_v51 = vadd.f32 %v1320_v26, %v6457_v6  ;;  %v6484_v13 = vpop.f32.mrb[22].mxu1  ;;  %1406 = vst.msk [vmem:[%s6391_s20 + $0xd0] sm:$0xff] %vm1379_vm2, %v1373_v42  ;;  %v1319_v19 = vadd.f32 %v1287_v12, %v1249_v43  ;;  %v1252_v21 = vmul.f32 %v6344_v11, %v1214_v47  ;;  %v1116_v27 = vadd.f32 1.0, %v5033_v25  ;;  %v6493_v2 = vpop.f32.mrb[23].mxu0  ;;  %v6502_v12 = vld [vmem:[%s7946_s7 + $0x38] sm:$0xff] }
 0x11c   : > { %v6495_v32 = vpop.f32.mrb[23].mxu1  ;;  %v1376_v3 = vadd.f32 %v1344_v52, %v678_v38  ;;  %v1343_v7 = vadd.f32 %v1311_v34, %v1273_v53  ;;  %5036 = vrcp.f32 %v1141_v57  ;;  %v1502_v25 = vadd.f32 %v6306_v40, %v6313_v56 }
 0x11d   : > { %1385 = vst.msk [vmem:[%s6391_s20 + $0x28] sm:$0xff] %vm1379_vm2, %v1352_v51  ;;  %v1351_v0 = vadd.f32 %v1319_v19, %v6479_v50  ;;  %v1322_v26 = vadd.f32 %v1290_v49, %v1252_v21  ;;  %5038 = vrcp.f32 %v1116_v27  ;;  %v3998_v28 = vmul.f32 -1.442695, %v6347_v14 }
 0x11e   : > { %1409 = vst.msk [vmem:[%s6391_s20 + $0xe8] sm:$0xff] %vm1379_vm2, %v1376_v3  ;;  %v1375_v33 = vadd.f32 %v1343_v7, %v677_v58  ;;  %5040 = vpow2.f32 %v6331_v4  ;;  %v921_v34 = vadd.f32 %v6322_v62, %v6288_v48  ;;  %v6515_v42 = vadd.f32 %v6288_v48, %v6357_v24  ;;  %v6519_v38 = vpop.f32.mrb[24].mxu0 }
 0x11f   : > { %v6517_v56 = vpop.f32.mrb[24].mxu1  ;;  %1384 = vst.msk [vmem:[%s6391_s20 + $0x20] sm:$0xff] %vm1379_vm2, %v1351_v0  ;;  %v1354_v14 = vadd.f32 %v1322_v26, %v6502_v12  ;;  %5042 = vpow2.f32 %v6333_v5  ;;  %v1517_v4 = vadd.f32 %v6327_v1, %v6306_v40  ;;  %v6529_v62 = vadd.f32 %v6375_v45, %v6288_v48  ;;  %v6533_v24 = vpop.f32.mrb[25].mxu0 }
 0x120   : > { %v6531_v43 = vpop.f32.mrb[25].mxu1  ;;  %1408 = vst.msk [vmem:[%s6391_s20 + $0xe0] sm:$0xff] %vm1379_vm2, %v1375_v33  ;;  %5044 = vpow2.f32 %v6337_v8  ;;  %v3933_v47 = vmul.f32 -1.442695, %v6350_v15  ;;  %v3997_v5 = vmul.f32 -1.442695, %v1502_v25  ;;  %v916_v1 = vadd.f32 %v6288_v48, %v6329_v35 }
 0x121   : > { %1387 = vst.msk [vmem:[%s6391_s20 + $0x38] sm:$0xff] %vm1379_vm2, %v1354_v14  ;;  %5046 = vpow2.f32 %v6339_v9  ;;  %v6546_v45 = vadd.f32 %v6288_v48, %v6384_v54  ;;  %v3936_v49 = vmul.f32 -1.442695, %v921_v34  ;;  %v1512_v8 = vadd.f32 %v6306_v40, %v6335_v39  ;;  %v5035_v39 = vpop.eup %5034 }
 0x122   : > { %5048 = vpow2.f32 %v6353_v22  ;;  %v6553_v15 = vadd.f32 %v6412_v17, %v6288_v48  ;;  %v6557_v9 = vpop.f32.mrb[26].mxu0  ;;  %v4000_v35 = vmul.f32 -1.442695, %v1517_v4  ;;  %v6561_v54 = vadd.f32 %v6288_v48, %v6423_v36  ;;  %v680_v4 = vld [vmem:[%s7946_s7 + $0xf8] sm:$0xff] }
 0x123   : > { %v6555_v51 = vpop.f32.mrb[26].mxu1  ;;  %5050 = vpow2.f32 %v3998_v28  ;;  %v6565_v22 = vpop.f32.mrb[27].mxu0  ;;  %v3935_v53 = vmul.f32 -1.442695, %v916_v1  ;;  %v6569_v17 = vadd.f32 %v6447_v29, %v6288_v48  ;;  %v1140_v19 = vadd.f32 1.0, %v5035_v39 }
 0x124   : > { %v6563_v52 = vpop.f32.mrb[27].mxu1  ;;  %5052 = vpow2.f32 %v3933_v47  ;;  %v3999_v58 = vmul.f32 -1.442695, %v1512_v8  ;;  %v6573_v36 = vadd.f32 %v6288_v48, %v6460_v16 }
 0x125   : > { %5054 = vpow2.f32 %v3997_v5 }
 0x126   : > { %v5037_v57 = vpop.eup %5036  ;;  %5056 = vpow2.f32 %v3936_v49  ;;  %v6577_v27 = vpop.f32.mrb[28].mxu0 }
 0x127   : > { %v6575_v21 = vpop.f32.mrb[28].mxu1  ;;  %7964 = vst [vmem:[#allocation2_spill] sm:$0xff] %v6577_v27  ;;  %v5039_v3 = vpop.eup %5038  ;;  %v1238_v7 = vmul.f32 %v5037_v57, %v5037_v57  ;;  %5058 = vpow2.f32 %v4000_v35  ;;  %v1314_v16 = vmul.f32 %v5037_v57, %v6320_v61 }
 0x128   : > { %v6579_v25 = vpop.f32.mrb[29].mxu1  ;;  %v6581_v0 = vpop.f32.mrb[29].mxu0  ;;  %v1213_v26 = vmul.f32 %v5039_v3, %v5039_v3  ;;  %5060 = vrcp.f32 %v1140_v19  ;;  %v1289_v5 = vmul.f32 %v5039_v3, %v6320_v61  ;;  %v6601_v19 = vadd.f32 %v6482_v60, %v6288_v48 }
 0x129   : > { %7965 = vst [vmem:[#allocation3_spill] sm:$0xff] %v6579_v25  ;;  %7966 = vst [vmem:[#allocation4_spill] sm:$0xff] %v6581_v0  ;;  %v5041_v29 = vpop.eup %5040  ;;  %v1276_v33 = vmul.f32 %v6344_v11, %v1238_v7  ;;  %5062 = vpow2.f32 %v3935_v53  ;;  %v6597_v53 = vld [vmem:[%s7946_s7 + $0x30] sm:$0xff]  ;;  %v6699_v25 = vld [vmem:[%s7946_s7 + $0x58] sm:$0xff] }
 0x12a   : > { %v5043_v28 = vpop.eup %5042  ;;  %v1119_v34 = vadd.f32 1.0, %v5041_v29  ;;  %v1251_v47 = vmul.f32 %v6344_v11, %v1213_v26  ;;  %5064 = vpow2.f32 %v3999_v58  ;;  %v6592_v8 = vpop.f32.mrb[30].mxu0 }
 0x12b   : > { %v5045_v14 = vpop.eup %5044  ;;  %v1747_v1 = vadd.f32 1.0, %v5043_v28  ;;  %v6590_v49 = vpop.f32.mrb[30].mxu1  ;;  %7968 = vst [vmem:[#allocation6_spill] sm:$0xff] %v6592_v8  ;;  %v1346_v39 = vadd.f32 %v1314_v16, %v1276_v33 }
 0x12c   : > { %7967 = vst [vmem:[#allocation5_spill] sm:$0xff] %v6590_v49  ;;  %v5047_v35 = vpop.eup %5046  ;;  %5066 = vrcp.f32 %v1119_v34  ;;  %v1118_v57 = vadd.f32 1.0, %v5045_v14  ;;  %v6603_v3 = vpop.f32.mrb[31].mxu1  ;;  %v1321_v29 = vadd.f32 %v1289_v5, %v1251_v47  ;;  %v1527_v14 = vadd.f32 %v6355_v23, %v6306_v40 }
 0x12d   : > { %7969 = vst [vmem:[#allocation7_spill] sm:$0xff] %v6603_v3  ;;  %v6605_v58 = vpop.f32.mrb[31].mxu0  ;;  %v5049_v7 = vpop.eup %5048  ;;  %5068 = vrcp.f32 %v1747_v1  ;;  %v1746_v26 = vadd.f32 1.0, %v5047_v35  ;;  %v1378_v33 = vadd.f32 %v1346_v39, %v680_v4  ;;  %v1522_v5 = vadd.f32 %v6306_v40, %v6364_v31 }
 0x12e   : > { %7970 = vst [vmem:[#allocation8_spill] sm:$0xff] %v6605_v58  ;;  %v5051_v28 = vpop.eup %5050  ;;  %5070 = vrcp.f32 %v1118_v57  ;;  %v1121_v16 = vadd.f32 1.0, %v5049_v7  ;;  %v1353_v34 = vadd.f32 %v1321_v29, %v6597_v53  ;;  %v6612_v58 = vpop.f32.mrb[32].mxu0  ;;  %v6620_v1 = vadd.f32 %v6288_v48, %v6493_v2 }
 0x12f   : > { %v5053_v8 = vpop.eup %5052  ;;  %5072 = vrcp.f32 %v1746_v26  ;;  %v1749_v60 = vadd.f32 1.0, %v5051_v28  ;;  %v6610_v3 = vpop.f32.mrb[32].mxu1  ;;  %7972 = vst [vmem:[#allocation10_spill] sm:$0xff] %v6612_v58  ;;  %1411 = vst.msk [vmem:[%s6391_s20 + $0xf8] sm:$0xff] %vm1379_vm2, %v1378_v33  ;;  %v4002_v28 = vmul.f32 -1.442695, %v1527_v14 }
 0x130   : > { %7971 = vst [vmem:[#allocation9_spill] sm:$0xff] %v6610_v3  ;;  %v5055_v47 = vpop.eup %5054  ;;  %5074 = vrcp.f32 %v1121_v16  ;;  %v1120_v4 = vadd.f32 1.0, %v5053_v8  ;;  %v6622_v35 = vpop.f32.mrb[33].mxu1  ;;  %1386 = vst.msk [vmem:[%s6391_s20 + $0x30] sm:$0xff] %vm1379_vm2, %v1353_v34  ;;  %v3938_v8 = vmul.f32 -1.442695, %v6362_v30 }
 0x131   : > { %7973 = vst [vmem:[#allocation11_spill] sm:$0xff] %v6622_v35  ;;  %v6624_v39 = vpop.f32.mrb[33].mxu0  ;;  %v5057_v23 = vpop.eup %5056  ;;  %5076 = vrcp.f32 %v1749_v60  ;;  %v1748_v57 = vadd.f32 1.0, %v5055_v47  ;;  %v6634_v34 = vmul.f32 -1.442695, %v6515_v42 }
 0x132   : > { %7974 = vst [vmem:[#allocation12_spill] sm:$0xff] %v6624_v39  ;;  %v5059_v7 = vpop.eup %5058  ;;  %5078 = vrcp.f32 %v1120_v4  ;;  %v1123_v29 = vadd.f32 1.0, %v5057_v23  ;;  %v6631_v2 = vpop.f32.mrb[34].mxu0  ;;  %v6636_v60 = vmul.f32 -1.442695, %v1522_v5 }
 0x133   : > { %v5061_v26 = vpop.eup %5060  ;;  %5080 = vrcp.f32 %v1748_v57  ;;  %v1751_v31 = vadd.f32 1.0, %v5059_v7  ;;  %v6629_v48 = vpop.f32.mrb[34].mxu1  ;;  %7976 = vst [vmem:[#allocation14_spill] sm:$0xff] %v6631_v2  ;;  %v6643_v14 = vmul.f32 -1.442695, %v6529_v62  ;;  %v6647_v57 = vadd.f32 %v6377_v46, %v6306_v40 }
 0x134   : > { %7975 = vst [vmem:[#allocation13_spill] sm:$0xff] %v6629_v48  ;;  %v5063_v33 = vpop.eup %5062  ;;  %v1237_v16 = vmul.f32 %v5061_v26, %v5061_v26  ;;  %5082 = vrcp.f32 %v1123_v29  ;;  %v6638_v47 = vpop.f32.mrb[35].mxu1  ;;  %v1313_v5 = vmul.f32 %v5061_v26, %v6320_v61  ;;  %v6658_v46 = vld [vmem:[%s7944_s5 + $0x1] ss:$0 sm:$0xff] }
 0x135   : > { %7977 = vst [vmem:[#allocation15_spill] sm:$0xff] %v6638_v47  ;;  %v6640_v4 = vpop.f32.mrb[35].mxu0  ;;  %v5065_v30 = vpop.eup %5064  ;;  %5084 = vrcp.f32 %v1751_v31  ;;  %v1122_v23 = vadd.f32 1.0, %v5063_v33  ;;  %v679_v31 = vld [vmem:[%s7946_s7 + $0xf0] sm:$0xff] }
 0x136   : > { %7978 = vst [vmem:[#allocation16_spill] sm:$0xff] %v6640_v4  ;;  %v5067_v7 = vpop.eup %5066  ;;  %v1275_v42 = vmul.f32 %v6344_v11, %v1237_v16  ;;  %v1750_v29 = vadd.f32 1.0, %v5065_v30  ;;  %5086 = vpow2.f32 %v3938_v8  ;;  %v6662_v16 = vadd.f32 %v6306_v40, %v6386_v55  ;;  %v6666_v8 = vpop.f32.mrb[36].mxu0 }
 0x137   : > { %v5069_v47 = vpop.eup %5068  ;;  %v1216_v33 = vmul.f32 %v5067_v7, %v5067_v7  ;;  %v1292_v62 = vmul.f32 %v5067_v7, %v6320_v61  ;;  %5088 = vrcp.f32 %v1122_v23  ;;  %v6664_v26 = vpop.f32.mrb[36].mxu1  ;;  %7980 = vst [vmem:[#allocation18_spill] sm:$0xff] %v6666_v8 }
 0x138   : > { %7979 = vst [vmem:[#allocation17_spill] sm:$0xff] %v6664_v26  ;;  %v5071_v30 = vpop.eup %5070  ;;  %v1345_v4 = vadd.f32 %v1313_v5, %v1275_v42  ;;  %v1845_v2 = vmul.f32 %v5069_v47, %v5069_v47  ;;  %v1915_v48 = vmul.f32 %v5069_v47, %v6320_v61  ;;  %5090 = vrcp.f32 %v1750_v29  ;;  %v6669_v7 = vpop.f32.mrb[37].mxu1  ;;  %v6678_v42 = vld [vmem:[%s7946_s7 + $0x48] sm:$0xff] }
 0x139   : > { %7981 = vst [vmem:[#allocation19_spill] sm:$0xff] %v6669_v7  ;;  %v6671_v39 = vpop.f32.mrb[37].mxu0  ;;  %v5073_v35 = vpop.eup %5072  ;;  %v1254_v23 = vmul.f32 %v6344_v11, %v1216_v33  ;;  %v1215_v55 = vmul.f32 %v5071_v30, %v5071_v30  ;;  %v1291_v58 = vmul.f32 %v5071_v30, %v6320_v61  ;;  %5092 = vpow2.f32 %v4002_v28 }
 0x13a   : > { %7982 = vst [vmem:[#allocation20_spill] sm:$0xff] %v6671_v39  ;;  %v5075_v26 = vpop.eup %5074  ;;  %v1377_v8 = vadd.f32 %v1345_v4, %v679_v31  ;;  %v1883_v47 = vmul.f32 %v6658_v46, %v1845_v2  ;;  %v1844_v5 = vmul.f32 %v5073_v35, %v5073_v35  ;;  %v1914_v29 = vmul.f32 %v5073_v35, %v6320_v61  ;;  %v6689_v31 = vld [vmem:[%s7946_s7 + $0x40] sm:$0xff] }
 0x13b   : > { %v5077_v39 = vpop.eup %5076  ;;  %v1324_v7 = vadd.f32 %v1292_v62, %v1254_v23  ;;  %v1253_v33 = vmul.f32 %v6344_v11, %v1215_v55  ;;  %v1218_v3 = vmul.f32 %v5075_v26, %v5075_v26  ;;  %v1294_v30 = vmul.f32 %v5075_v26, %v6320_v61  ;;  %v6726_v27 = vpop.f32.mrb[38].mxu1 }
 0x13c   : > { %v5079_v28 = vpop.eup %5078  ;;  %1410 = vst.msk [vmem:[%s6391_s20 + $0xf0] sm:$0xff] %vm1379_vm2, %v1377_v8  ;;  %v1947_v4 = vadd.f32 %v1915_v48, %v1883_v47  ;;  %v1882_v2 = vmul.f32 %v6658_v46, %v1844_v5  ;;  %v1847_v35 = vmul.f32 %v5077_v39, %v5077_v39  ;;  %v1917_v62 = vmul.f32 %v5077_v39, %v6320_v61 }
 0x13d   : > { %v5081_v23 = vpop.eup %5080  ;;  %v1356_v55 = vadd.f32 %v1324_v7, %v6678_v42  ;;  %v1323_v49 = vadd.f32 %v1291_v58, %v1253_v33  ;;  %v1256_v26 = vmul.f32 %v6344_v11, %v1218_v3  ;;  %v1217_v8 = vmul.f32 %v5079_v28, %v5079_v28 }
 0x13e   : > { %v5083_v48 = vpop.eup %5082  ;;  %v1979_v47 = vadd.f32 %v1947_v4, %v6371_v41  ;;  %v1946_v0 = vadd.f32 %v1914_v29, %v1882_v2  ;;  %v1885_v5 = vmul.f32 %v6658_v46, %v1847_v35  ;;  %v1293_v39 = vmul.f32 %v5079_v28, %v6320_v61  ;;  %v6713_v28 = vld [vmem:[%s7946_s7 + $0x50] sm:$0xff] }
 0x13f   : > { %v5085_v7 = vpop.eup %5084  ;;  %1389 = vst.msk [vmem:[%s6391_s20 + $0x48] sm:$0xff] %vm1379_vm2, %v1356_v55  ;;  %v1355_v3 = vadd.f32 %v1323_v49, %v6689_v31  ;;  %v1326_v58 = vadd.f32 %v1294_v30, %v1256_v26  ;;  %v1255_v33 = vmul.f32 %v6344_v11, %v1217_v8  ;;  %v1846_v41 = vmul.f32 %v5081_v23, %v5081_v23 }
 0x140   : > { %v5087_v29 = vpop.eup %5086  ;;  %2011 = vst.msk [vmem:[%s6391_s20 + $0x108] sm:$0xff] %vm1379_vm2, %v1979_v47  ;;  %v1978_v4 = vadd.f32 %v1946_v0, %v6396_v59  ;;  %v1949_v2 = vadd.f32 %v1917_v62, %v1885_v5  ;;  %v1916_v35 = vmul.f32 %v5081_v23, %v6320_v61  ;;  %v1220_v55 = vmul.f32 %v5083_v48, %v5083_v48 }
 0x141   : > { %v5089_v49 = vpop.eup %5088  ;;  %1388 = vst.msk [vmem:[%s6391_s20 + $0x40] sm:$0xff] %vm1379_vm2, %v1355_v3  ;;  %v1358_v30 = vadd.f32 %v1326_v58, %v6699_v25  ;;  %v1325_v26 = vadd.f32 %v1293_v39, %v1255_v33  ;;  %v1884_v8 = vmul.f32 %v6658_v46, %v1846_v41  ;;  %v1296_v59 = vmul.f32 %v5083_v48, %v6320_v61  ;;  %v6728_v3 = vpop.f32.mrb[38].mxu0 }
 0x142   : > { %v5091_v0 = vpop.eup %5090  ;;  %2010 = vst.msk [vmem:[%s6391_s20 + $0x100] sm:$0xff] %vm1379_vm2, %v1978_v4  ;;  %v1981_v62 = vadd.f32 %v1949_v2, %v6408_v10  ;;  %v1258_v23 = vmul.f32 %v6344_v11, %v1220_v55  ;;  %v1849_v47 = vmul.f32 %v5085_v7, %v5085_v7  ;;  %v1919_v5 = vmul.f32 %v5085_v7, %v6320_v61  ;;  %v6736_v10 = vld [vmem:[%s7946_s7 + $0x68] sm:$0xff] }
 0x143   : > { %v5093_v39 = vpop.eup %5092  ;;  %1391 = vst.msk [vmem:[%s6391_s20 + $0x58] sm:$0xff] %vm1379_vm2, %v1358_v30  ;;  %v1357_v48 = vadd.f32 %v1325_v26, %v6713_v28  ;;  %v1948_v58 = vadd.f32 %v1916_v35, %v1884_v8  ;;  %v1219_v33 = vmul.f32 %v5089_v49, %v5089_v49  ;;  %v1295_v41 = vmul.f32 %v5089_v49, %v6320_v61  ;;  %v6743_v30 = vpop.f32.mrb[39].mxu1 }
 0x144   : > { %2013 = vst.msk [vmem:[%s6391_s20 + $0x118] sm:$0xff] %vm1379_vm2, %v1981_v62  ;;  %v1328_v7 = vadd.f32 %v1296_v59, %v1258_v23  ;;  %v1887_v4 = vmul.f32 %v6658_v46, %v1849_v47  ;;  %v1848_v2 = vmul.f32 %v5091_v0, %v5091_v0  ;;  %v1918_v55 = vmul.f32 %v5091_v0, %v6320_v61  ;;  %v6745_v35 = vpop.f32.mrb[39].mxu0  ;;  %v6755_v0 = vld [vmem:[%s7946_s7 + $0x60] sm:$0xff] }
 0x145   : > { %1390 = vst.msk [vmem:[%s6391_s20 + $0x50] sm:$0xff] %vm1379_vm2, %v1357_v48  ;;  %v1980_v26 = vadd.f32 %v1948_v58, %v6432_v44  ;;  %v1257_v49 = vmul.f32 %v6344_v11, %v1219_v33  ;;  %v1125_v8 = vadd.f32 1.0, %v5087_v29  ;;  %v1753_v62 = vadd.f32 1.0, %v5093_v39  ;;  %v6770_v33 = vpop.f32.mrb[40].mxu1 }
 0x146   : > { %v1360_v59 = vadd.f32 %v1328_v7, %v6736_v10  ;;  %v1951_v23 = vadd.f32 %v1919_v5, %v1887_v4  ;;  %v1886_v47 = vmul.f32 %v6658_v46, %v1848_v2  ;;  %5094 = vpow2.f32 %v6634_v34  ;;  %v6768_v34 = vpop.f32.mrb[40].mxu0  ;;  %v6779_v7 = vpop.f32.mrb[41].mxu1 }
 0x147   : > { %2012 = vst.msk [vmem:[%s6391_s20 + $0x110] sm:$0xff] %vm1379_vm2, %v1980_v26  ;;  %v1327_v48 = vadd.f32 %v1295_v41, %v1257_v49  ;;  %5096 = vrcp.f32 %v1125_v8  ;;  %v4004_v44 = vmul.f32 -1.442695, %v6647_v57  ;;  %v1547_v29 = vadd.f32 %v6414_v18, %v6306_v40 }
 0x148   : > { %1393 = vst.msk [vmem:[%s6391_s20 + $0x68] sm:$0xff] %vm1379_vm2, %v1360_v59  ;;  %v1983_v5 = vadd.f32 %v1951_v23, %v6457_v6  ;;  %v1950_v39 = vadd.f32 %v1918_v55, %v1886_v47  ;;  %5098 = vrcp.f32 %v1753_v62  ;;  %v3939_v58 = vmul.f32 -1.442695, %v6546_v45  ;;  %v6777_v6 = vpop.f32.mrb[41].mxu0 }
 0x149   : > { %v1359_v41 = vadd.f32 %v1327_v48, %v6755_v0  ;;  %5100 = vpow2.f32 %v6636_v60  ;;  %v4003_v18 = vmul.f32 -1.442695, %v6662_v16  ;;  %v1542_v57 = vadd.f32 %v6306_v40, %v6425_v37 }
 0x14a   : > { %2015 = vst.msk [vmem:[%s6391_s20 + $0x128] sm:$0xff] %vm1379_vm2, %v1983_v5  ;;  %v1982_v45 = vadd.f32 %v1950_v39, %v6479_v50  ;;  %5102 = vpow2.f32 %v6643_v14  ;;  %v3942_v4 = vmul.f32 -1.442695, %v6553_v15  ;;  %v4006_v60 = vmul.f32 -1.442695, %v1547_v29  ;;  %v6794_v14 = vpop.f32.mrb[42].mxu0 }
 0x14b   : > { %1392 = vst.msk [vmem:[%s6391_s20 + $0x60] sm:$0xff] %vm1379_vm2, %v1359_v41  ;;  %5104 = vpow2.f32 %v4004_v44  ;;  %v3941_v37 = vmul.f32 -1.442695, %v6561_v54  ;;  %v1557_v16 = vadd.f32 %v6449_v63, %v6306_v40  ;;  %v4005_v2 = vmul.f32 -1.442695, %v1542_v57  ;;  %v6796_v15 = vpop.f32.mrb[42].mxu1 }
 0x14c   : > { %2014 = vst.msk [vmem:[%s6391_s20 + $0x120] sm:$0xff] %vm1379_vm2, %v1982_v45  ;;  %5106 = vpow2.f32 %v3939_v58  ;;  %v3944_v50 = vmul.f32 -1.442695, %v6569_v17  ;;  %v6798_v55 = vpop.f32.mrb[43].mxu0  ;;  %v6800_v26 = vpop.f32.mrb[43].mxu1 }
 0x14d   : > { %5108 = vpow2.f32 %v4003_v18  ;;  %v4008_v54 = vmul.f32 -1.442695, %v1557_v16  ;;  %v3943_v63 = vmul.f32 -1.442695, %v6573_v36  ;;  %v6803_v17 = vpop.f32.mrb[44].mxu0  ;;  %v6810_v36 = vld [vmem:[%s7946_s7 + $0x78] sm:$0xff] }
 0x14e   : > { %5110 = vpow2.f32 %v3942_v4 }
 0x14f   : > { %5112 = vpow2.f32 %v4006_v60 }
 0x150   : > { %v5095_v49 = vpop.eup %5094  ;;  %5114 = vpow2.f32 %v3941_v37 }
 0x151   : > { %v5097_v8 = vpop.eup %5096  ;;  %v1124_v62 = vadd.f32 1.0, %v5095_v49  ;;  %5116 = vpow2.f32 %v4005_v2 }
 0x152   : > { %v5099_v59 = vpop.eup %5098  ;;  %v1222_v23 = vmul.f32 %v5097_v8, %v5097_v8  ;;  %5118 = vpow2.f32 %v3944_v50  ;;  %v1298_v5 = vmul.f32 %v5097_v8, %v6320_v61  ;;  %v1552_v8 = vadd.f32 %v6306_v40, %v6462_v20 }
 0x153   : > { %v5101_v47 = vpop.eup %5100  ;;  %v1851_v48 = vmul.f32 %v5099_v59, %v5099_v59  ;;  %5120 = vrcp.f32 %v1124_v62  ;;  %v1921_v18 = vmul.f32 %v5099_v59, %v6320_v61 }
 0x154   : > { %v5103_v44 = vpop.eup %5102  ;;  %v1260_v29 = vmul.f32 %v6344_v11, %v1222_v23  ;;  %v1752_v39 = vadd.f32 1.0, %v5101_v47  ;;  %5122 = vpow2.f32 %v4008_v54  ;;  %v1567_v23 = vadd.f32 %v6484_v13, %v6306_v40  ;;  %v6831_v13 = vld [vmem:[%s7943_s4 + $0x2] ss:$0 sm:$0xff] }
 0x155   : > { %v5105_v58 = vpop.eup %5104  ;;  %v1889_v41 = vmul.f32 %v6658_v46, %v1851_v48  ;;  %v1127_v57 = vadd.f32 1.0, %v5103_v44  ;;  %5124 = vpow2.f32 %v3943_v63  ;;  %v1562_v44 = vadd.f32 %v6306_v40, %v6495_v32 }
 0x156   : > { %v5107_v45 = vpop.eup %5106  ;;  %v1330_v4 = vadd.f32 %v1298_v5, %v1260_v29  ;;  %5126 = vrcp.f32 %v1752_v39  ;;  %v1755_v60 = vadd.f32 1.0, %v5105_v58  ;;  %v1577_v29 = vadd.f32 %v6517_v56, %v6306_v40 }
 0x157   : > { %v5109_v37 = vpop.eup %5108  ;;  %v1953_v16 = vadd.f32 %v1921_v18, %v1889_v41  ;;  %5128 = vrcp.f32 %v1127_v57  ;;  %v1126_v2 = vadd.f32 1.0, %v5107_v45  ;;  %v4007_v58 = vmul.f32 -1.442695, %v1552_v8  ;;  %v6839_v57 = vpop.f32.mrb[44].mxu1 }
 0x158   : > { %v5111_v50 = vpop.eup %5110  ;;  %v1362_v49 = vadd.f32 %v1330_v4, %v6810_v36  ;;  %5130 = vrcp.f32 %v1755_v60  ;;  %v1754_v54 = vadd.f32 1.0, %v5109_v37  ;;  %v3946_v41 = vmul.f32 -1.442695, %v6601_v19 }
 0x159   : > { %v5113_v62 = vpop.eup %5112  ;;  %v1985_v63 = vadd.f32 %v1953_v16, %v6502_v12  ;;  %5132 = vrcp.f32 %v1126_v2  ;;  %v1129_v59 = vadd.f32 1.0, %v5111_v50  ;;  %v6834_v40 = vmul.f32 -1.442695, %v1567_v23 }
 0x15a   : > { %v5115_v47 = vpop.eup %5114  ;;  %1395 = vst.msk [vmem:[%s6391_s20 + $0x78] sm:$0xff] %vm1379_vm2, %v1362_v49  ;;  %5134 = vrcp.f32 %v1754_v54  ;;  %v1757_v48 = vadd.f32 1.0, %v5113_v62  ;;  %v6837_v56 = vmul.f32 -1.442695, %v6620_v1  ;;  %v6841_v60 = vmul.f32 -1.442695, %v1562_v44 }
 0x15b   : > { %v5117_v20 = vpop.eup %5116  ;;  %2017 = vst.msk [vmem:[%s6391_s20 + $0x138] sm:$0xff] %vm1379_vm2, %v1985_v63  ;;  %5136 = vrcp.f32 %v1129_v59  ;;  %v1128_v12 = vadd.f32 1.0, %v5115_v47  ;;  %v6843_v37 = vmul.f32 -1.442695, %v1577_v29  ;;  %v6847_v2 = vadd.f32 %v6519_v38, %v6831_v13  ;;  %v6852_v1 = vld [vmem:[%s7943_s4 + $0x1] ss:$0 sm:$0xff] }
 0x15c   : > { %v5119_v5 = vpop.eup %5118  ;;  %5138 = vrcp.f32 %v1757_v48  ;;  %v1756_v39 = vadd.f32 1.0, %v5117_v20  ;;  %v6856_v50 = vadd.f32 %v6852_v1, %v6531_v43  ;;  %v6858_v49 = vpop.f32.mrb[45].mxu0  ;;  %v6865_v59 = vld [vmem:[%s7946_s7 + $0x70] sm:$0xff]  ;;  %v6870_v43 = vld [vmem:[%s7945_s6] ss:$0 sm:$0xff] }
 0x15d   : > { %v5121_v32 = vpop.eup %5120  ;;  %5140 = vrcp.f32 %v1128_v12  ;;  %v1131_v18 = vadd.f32 1.0, %v5119_v5  ;;  %7983 = vst [vmem:[#allocation21_spill] sm:$0xff] %v6858_v49 }
 0x15e   : > { %v5123_v45 = vpop.eup %5122  ;;  %v1221_v4 = vmul.f32 %v5121_v32, %v5121_v32  ;;  %5142 = vrcp.f32 %v1756_v39  ;;  %v1297_v62 = vmul.f32 %v5121_v32, %v6320_v61  ;;  %v6875_v61 = vadd.f32 %v6831_v13, %v6533_v24 }
 0x15f   : > { %v5125_v16 = vpop.eup %5124  ;;  %5144 = vrcp.f32 %v1131_v18  ;;  %v1759_v19 = vadd.f32 1.0, %v5123_v45 }
 0x160   : > { %v5127_v54 = vpop.eup %5126  ;;  %v1259_v8 = vmul.f32 %v6344_v11, %v1221_v4  ;;  %v1130_v63 = vadd.f32 1.0, %v5125_v16  ;;  %5146 = vpow2.f32 %v4007_v58 }
 0x161   : > { %v5129_v38 = vpop.eup %5128  ;;  %v1850_v23 = vmul.f32 %v5127_v54, %v5127_v54  ;;  %v1920_v47 = vmul.f32 %v6870_v43, %v5127_v54  ;;  %5148 = vrcp.f32 %v1759_v19  ;;  %v6886_v54 = vld [vmem:[%s7946_s7 + $0x88] sm:$0xff] }
 0x162   : > { %v5131_v48 = vpop.eup %5130  ;;  %v1329_v44 = vadd.f32 %v1297_v62, %v1259_v8  ;;  %v1224_v29 = vmul.f32 %v5129_v38, %v5129_v38  ;;  %v1300_v20 = vmul.f32 %v6870_v43, %v5129_v38  ;;  %5150 = vrcp.f32 %v1130_v63 }
 0x163   : > { %v5133_v12 = vpop.eup %5132  ;;  %v1888_v5 = vmul.f32 %v6658_v46, %v1850_v23  ;;  %v1853_v39 = vmul.f32 %v5131_v48, %v5131_v48  ;;  %v1923_v58 = vmul.f32 %v6870_v43, %v5131_v48  ;;  %5152 = vpow2.f32 %v3946_v41 }
 0x164   : > { %v5135_v32 = vpop.eup %5134  ;;  %v1361_v18 = vadd.f32 %v1329_v44, %v6865_v59  ;;  %v1262_v24 = vmul.f32 %v6344_v11, %v1224_v29  ;;  %v1223_v45 = vmul.f32 %v5133_v12, %v5133_v12  ;;  %v1299_v4 = vmul.f32 %v6870_v43, %v5133_v12  ;;  %v6895_v11 = vld [vmem:[%s7944_s5] ss:$0 sm:$0xff] }
 0x165   : > { %v5137_v16 = vpop.eup %5136  ;;  %v1952_v19 = vadd.f32 %v1920_v47, %v1888_v5  ;;  %v1891_v8 = vmul.f32 %v6658_v46, %v1853_v39  ;;  %v1852_v62 = vmul.f32 %v5135_v32, %v5135_v32  ;;  %v1922_v41 = vmul.f32 %v6870_v43, %v5135_v32  ;;  %v6903_v5 = vld [vmem:[%s7946_s7 + $0x80] sm:$0xff] }
 0x166   : > { %v5139_v63 = vpop.eup %5138  ;;  %1394 = vst.msk [vmem:[%s6391_s20 + $0x70] sm:$0xff] %vm1379_vm2, %v1361_v18  ;;  %v1332_v38 = vadd.f32 %v1300_v20, %v1262_v24  ;;  %v1261_v23 = vmul.f32 %v6895_v11, %v1223_v45  ;;  %v1226_v47 = vmul.f32 %v5137_v16, %v5137_v16  ;;  %v1302_v48 = vmul.f32 %v6870_v43, %v5137_v16 }
 0x167   : > { %v5141_v44 = vpop.eup %5140  ;;  %v1984_v29 = vadd.f32 %v1952_v19, %v6597_v53  ;;  %v1955_v12 = vadd.f32 %v1923_v58, %v1891_v8  ;;  %v1890_v20 = vmul.f32 %v6658_v46, %v1852_v62  ;;  %v1855_v39 = vmul.f32 %v5139_v63, %v5139_v63  ;;  %v6915_v8 = vld [vmem:[%s7946_s7 + $0x98] sm:$0xff] }
 0x168   : > { %v5143_v32 = vpop.eup %5142  ;;  %v1364_v18 = vadd.f32 %v1332_v38, %v6886_v54  ;;  %v1331_v24 = vadd.f32 %v1299_v4, %v1261_v23  ;;  %v1264_v45 = vmul.f32 %v6895_v11, %v1226_v47  ;;  %v1925_v16 = vmul.f32 %v6870_v43, %v5139_v63  ;;  %v6918_v38 = vpop.f32.mrb[45].mxu1 }
 0x169   : > { %v5145_v53 = vpop.eup %5144  ;;  %2016 = vst.msk [vmem:[%s6391_s20 + $0x130] sm:$0xff] %vm1379_vm2, %v1984_v29  ;;  %v1987_v58 = vadd.f32 %v1955_v12, %v6678_v42  ;;  %v1954_v19 = vadd.f32 %v1922_v41, %v1890_v20  ;;  %v1893_v62 = vmul.f32 %v6658_v46, %v1855_v39  ;;  %v1225_v4 = vmul.f32 %v5141_v44, %v5141_v44 }
 0x16a   : > { %7984 = vst [vmem:[#allocation22_spill] sm:$0xff] %v6918_v38  ;;  %v5147_v23 = vpop.eup %5146  ;;  %1397 = vst.msk [vmem:[%s6391_s20 + $0x88] sm:$0xff] %vm1379_vm2, %v1364_v18  ;;  %v1363_v63 = vadd.f32 %v1331_v24, %v6903_v5  ;;  %v1334_v47 = vadd.f32 %v1302_v48, %v1264_v45  ;;  %v1301_v42 = vmul.f32 %v6870_v43, %v5141_v44  ;;  %v6935_v44 = vld [vmem:[%s7946_s7 + $0x90] sm:$0xff]  ;;  %5154 = vpow2.f32 %v6834_v40 }
 0x16b   : > { %v1854_v41 = vmul.f32 %v5143_v32, %v5143_v32  ;;  %v5149_v29 = vpop.eup %5148  ;;  %2019 = vst.msk [vmem:[%s6391_s20 + $0x148] sm:$0xff] %vm1379_vm2, %v1987_v58  ;;  %v1986_v12 = vadd.f32 %v1954_v19, %v6689_v31  ;;  %v1957_v20 = vadd.f32 %v1925_v16, %v1893_v62  ;;  %v1263_v39 = vmul.f32 %v6895_v11, %v1225_v4 }
 0x16c   : > { %v1924_v38 = vmul.f32 %v6870_v43, %v5143_v32  ;;  %v5151_v49 = vpop.eup %5150  ;;  %1396 = vst.msk [vmem:[%s6391_s20 + $0x80] sm:$0xff] %vm1379_vm2, %v1363_v63  ;;  %v1366_v48 = vadd.f32 %v1334_v47, %v6915_v8  ;;  %v1228_v31 = vmul.f32 %v5145_v53, %v5145_v53  ;;  %v1304_v24 = vmul.f32 %v6870_v43, %v5145_v53 }
 0x16d   : > { %v1892_v18 = vmul.f32 %v6658_v46, %v1854_v41  ;;  %v5153_v45 = vpop.eup %5152  ;;  %2018 = vst.msk [vmem:[%s6391_s20 + $0x140] sm:$0xff] %vm1379_vm2, %v1986_v12  ;;  %v1989_v32 = vadd.f32 %v1957_v20, %v6699_v25  ;;  %v1333_v16 = vadd.f32 %v1301_v42, %v1263_v39  ;;  %v1857_v58 = vmul.f32 %v5149_v29, %v5149_v29  ;;  %v6953_v25 = vld [vmem:[%s7946_s7 + $0xa8] sm:$0xff]  ;;  %v6958_v12 = vpop.f32.mrb[46].mxu1 }
 0x16e   : > { %v1927_v19 = vmul.f32 %v6870_v43, %v5149_v29  ;;  %1399 = vst.msk [vmem:[%s6391_s20 + $0x98] sm:$0xff] %vm1379_vm2, %v1366_v48  ;;  %v1266_v4 = vmul.f32 %v6895_v11, %v1228_v31  ;;  %v1227_v63 = vmul.f32 %v5151_v49, %v5151_v49  ;;  %v1303_v47 = vmul.f32 %v6870_v43, %v5151_v49  ;;  %v6956_v29 = vpop.f32.mrb[46].mxu0  ;;  %v6972_v31 = vld [vmem:[%s7946_s7 + $0xa0] sm:$0xff] }
 0x16f   : > { %v1956_v62 = vadd.f32 %v1924_v38, %v1892_v18  ;;  %2021 = vst.msk [vmem:[%s6391_s20 + $0x158] sm:$0xff] %vm1379_vm2, %v1989_v32  ;;  %v1365_v53 = vadd.f32 %v1333_v16, %v6935_v44  ;;  %v1895_v42 = vmul.f32 %v6658_v46, %v1857_v58  ;;  %v1758_v41 = vadd.f32 1.0, %v5147_v23  ;;  %v6963_v48 = vpop.f32.mrb[47].mxu0  ;;  %v6965_v18 = vpop.f32.mrb[47].mxu1 }
 0x170   : > { %v1133_v38 = vadd.f32 1.0, %v5153_v45  ;;  %v1336_v20 = vadd.f32 %v1304_v24, %v1266_v4  ;;  %v1265_v39 = vmul.f32 %v6895_v11, %v1227_v63  ;;  %v1587_v24 = vadd.f32 %v6852_v1, %v6555_v51  ;;  %v6987_v58 = vpop.f32.mrb[48].mxu0 }
 0x171   : > { %v1988_v49 = vadd.f32 %v1956_v62, %v6713_v28  ;;  %1398 = vst.msk [vmem:[%s6391_s20 + $0x90] sm:$0xff] %vm1379_vm2, %v1365_v53  ;;  %v1959_v23 = vadd.f32 %v1927_v19, %v1895_v42  ;;  %5156 = vrcp.f32 %v1758_v41  ;;  %v4068_v28 = vmul.f32 -1.442695, %v6847_v2  ;;  %v6989_v19 = vpop.f32.mrb[48].mxu1 }
 0x172   : > { %v1368_v40 = vadd.f32 %v1336_v20, %v6953_v25  ;;  %v1335_v45 = vadd.f32 %v1303_v47, %v1265_v39  ;;  %5158 = vrcp.f32 %v1133_v38  ;;  %v2137_v32 = vadd.f32 %v6557_v9, %v6831_v13  ;;  %7985 = vst [vmem:[#allocation23_spill] sm:$0xff] %v6989_v19 }
 0x173   : > { %2020 = vst.msk [vmem:[%s6391_s20 + $0x150] sm:$0xff] %vm1379_vm2, %v1988_v49  ;;  %v1991_v16 = vadd.f32 %v1959_v23, %v6736_v10  ;;  %5160 = vpow2.f32 %v6837_v56  ;;  %v4011_v2 = vmul.f32 -1.442695, %v6856_v50  ;;  %v1582_v51 = vadd.f32 %v6852_v1, %v6563_v52  ;;  %v6998_v56 = vpop.f32.mrb[49].mxu0  ;;  %v7003_v50 = vpop.f32.mrb[49].mxu1 }
 0x174   : > { %1401 = vst.msk [vmem:[%s6391_s20 + $0xa8] sm:$0xff] %vm1379_vm2, %v1368_v40  ;;  %v1367_v62 = vadd.f32 %v1335_v45, %v6972_v31  ;;  %5162 = vpow2.f32 %v6841_v60  ;;  %v4067_v9 = vmul.f32 -1.442695, %v6875_v61  ;;  %v2132_v10 = vadd.f32 %v6831_v13, %v6565_v22  ;;  %7986 = vst [vmem:[#allocation24_spill] sm:$0xff] %v6998_v56  ;;  %v7988_v22 = vld [vmem:[#allocation2_spill] sm:$0xff]  ;;  %v7011_v53 = vpop.f32.mrb[50].mxu0  ;;  %v5155_v42 = vpop.eup %5154 }
 0x175   : > { %2023 = vst.msk [vmem:[%s6391_s20 + $0x168] sm:$0xff] %vm1379_vm2, %v1991_v16  ;;  %5164 = vpow2.f32 %v6843_v37  ;;  %v4014_v52 = vmul.f32 -1.442695, %v1587_v24  ;;  %7987 = vst [vmem:[#allocation25_spill] sm:$0xff] %v7003_v50  ;;  %v4070_v4 = vmul.f32 -1.442695, %v2137_v32  ;;  %v1597_v60 = vadd.f32 %v6852_v1, %v6575_v21 }
 0x176   : > { %1400 = vst.msk [vmem:[%s6391_s20 + $0xa0] sm:$0xff] %vm1379_vm2, %v1367_v62  ;;  %5166 = vpow2.f32 %v4068_v28  ;;  %v4013_v61 = vmul.f32 -1.442695, %v1582_v51  ;;  %v2147_v63 = vadd.f32 %v7988_v22, %v6831_v13  ;;  %v4069_v47 = vmul.f32 -1.442695, %v2132_v10  ;;  %7989 = vst [vmem:[#allocation2_spill] sm:$0xff] %v7011_v53 }
 0x177   : > { %5168 = vpow2.f32 %v4011_v2  ;;  %v7013_v37 = vpop.f32.mrb[50].mxu1  ;;  %v4016_v41 = vmul.f32 -1.442695, %v1597_v60  ;;  %v7015_v38 = vpop.f32.mrb[51].mxu0  ;;  %v1761_v20 = vadd.f32 1.0, %v5155_v42  ;;  %v7026_v60 = vld [vmem:[%s7946_s7 + $0xb8] sm:$0xff] }
 0x178   : > { %5170 = vpow2.f32 %v4067_v9  ;;  %7990 = vst [vmem:[#allocation26_spill] sm:$0xff] %v7013_v37  ;;  %7991 = vst [vmem:[#allocation27_spill] sm:$0xff] %v7015_v38  ;;  %v7017_v49 = vpop.f32.mrb[51].mxu1  ;;  %v4072_v39 = vmul.f32 -1.442695, %v2147_v63  ;;  %v7993_v22 = vld [vmem:[#allocation3_spill] sm:$0xff] }
 0x179   : > { %5172 = vpow2.f32 %v4014_v52  ;;  %7992 = vst [vmem:[#allocation28_spill] sm:$0xff] %v7017_v49  ;;  %v1592_v63 = vadd.f32 %v6852_v1, %v7993_v22 }
 0x17a   : > { %5174 = vpow2.f32 %v4070_v4 }
 0x17b   : > { %v5157_v21 = vpop.eup %5156  ;;  %5176 = vpow2.f32 %v4013_v61 }
 0x17c   : > { %v5159_v23 = vpop.eup %5158  ;;  %v1856_v28 = vmul.f32 %v5157_v21, %v5157_v21  ;;  %5178 = vpow2.f32 %v4069_v47  ;;  %v1926_v16 = vmul.f32 %v6870_v43, %v5157_v21  ;;  %v7994_v21 = vld [vmem:[#allocation4_spill] sm:$0xff] }
 0x17d   : > { %v5161_v24 = vpop.eup %5160  ;;  %v1230_v40 = vmul.f32 %v5159_v23, %v5159_v23  ;;  %5180 = vrcp.f32 %v1761_v20  ;;  %v1306_v9 = vmul.f32 %v6870_v43, %v5159_v23  ;;  %v2142_v20 = vadd.f32 %v6831_v13, %v7994_v21 }
 0x17e   : > { %v5163_v45 = vpop.eup %5162  ;;  %v1894_v32 = vmul.f32 %v6658_v46, %v1856_v28  ;;  %v1132_v2 = vadd.f32 1.0, %v5161_v24  ;;  %5182 = vpow2.f32 %v4016_v41  ;;  %v7995_v24 = vld [vmem:[#allocation5_spill] sm:$0xff] }
 0x17f   : > { %v5165_v51 = vpop.eup %5164  ;;  %v1268_v62 = vmul.f32 %v6895_v11, %v1230_v40  ;;  %v1760_v10 = vadd.f32 1.0, %v5163_v45  ;;  %5184 = vpow2.f32 %v4072_v39  ;;  %v1607_v40 = vadd.f32 %v6852_v1, %v7995_v24  ;;  %v7999_v24 = vld [vmem:[#allocation9_spill] sm:$0xff] }
 0x180   : > { %v5167_v52 = vpop.eup %5166  ;;  %v1958_v4 = vadd.f32 %v1926_v16, %v1894_v32  ;;  %5186 = vrcp.f32 %v1132_v2  ;;  %v1763_v61 = vadd.f32 1.0, %v5165_v51 }
 0x181   : > { %v5169_v47 = vpop.eup %5168  ;;  %v1338_v42 = vadd.f32 %v1306_v9, %v1268_v62  ;;  %5188 = vrcp.f32 %v1760_v10  ;;  %v2377_v41 = vadd.f32 1.0, %v5167_v52  ;;  %v7996_v62 = vld [vmem:[#allocation6_spill] sm:$0xff]  ;;  %v4015_v52 = vmul.f32 -1.442695, %v1592_v63 }
 0x182   : > { %v5171_v39 = vpop.eup %5170  ;;  %v1990_v23 = vadd.f32 %v1958_v4, %v6755_v0  ;;  %5190 = vrcp.f32 %v1763_v61  ;;  %v1762_v28 = vadd.f32 1.0, %v5169_v47  ;;  %v2157_v9 = vadd.f32 %v7996_v62, %v6831_v13  ;;  %v7997_v4 = vld [vmem:[#allocation7_spill] sm:$0xff] }
 0x183   : > { %v5173_v45 = vpop.eup %5172  ;;  %v1370_v32 = vadd.f32 %v1338_v42, %v7026_v60  ;;  %5192 = vrcp.f32 %v2377_v41  ;;  %v2376_v16 = vadd.f32 1.0, %v5171_v39  ;;  %v1602_v61 = vadd.f32 %v6852_v1, %v7997_v4 }
 0x184   : > { %v5175_v2 = vpop.eup %5174  ;;  %2022 = vst.msk [vmem:[%s6391_s20 + $0x160] sm:$0xff] %vm1379_vm2, %v1990_v23  ;;  %5194 = vrcp.f32 %v1762_v28  ;;  %v1765_v51 = vadd.f32 1.0, %v5173_v45  ;;  %v4071_v42 = vmul.f32 -1.442695, %v2142_v20  ;;  %v7044_v41 = vmul.f32 -1.442695, %v1607_v40 }
 0x185   : > { %v5177_v10 = vpop.eup %5176  ;;  %1403 = vst.msk [vmem:[%s6391_s20 + $0xb8] sm:$0xff] %vm1379_vm2, %v1370_v32  ;;  %5196 = vrcp.f32 %v2376_v16  ;;  %v2379_v0 = vadd.f32 1.0, %v5175_v2  ;;  %v7998_v23 = vld [vmem:[#allocation8_spill] sm:$0xff]  ;;  %v7050_v45 = vadd.f32 %v6852_v1, %v7999_v24  ;;  %v7052_v16 = vmul.f32 -1.442695, %v2157_v9  ;;  %v8000_v2 = vld [vmem:[#allocation10_spill] sm:$0xff] }
 0x186   : > { %v5179_v22 = vpop.eup %5178  ;;  %5198 = vrcp.f32 %v1765_v51  ;;  %v1764_v47 = vadd.f32 1.0, %v5177_v10  ;;  %v2152_v28 = vadd.f32 %v6831_v13, %v7998_v23  ;;  %v7056_v20 = vadd.f32 %v8000_v2, %v6831_v13  ;;  %v8001_v10 = vld [vmem:[#allocation11_spill] sm:$0xff]  ;;  %v7066_v23 = vpop.f32.mrb[52].mxu0 }
 0x187   : > { %v5181_v21 = vpop.eup %5180  ;;  %5200 = vrcp.f32 %v2379_v0  ;;  %v2378_v39 = vadd.f32 1.0, %v5179_v22  ;;  %v7058_v62 = vmul.f32 -1.442695, %v1602_v61  ;;  %v7062_v0 = vadd.f32 %v6852_v1, %v8001_v10  ;;  %8002 = vst [vmem:[#allocation3_spill] sm:$0xff] %v7066_v23  ;;  %v7068_v24 = vpop.f32.mrb[52].mxu1 }
 0x188   : > { %v5183_v63 = vpop.eup %5182  ;;  %v1859_v32 = vmul.f32 %v5181_v21, %v5181_v21  ;;  %5202 = vrcp.f32 %v1764_v47  ;;  %v1929_v47 = vmul.f32 %v6870_v43, %v5181_v21  ;;  %8003 = vst [vmem:[#allocation4_spill] sm:$0xff] %v7068_v24 }
 0x189   : > { %v5185_v40 = vpop.eup %5184  ;;  %5204 = vrcp.f32 %v2378_v39  ;;  %v1767_v51 = vadd.f32 1.0, %v5183_v63  ;;  %v7071_v63 = vmul.f32 -1.442695, %v2152_v28 }
 0x18a   : > { %v5187_v4 = vpop.eup %5186  ;;  %v1897_v22 = vmul.f32 %v6658_v46, %v1859_v32  ;;  %v2381_v9 = vadd.f32 1.0, %v5185_v40  ;;  %5206 = vpow2.f32 %v4015_v52 }
 0x18b   : > { %v5189_v2 = vpop.eup %5188  ;;  %v1229_v39 = vmul.f32 %v5187_v4, %v5187_v4  ;;  %v1305_v61 = vmul.f32 %v6870_v43, %v5187_v4  ;;  %5208 = vrcp.f32 %v1767_v51  ;;  %v7079_v4 = vld [vmem:[%s7944_s5 + $0x2] ss:$0 sm:$0xff] }
 0x18c   : > { %v5191_v10 = vpop.eup %5190  ;;  %v1961_v49 = vadd.f32 %v1929_v47, %v1897_v22  ;;  %v1858_v38 = vmul.f32 %v5189_v2, %v5189_v2  ;;  %v1928_v32 = vmul.f32 %v6870_v43, %v5189_v2  ;;  %5210 = vrcp.f32 %v2381_v9  ;;  %v7085_v22 = vld [vmem:[%s7946_s7 + $0xb0] sm:$0xff] }
 0x18d   : > { %v5193_v21 = vpop.eup %5192  ;;  %v1267_v52 = vmul.f32 %v6895_v11, %v1229_v39  ;;  %v1861_v40 = vmul.f32 %v5191_v10, %v5191_v10  ;;  %v1931_v24 = vmul.f32 %v6870_v43, %v5191_v10  ;;  %5212 = vpow2.f32 %v4071_v42 }
 0x18e   : > { %v5195_v28 = vpop.eup %5194  ;;  %v1993_v51 = vadd.f32 %v1961_v49, %v6810_v36  ;;  %v1896_v11 = vmul.f32 %v6658_v46, %v1858_v38  ;;  %v2475_v47 = vmul.f32 %v5193_v21, %v5193_v21  ;;  %v2545_v9 = vmul.f32 %v6870_v43, %v5193_v21 }
 0x18f   : > { %v5197_v2 = vpop.eup %5196  ;;  %v1337_v39 = vadd.f32 %v1305_v61, %v1267_v52  ;;  %v1899_v10 = vmul.f32 %v6658_v46, %v1861_v40  ;;  %v1860_v23 = vmul.f32 %v5195_v28, %v5195_v28  ;;  %v1930_v42 = vmul.f32 %v6870_v43, %v5195_v28 }
 0x190   : > { %v5199_v37 = vpop.eup %5198  ;;  %2025 = vst.msk [vmem:[%s6391_s20 + $0x178] sm:$0xff] %vm1379_vm2, %v1993_v51  ;;  %v1960_v36 = vadd.f32 %v1928_v32, %v1896_v11  ;;  %v2513_v49 = vmul.f32 %v7079_v4, %v2475_v47  ;;  %v2474_v53 = vmul.f32 %v5197_v2, %v5197_v2  ;;  %v2544_v38 = vmul.f32 %v6870_v43, %v5197_v2 }
 0x191   : > { %v5201_v50 = vpop.eup %5200  ;;  %v1369_v21 = vadd.f32 %v1337_v39, %v7085_v22  ;;  %v1963_v61 = vadd.f32 %v1931_v24, %v1899_v10  ;;  %v1898_v52 = vmul.f32 %v6658_v46, %v1860_v23  ;;  %v1863_v40 = vmul.f32 %v5199_v37, %v5199_v37 }
 0x192   : > { %v5203_v56 = vpop.eup %5202  ;;  %v1992_v28 = vadd.f32 %v1960_v36, %v6865_v59  ;;  %v2577_v19 = vadd.f32 %v2545_v9, %v2513_v49  ;;  %v2512_v51 = vmul.f32 %v7079_v4, %v2474_v53  ;;  %v1933_v32 = vmul.f32 %v6870_v43, %v5199_v37  ;;  %v5485_v59 = vld [vmem:[%s7946_s7 + $0x8] sm:$0xff]  ;;  %v7110_v36 = vpop.f32.mrb[53].mxu0 }
 0x193   : > { %v5205_v11 = vpop.eup %5204  ;;  %1402 = vst.msk [vmem:[%s6391_s20 + $0xb0] sm:$0xff] %vm1379_vm2, %v1369_v21  ;;  %v1995_v47 = vadd.f32 %v1963_v61, %v6886_v54  ;;  %v1962_v2 = vadd.f32 %v1930_v42, %v1898_v52  ;;  %v1901_v24 = vmul.f32 %v6658_v46, %v1863_v40  ;;  %v2477_v39 = vmul.f32 %v5201_v50, %v5201_v50 }
 0x194   : > { %v5207_v23 = vpop.eup %5206  ;;  %2024 = vst.msk [vmem:[%s6391_s20 + $0x170] sm:$0xff] %vm1379_vm2, %v1992_v28  ;;  %v2609_v53 = vadd.f32 %v5485_v59, %v2577_v19  ;;  %v2576_v37 = vadd.f32 %v2544_v38, %v2512_v51  ;;  %v2547_v9 = vmul.f32 %v6870_v43, %v5201_v50  ;;  %v1862_v10 = vmul.f32 %v5203_v56, %v5203_v56  ;;  %v5486_v19 = vld [vmem:[%s7946_s7] sm:$0xff]  ;;  %v7124_v28 = vpop.f32.mrb[53].mxu1  ;;  %v5487_v59 = vld [vmem:[%s7946_s7 + $0x18] sm:$0xff] }
 0x195   : > { %v5209_v54 = vpop.eup %5208  ;;  %2027 = vst.msk [vmem:[%s6391_s20 + $0x188] sm:$0xff] %vm1379_vm2, %v1995_v47  ;;  %v1994_v42 = vadd.f32 %v1962_v2, %v6903_v5  ;;  %v1965_v49 = vadd.f32 %v1933_v32, %v1901_v24  ;;  %v2515_v21 = vmul.f32 %v7079_v4, %v2477_v39  ;;  %v1932_v61 = vmul.f32 %v6870_v43, %v5203_v56 }
 0x196   : > { %v5211_v52 = vpop.eup %5210  ;;  %2641 = vst.msk [vmem:[%s6391_s20 + $0x208] sm:$0xff] %vm1379_vm2, %v2609_v53  ;;  %v2608_v50 = vadd.f32 %v5486_v19, %v2576_v37  ;;  %v1900_v38 = vmul.f32 %v6658_v46, %v1862_v10  ;;  %v2476_v40 = vmul.f32 %v5205_v11, %v5205_v11  ;;  %v2546_v5 = vmul.f32 %v6870_v43, %v5205_v11  ;;  %v7142_v53 = vld [vmem:[%s7944_s5 + $0x1] ss:$0 sm:$0xff] }
 0x197   : > { %v5213_v51 = vpop.eup %5212  ;;  %2026 = vst.msk [vmem:[%s6391_s20 + $0x180] sm:$0xff] %vm1379_vm2, %v1994_v42  ;;  %v1997_v56 = vadd.f32 %v1965_v49, %v6915_v8  ;;  %v2579_v32 = vadd.f32 %v2547_v9, %v2515_v21  ;;  %v1865_v47 = vmul.f32 %v5209_v54, %v5209_v54  ;;  %v1935_v2 = vmul.f32 %v6870_v43, %v5209_v54  ;;  %v7148_v21 = vpop.f32.mrb[54].mxu0 }
 0x198   : > { %2640 = vst.msk [vmem:[%s6391_s20 + $0x200] sm:$0xff] %vm1379_vm2, %v2608_v50  ;;  %v1964_v24 = vadd.f32 %v1932_v61, %v1900_v38  ;;  %v2514_v39 = vmul.f32 %v7079_v4, %v2476_v40  ;;  %v2479_v46 = vmul.f32 %v5211_v52, %v5211_v52  ;;  %v2549_v11 = vmul.f32 %v6870_v43, %v5211_v52  ;;  %v7150_v61 = vpop.f32.mrb[54].mxu1 }
 0x199   : > { %2029 = vst.msk [vmem:[%s6391_s20 + $0x198] sm:$0xff] %vm1379_vm2, %v1997_v56  ;;  %v2611_v8 = vadd.f32 %v5487_v59, %v2579_v32  ;;  %v1903_v37 = vmul.f32 %v7142_v53, %v1865_v47  ;;  %v1766_v9 = vadd.f32 1.0, %v5207_v23  ;;  %v2380_v10 = vadd.f32 1.0, %v5213_v51  ;;  %v8004_v23 = vld [vmem:[#allocation12_spill] sm:$0xff]  ;;  %v7159_v38 = vpop.f32.mrb[55].mxu1  ;;  %v8005_v51 = vld [vmem:[#allocation13_spill] sm:$0xff] }
 0x19a   : > { %v1996_v54 = vadd.f32 %v1964_v24, %v6935_v44  ;;  %v2578_v42 = vadd.f32 %v2546_v5, %v2514_v39  ;;  %v2517_v49 = vmul.f32 %v7079_v4, %v2479_v46  ;;  %5214 = vpow2.f32 %v7044_v41  ;;  %v7157_v44 = vpop.f32.mrb[55].mxu0  ;;  %v5489_v41 = vld [vmem:[%s7946_s7 + $0x10] sm:$0xff]  ;;  %v8006_v47 = vld [vmem:[#allocation14_spill] sm:$0xff]  ;;  %v5490_v24 = vld [vmem:[%s7946_s7 + $0x28] sm:$0xff] }
 0x19b   : > { %2643 = vst.msk [vmem:[%s6391_s20 + $0x218] sm:$0xff] %vm1379_vm2, %v2611_v8  ;;  %v1967_v52 = vadd.f32 %v1935_v2, %v1903_v37  ;;  %5216 = vrcp.f32 %v1766_v9  ;;  %v4020_v19 = vmul.f32 -1.442695, %v7050_v45  ;;  %v2162_v50 = vadd.f32 %v6831_v13, %v8004_v23  ;;  %v8008_v37 = vld [vmem:[#allocation16_spill] sm:$0xff] }
 0x19c   : > { %2028 = vst.msk [vmem:[%s6391_s20 + $0x190] sm:$0xff] %vm1379_vm2, %v1996_v54  ;;  %v2610_v40 = vadd.f32 %v5489_v41, %v2578_v42  ;;  %v2581_v5 = vadd.f32 %v2549_v11, %v2517_v49  ;;  %5218 = vrcp.f32 %v2380_v10  ;;  %v1627_v45 = vadd.f32 %v6852_v1, %v8005_v51  ;;  %v8007_v11 = vld [vmem:[#allocation15_spill] sm:$0xff]  ;;  %v8009_v54 = vld [vmem:[#allocation17_spill] sm:$0xff] }
 0x19d   : > { %v1999_v56 = vadd.f32 %v1967_v52, %v6953_v25  ;;  %5220 = vpow2.f32 %v7052_v16  ;;  %v4076_v32 = vmul.f32 -1.442695, %v7056_v20  ;;  %v2177_v2 = vadd.f32 %v8006_v47, %v6831_v13  ;;  %v7182_v16 = vpop.f32.mrb[56].mxu1  ;;  %v7184_v20 = vpop.f32.mrb[56].mxu0 }
 0x19e   : > { %2642 = vst.msk [vmem:[%s6391_s20 + $0x210] sm:$0xff] %vm1379_vm2, %v2610_v40  ;;  %v2613_v39 = vadd.f32 %v5490_v24, %v2581_v5  ;;  %5222 = vpow2.f32 %v7058_v62  ;;  %v4019_v46 = vmul.f32 -1.442695, %v7062_v0  ;;  %v1622_v25 = vadd.f32 %v6852_v1, %v8007_v11  ;;  %v7193_v0 = vpop.f32.mrb[57].mxu1  ;;  %v7195_v9 = vpop.f32.mrb[57].mxu0 }
 0x19f   : > { %2031 = vst.msk [vmem:[%s6391_s20 + $0x1a8] sm:$0xff] %vm1379_vm2, %v1999_v56  ;;  %5224 = vpow2.f32 %v7071_v63  ;;  %v4075_v59 = vmul.f32 -1.442695, %v2162_v50  ;;  %v4022_v8 = vmul.f32 -1.442695, %v1627_v45  ;;  %v2172_v62 = vadd.f32 %v6831_v13, %v8008_v37 }
 0x1a0   : > { %2645 = vst.msk [vmem:[%s6391_s20 + $0x228] sm:$0xff] %vm1379_vm2, %v2613_v39  ;;  %5226 = vpow2.f32 %v4020_v19  ;;  %v4078_v10 = vmul.f32 -1.442695, %v2177_v2  ;;  %v1637_v42 = vadd.f32 %v6852_v1, %v8009_v54  ;;  %v4021_v49 = vmul.f32 -1.442695, %v1622_v25 }
 0x1a1   : > { %5228 = vpow2.f32 %v4076_v32  ;;  %v4077_v52 = vmul.f32 -1.442695, %v2172_v62 }
 0x1a2   : > { %5230 = vpow2.f32 %v4019_v46  ;;  %v4024_v50 = vmul.f32 -1.442695, %v1637_v42  ;;  %v8011_v42 = vld [vmem:[#allocation19_spill] sm:$0xff] }
 0x1a3   : > { %5232 = vpow2.f32 %v4075_v59 }
 0x1a4   : > { %v5215_v63 = vpop.eup %5214  ;;  %5234 = vpow2.f32 %v4022_v8  ;;  %v8010_v8 = vld [vmem:[#allocation18_spill] sm:$0xff] }
 0x1a5   : > { %v5217_v19 = vpop.eup %5216  ;;  %v1769_v23 = vadd.f32 1.0, %v5215_v63  ;;  %5236 = vpow2.f32 %v4078_v10  ;;  %v2187_v37 = vadd.f32 %v8010_v8, %v6831_v13 }
 0x1a6   : > { %v5219_v41 = vpop.eup %5218  ;;  %v1864_v40 = vmul.f32 %v5217_v19, %v5217_v19  ;;  %5238 = vpow2.f32 %v4021_v49  ;;  %v1934_v32 = vmul.f32 %v6870_v43, %v5217_v19  ;;  %v1632_v49 = vadd.f32 %v6852_v1, %v8011_v42 }
 0x1a7   : > { %v5221_v5 = vpop.eup %5220  ;;  %v2478_v51 = vmul.f32 %v5219_v41, %v5219_v41  ;;  %5240 = vrcp.f32 %v1769_v23  ;;  %v2548_v39 = vmul.f32 %v6870_v43, %v5219_v41  ;;  %v8012_v23 = vld [vmem:[#allocation20_spill] sm:$0xff] }
 0x1a8   : > { %v5223_v45 = vpop.eup %5222  ;;  %v1902_v56 = vmul.f32 %v7142_v53, %v1864_v40  ;;  %v2383_v47 = vadd.f32 1.0, %v5221_v5  ;;  %5242 = vpow2.f32 %v4077_v52  ;;  %v5491_v40 = vld [vmem:[%s7946_s7 + $0x20] sm:$0xff] }
 0x1a9   : > { %v5225_v2 = vpop.eup %5224  ;;  %v2516_v24 = vmul.f32 %v7079_v4, %v2478_v51  ;;  %v1768_v46 = vadd.f32 1.0, %v5223_v45  ;;  %5244 = vpow2.f32 %v4024_v50  ;;  %v2182_v50 = vadd.f32 %v6831_v13, %v8012_v23 }
 0x1aa   : > { %v5227_v11 = vpop.eup %5226  ;;  %v1966_v25 = vadd.f32 %v1934_v32, %v1902_v56  ;;  %5246 = vrcp.f32 %v2383_v47  ;;  %v2382_v59 = vadd.f32 1.0, %v5225_v2  ;;  %v1647_v45 = vadd.f32 %v6852_v1, %v6726_v27 }
 0x1ab   : > { %v5229_v62 = vpop.eup %5228  ;;  %v2580_v10 = vadd.f32 %v2548_v39, %v2516_v24  ;;  %5248 = vrcp.f32 %v1768_v46  ;;  %v1771_v54 = vadd.f32 1.0, %v5227_v11  ;;  %v2197_v32 = vadd.f32 %v6728_v3, %v6831_v13 }
 0x1ac   : > { %v5231_v63 = vpop.eup %5230  ;;  %v1998_v52 = vadd.f32 %v1966_v25, %v6972_v31  ;;  %5250 = vrcp.f32 %v2382_v59  ;;  %v2385_v19 = vadd.f32 1.0, %v5229_v62  ;;  %v1642_v47 = vadd.f32 %v6852_v1, %v6743_v30  ;;  %v7223_v25 = vpop.f32.mrb[58].mxu1 }
 0x1ad   : > { %v5233_v41 = vpop.eup %5232  ;;  %v2612_v5 = vadd.f32 %v5491_v40, %v2580_v10  ;;  %5252 = vrcp.f32 %v1771_v54  ;;  %v1770_v51 = vadd.f32 1.0, %v5231_v63  ;;  %v4080_v27 = vmul.f32 -1.442695, %v2187_v37  ;;  %v7229_v30 = vpop.f32.mrb[59].mxu1  ;;  %v7238_v37 = vld [vmem:[%s7948_s9] ss:$0 sm:$0xff] }
 0x1ae   : > { %v5235_v56 = vpop.eup %5234  ;;  %2030 = vst.msk [vmem:[%s6391_s20 + $0x1a0] sm:$0xff] %vm1379_vm2, %v1998_v52  ;;  %5254 = vrcp.f32 %v2385_v19  ;;  %v2384_v31 = vadd.f32 1.0, %v5233_v41  ;;  %v4023_v11 = vmul.f32 -1.442695, %v1632_v49  ;;  %v7225_v62 = vmul.f32 -1.442695, %v2182_v50 }
 0x1af   : > { %v5237_v2 = vpop.eup %5236  ;;  %2644 = vst.msk [vmem:[%s6391_s20 + $0x220] sm:$0xff] %vm1379_vm2, %v2612_v5  ;;  %5256 = vrcp.f32 %v1770_v51  ;;  %v1773_v24 = vadd.f32 1.0, %v5235_v56  ;;  %v7227_v3 = vmul.f32 -1.442695, %v1647_v45  ;;  %v7231_v54 = vmul.f32 -1.442695, %v2197_v32 }
 0x1b0   : > { %v5239_v39 = vpop.eup %5238  ;;  %5258 = vrcp.f32 %v2384_v31  ;;  %v2387_v46 = vadd.f32 1.0, %v5237_v2  ;;  %v7233_v42 = vmul.f32 -1.442695, %v1642_v47  ;;  %v7242_v52 = vadd.f32 %v6831_v13, %v6745_v35  ;;  %v7250_v5 = vpop.f32.mrb[60].mxu1 }
 0x1b1   : > { %v5241_v59 = vpop.eup %5240  ;;  %5260 = vrcp.f32 %v1773_v24  ;;  %v1772_v8 = vadd.f32 1.0, %v5239_v39  ;;  %v7246_v19 = vadd.f32 %v6768_v34, %v6831_v13  ;;  %v7255_v35 = vadd.f32 %v6770_v33, %v7238_v37  ;;  %v7257_v34 = vpop.f32.mrb[61].mxu1 }
 0x1b2   : > { %v5243_v1 = vpop.eup %5242  ;;  %v1867_v10 = vmul.f32 %v5241_v59, %v5241_v59  ;;  %5262 = vrcp.f32 %v2387_v46  ;;  %v1937_v41 = vmul.f32 %v6870_v43, %v5241_v59 }
 0x1b3   : > { %v5245_v49 = vpop.eup %5244  ;;  %5264 = vrcp.f32 %v1772_v8  ;;  %v2386_v63 = vadd.f32 1.0, %v5243_v1 }
 0x1b4   : > { %v5247_v23 = vpop.eup %5246  ;;  %v1905_v50 = vmul.f32 %v7142_v53, %v1867_v10  ;;  %v1775_v40 = vadd.f32 1.0, %v5245_v49  ;;  %5266 = vpow2.f32 %v4080_v27  ;;  %v7265_v10 = vpop.f32.mrb[62].mxu1 }
 0x1b5   : > { %v5249_v51 = vpop.eup %5248  ;;  %v2481_v45 = vmul.f32 %v5247_v23, %v5247_v23  ;;  %v2551_v56 = vmul.f32 %v6870_v43, %v5247_v23  ;;  %5268 = vrcp.f32 %v2386_v63 }
 0x1b6   : > { %v5251_v13 = vpop.eup %5250  ;;  %v1969_v31 = vadd.f32 %v1937_v41, %v1905_v50  ;;  %v1866_v32 = vmul.f32 %v5249_v51, %v5249_v51  ;;  %v1936_v47 = vmul.f32 %v6870_v43, %v5249_v51  ;;  %5270 = vrcp.f32 %v1775_v40 }
 0x1b7   : > { %v5253_v2 = vpop.eup %5252  ;;  %v2519_v24 = vmul.f32 %v7079_v4, %v2481_v45  ;;  %v2480_v39 = vmul.f32 %v5251_v13, %v5251_v13  ;;  %v2550_v46 = vmul.f32 %v6870_v43, %v5251_v13  ;;  %5272 = vpow2.f32 %v4023_v11 }
 0x1b8   : > { %v5255_v27 = vpop.eup %5254  ;;  %v2001_v33 = vadd.f32 %v1969_v31, %v7026_v60  ;;  %v1904_v59 = vmul.f32 %v7142_v53, %v1866_v32  ;;  %v1869_v8 = vmul.f32 %v5253_v2, %v5253_v2  ;;  %v1939_v1 = vmul.f32 %v6870_v43, %v5253_v2 }
 0x1b9   : > { %v5257_v49 = vpop.eup %5256  ;;  %v2583_v63 = vadd.f32 %v2551_v56, %v2519_v24  ;;  %v2518_v23 = vmul.f32 %v7079_v4, %v2480_v39  ;;  %v2483_v50 = vmul.f32 %v5255_v27, %v5255_v27  ;;  %v2553_v41 = vmul.f32 %v6870_v43, %v5255_v27  ;;  %v5492_v56 = vld [vmem:[%s7946_s7 + $0x38] sm:$0xff] }
 0x1ba   : > { %v5259_v40 = vpop.eup %5258  ;;  %2033 = vst.msk [vmem:[%s6391_s20 + $0x1b8] sm:$0xff] %vm1379_vm2, %v2001_v33  ;;  %v1968_v11 = vadd.f32 %v1936_v47, %v1904_v59  ;;  %v1907_v60 = vmul.f32 %v7142_v53, %v1869_v8  ;;  %v1868_v51 = vmul.f32 %v5257_v49, %v5257_v49  ;;  %v1938_v45 = vmul.f32 %v6870_v43, %v5257_v49 }
 0x1bb   : > { %v5261_v13 = vpop.eup %5260  ;;  %v2615_v31 = vadd.f32 %v5492_v56, %v2583_v63  ;;  %v2582_v32 = vadd.f32 %v2550_v46, %v2518_v23  ;;  %v2521_v2 = vmul.f32 %v7079_v4, %v2483_v50  ;;  %v2482_v24 = vmul.f32 %v5259_v40, %v5259_v40  ;;  %v5493_v46 = vld [vmem:[%s7946_s7 + $0x30] sm:$0xff]  ;;  %v7286_v56 = vpop.f32.mrb[63].mxu1 }
 0x1bc   : > { %v5263_v39 = vpop.eup %5262  ;;  %v2000_v47 = vadd.f32 %v1968_v11, %v7085_v22  ;;  %v1971_v27 = vadd.f32 %v1939_v1, %v1907_v60  ;;  %v1906_v33 = vmul.f32 %v7142_v53, %v1868_v51  ;;  %v2552_v59 = vmul.f32 %v6870_v43, %v5259_v40  ;;  %v7293_v1 = vld [vmem:[%s7946_s7 + $0xc8] sm:$0xff] }
 0x1bd   : > { %v5265_v8 = vpop.eup %5264  ;;  %2647 = vst.msk [vmem:[%s6391_s20 + $0x238] sm:$0xff] %vm1379_vm2, %v2615_v31  ;;  %v2614_v49 = vadd.f32 %v5493_v46, %v2582_v32  ;;  %v2585_v63 = vadd.f32 %v2553_v41, %v2521_v2  ;;  %v2520_v23 = vmul.f32 %v7079_v4, %v2482_v24  ;;  %v1871_v50 = vmul.f32 %v5261_v13, %v5261_v13  ;;  %v5495_v31 = vld [vmem:[%s7946_s7 + $0x48] sm:$0xff] }
 0x1be   : > { %v5267_v22 = vpop.eup %5266  ;;  %2032 = vst.msk [vmem:[%s6391_s20 + $0x1b0] sm:$0xff] %vm1379_vm2, %v2000_v47  ;;  %v2003_v40 = vadd.f32 %v7293_v1, %v1971_v27  ;;  %v1970_v11 = vadd.f32 %v1938_v45, %v1906_v33  ;;  %v1941_v60 = vmul.f32 %v6870_v43, %v5261_v13  ;;  %v2485_v41 = vmul.f32 %v5263_v39, %v5263_v39  ;;  %v7309_v45 = vld [vmem:[%s7946_s7 + $0xc0] sm:$0xff] }
 0x1bf   : > { %v5269_v51 = vpop.eup %5268  ;;  %2646 = vst.msk [vmem:[%s6391_s20 + $0x230] sm:$0xff] %vm1379_vm2, %v2614_v49  ;;  %v2617_v32 = vadd.f32 %v5495_v31, %v2585_v63  ;;  %v2584_v2 = vadd.f32 %v2552_v59, %v2520_v23  ;;  %v1909_v24 = vmul.f32 %v7142_v53, %v1871_v50  ;;  %v2555_v47 = vmul.f32 %v6870_v43, %v5263_v39  ;;  %v5497_v39 = vld [vmem:[%s7946_s7 + $0x40] sm:$0xff] }
 0x1c0   : > { %v5271_v27 = vpop.eup %5270  ;;  %2035 = vst.msk [vmem:[%s6391_s20 + $0x1c8] sm:$0xff] %vm1379_vm2, %v2003_v40  ;;  %v2002_v13 = vadd.f32 %v7309_v45, %v1970_v11  ;;  %v2523_v33 = vmul.f32 %v7079_v4, %v2485_v41  ;;  %v1870_v46 = vmul.f32 %v5265_v8, %v5265_v8  ;;  %v1940_v59 = vmul.f32 %v6870_v43, %v5265_v8 }
 0x1c1   : > { %v5273_v49 = vpop.eup %5272  ;;  %2649 = vst.msk [vmem:[%s6391_s20 + $0x248] sm:$0xff] %vm1379_vm2, %v2617_v32  ;;  %v2616_v63 = vadd.f32 %v5497_v39, %v2584_v2  ;;  %v1973_v23 = vadd.f32 %v1941_v60, %v1909_v24  ;;  %v2484_v50 = vmul.f32 %v5269_v51, %v5269_v51  ;;  %v2554_v40 = vmul.f32 %v6870_v43, %v5269_v51  ;;  %v7329_v32 = vld [vmem:[%s7946_s7 + $0xd8] sm:$0xff] }
 0x1c2   : > { %2034 = vst.msk [vmem:[%s6391_s20 + $0x1c0] sm:$0xff] %vm1379_vm2, %v2002_v13  ;;  %v2587_v11 = vadd.f32 %v2555_v47, %v2523_v33  ;;  %v1908_v41 = vmul.f32 %v7142_v53, %v1870_v46  ;;  %v1873_v31 = vmul.f32 %v5271_v27, %v5271_v27  ;;  %v1943_v8 = vmul.f32 %v6870_v43, %v5271_v27  ;;  %v5499_v47 = vld [vmem:[%s7946_s7 + $0x58] sm:$0xff] }
 0x1c3   : > { %2648 = vst.msk [vmem:[%s6391_s20 + $0x240] sm:$0xff] %vm1379_vm2, %v2616_v63  ;;  %v2005_v60 = vadd.f32 %v7329_v32, %v1973_v23  ;;  %v2522_v51 = vmul.f32 %v7079_v4, %v2484_v50  ;;  %v2389_v2 = vadd.f32 1.0, %v5267_v22  ;;  %v1774_v24 = vadd.f32 1.0, %v5273_v49  ;;  %v7344_v22 = vld [vmem:[%s7943_s4 + $0x2] ss:$0 sm:$0xff]  ;;  %v7358_v63 = vpop.f32.mrb[64].mxu1 }
 0x1c4   : > { %v2619_v13 = vadd.f32 %v5499_v47, %v2587_v11  ;;  %v1972_v43 = vadd.f32 %v1940_v59, %v1908_v41  ;;  %v1911_v27 = vmul.f32 %v7142_v53, %v1873_v31  ;;  %5274 = vpow2.f32 %v7225_v62  ;;  %v7353_v62 = vld [vmem:[%s7946_s7 + $0xd0] sm:$0xff]  ;;  %v7360_v23 = vpop.f32.mrb[58].mxu0  ;;  %v7369_v41 = vpop.f32.mrb[65].mxu1  ;;  %v7378_v31 = vld [vmem:[%s7946_s7 + $0xe8] sm:$0xff] }
 0x1c5   : > { %2037 = vst.msk [vmem:[%s6391_s20 + $0x1d8] sm:$0xff] %vm1379_vm2, %v2005_v60  ;;  %v2586_v33 = vadd.f32 %v2554_v40, %v2522_v51  ;;  %5276 = vrcp.f32 %v2389_v2  ;;  %v4081_v46 = vmul.f32 -1.442695, %v7242_v52  ;;  %v2202_v49 = vadd.f32 %v7344_v22, %v6777_v6  ;;  %v5502_v6 = vld [vmem:[%s7946_s7 + $0x50] sm:$0xff] }
 0x1c6   : > { %2651 = vst.msk [vmem:[%s6391_s20 + $0x258] sm:$0xff] %vm1379_vm2, %v2619_v13  ;;  %v2004_v59 = vadd.f32 %v7353_v62, %v1972_v43  ;;  %v1975_v39 = vadd.f32 %v1943_v8, %v1911_v27  ;;  %5278 = vrcp.f32 %v1774_v24  ;;  %v2796_v52 = vadd.f32 %v7238_v37, %v6779_v7  ;;  %v7371_v7 = vpop.f32.mrb[59].mxu0 }
 0x1c7   : > { %v2618_v50 = vadd.f32 %v5502_v6, %v2586_v33  ;;  %5280 = vpow2.f32 %v7227_v3  ;;  %v4084_v40 = vmul.f32 -1.442695, %v7246_v19  ;;  %v2217_v11 = vadd.f32 %v7344_v22, %v6794_v14 }
 0x1c8   : > { %2036 = vst.msk [vmem:[%s6391_s20 + $0x1d0] sm:$0xff] %vm1379_vm2, %v2004_v59  ;;  %v2007_v8 = vadd.f32 %v7378_v31, %v1975_v39  ;;  %5282 = vpow2.f32 %v7231_v54  ;;  %v4111_v3 = vmul.f32 -1.442695, %v7255_v35  ;;  %v2811_v14 = vadd.f32 %v6796_v15, %v7238_v37 }
 0x1c9   : > { %2650 = vst.msk [vmem:[%s6391_s20 + $0x250] sm:$0xff] %vm1379_vm2, %v2618_v50  ;;  %5284 = vpow2.f32 %v7233_v42  ;;  %v4083_v19 = vmul.f32 -1.442695, %v2202_v49  ;;  %v4110_v60 = vmul.f32 -1.442695, %v2796_v52  ;;  %v2212_v51 = vadd.f32 %v7344_v22, %v6798_v55 }
 0x1ca   : > { %2039 = vst.msk [vmem:[%s6391_s20 + $0x1e8] sm:$0xff] %vm1379_vm2, %v2007_v8  ;;  %5286 = vpow2.f32 %v4081_v46  ;;  %v4086_v2 = vmul.f32 -1.442695, %v2217_v11  ;;  %v2806_v54 = vadd.f32 %v7238_v37, %v6800_v26  ;;  %v4113_v35 = vmul.f32 -1.442695, %v2811_v14 }
 0x1cb   : > { %5288 = vpow2.f32 %v4084_v40  ;;  %v4085_v24 = vmul.f32 -1.442695, %v2212_v51  ;;  %v7398_v26 = vld [vmem:[%s7945_s6] ss:$0 sm:$0xff]  ;;  %v2227_v14 = vadd.f32 %v7344_v22, %v6803_v17 }
 0x1cc   : > { %5290 = vpow2.f32 %v4111_v3  ;;  %v4112_v13 = vmul.f32 -1.442695, %v2806_v54 }
 0x1cd   : > { %5292 = vpow2.f32 %v4083_v19 }
 0x1ce   : > { %v5275_v15 = vpop.eup %5274  ;;  %5294 = vpow2.f32 %v4110_v60 }
 0x1cf   : > { %v5277_v42 = vpop.eup %5276  ;;  %v2388_v47 = vadd.f32 1.0, %v5275_v15  ;;  %5296 = vpow2.f32 %v4086_v2  ;;  %v2821_v2 = vadd.f32 %v6839_v57, %v7238_v37 }
 0x1d0   : > { %v5279_v43 = vpop.eup %5278  ;;  %v2487_v27 = vmul.f32 %v5277_v42, %v5277_v42  ;;  %5298 = vpow2.f32 %v4113_v35  ;;  %v2557_v59 = vmul.f32 %v7398_v26, %v5277_v42  ;;  %v5505_v35 = vld [vmem:[%s7946_s7 + $0x68] sm:$0xff]  ;;  %v8013_v42 = vld [vmem:[#allocation21_spill] sm:$0xff] }
 0x1d1   : > { %v5281_v33 = vpop.eup %5280  ;;  %v1872_v55 = vmul.f32 %v5279_v43, %v5279_v43  ;;  %5300 = vrcp.f32 %v2388_v47  ;;  %v1942_v50 = vmul.f32 %v7398_v26, %v5279_v43  ;;  %v2222_v17 = vadd.f32 %v7344_v22, %v8013_v42 }
 0x1d2   : > { %v5283_v46 = vpop.eup %5282  ;;  %v2525_v49 = vmul.f32 %v7079_v4, %v2487_v27  ;;  %v1777_v39 = vadd.f32 1.0, %v5281_v33  ;;  %5302 = vpow2.f32 %v4085_v24  ;;  %v8014_v27 = vld [vmem:[#allocation22_spill] sm:$0xff] }
 0x1d3   : > { %v5285_v52 = vpop.eup %5284  ;;  %v1910_v6 = vmul.f32 %v7142_v53, %v1872_v55  ;;  %v2391_v40 = vadd.f32 1.0, %v5283_v46  ;;  %5304 = vpow2.f32 %v4112_v13  ;;  %v7415_v13 = vld [vmem:[%s7946_s7 + $0xe0] sm:$0xff]  ;;  %v2816_v33 = vadd.f32 %v7238_v37, %v8014_v27 }
 0x1d4   : > { %v5287_v11 = vpop.eup %5286  ;;  %v2589_v8 = vadd.f32 %v2557_v59, %v2525_v49  ;;  %5306 = vrcp.f32 %v1777_v39  ;;  %v1776_v3 = vadd.f32 1.0, %v5285_v52  ;;  %v2237_v49 = vadd.f32 %v7344_v22, %v6956_v29 }
 0x1d5   : > { %v5289_v19 = vpop.eup %5288  ;;  %v1974_v60 = vadd.f32 %v1942_v50, %v1910_v6  ;;  %5308 = vrcp.f32 %v2391_v40  ;;  %v2390_v51 = vadd.f32 1.0, %v5287_v11  ;;  %v2831_v52 = vadd.f32 %v6958_v12, %v7238_v37 }
 0x1d6   : > { %v5291_v54 = vpop.eup %5290  ;;  %v2621_v15 = vadd.f32 %v5505_v35, %v2589_v8  ;;  %5310 = vrcp.f32 %v1776_v3  ;;  %v2393_v24 = vadd.f32 1.0, %v5289_v19  ;;  %v4088_v40 = vmul.f32 -1.442695, %v2227_v14 }
 0x1d7   : > { %v5293_v47 = vpop.eup %5292  ;;  %v2006_v57 = vadd.f32 %v7415_v13, %v1974_v60  ;;  %5312 = vrcp.f32 %v2390_v51  ;;  %v2859_v43 = vadd.f32 1.0, %v5291_v54  ;;  %v4115_v11 = vmul.f32 -1.442695, %v2821_v2 }
 0x1d8   : > { %v5295_v55 = vpop.eup %5294  ;;  %2653 = vst.msk [vmem:[%s6391_s20 + $0x268] sm:$0xff] %vm1379_vm2, %v2621_v15  ;;  %5314 = vrcp.f32 %v2393_v24  ;;  %v2392_v46 = vadd.f32 1.0, %v5293_v47  ;;  %v7428_v19 = vmul.f32 -1.442695, %v2222_v17  ;;  %v7430_v60 = vmul.f32 -1.442695, %v2816_v33 }
 0x1d9   : > { %v5297_v59 = vpop.eup %5296  ;;  %2038 = vst.msk [vmem:[%s6391_s20 + $0x1e0] sm:$0xff] %vm1379_vm2, %v2006_v57  ;;  %5316 = vrcp.f32 %v2859_v43  ;;  %v2858_v39 = vadd.f32 1.0, %v5295_v55  ;;  %v7432_v54 = vmul.f32 -1.442695, %v2237_v49  ;;  %v7436_v12 = vadd.f32 %v7344_v22, %v6963_v48 }
 0x1da   : > { %v5299_v6 = vpop.eup %5298  ;;  %5318 = vrcp.f32 %v2392_v46  ;;  %v2395_v50 = vadd.f32 1.0, %v5297_v59  ;;  %v7438_v2 = vmul.f32 -1.442695, %v2831_v52  ;;  %v7442_v15 = vadd.f32 %v7238_v37, %v6965_v18  ;;  %v7457_v52 = vld [vmem:[%s7950_s11] ss:$0 sm:$0xff] }
 0x1db   : > { %v5301_v8 = vpop.eup %5300  ;;  %5320 = vrcp.f32 %v2858_v39  ;;  %v2861_v3 = vadd.f32 1.0, %v5299_v6  ;;  %v7449_v27 = vadd.f32 %v7344_v22, %v6987_v58  ;;  %v5507_v6 = vld [vmem:[%s7946_s7 + $0x60] sm:$0xff] }
 0x1dc   : > { %v5303_v29 = vpop.eup %5302  ;;  %v2486_v51 = vmul.f32 %v5301_v8, %v5301_v8  ;;  %5322 = vrcp.f32 %v2395_v50  ;;  %v2556_v17 = vmul.f32 %v7398_v26, %v5301_v8 }
 0x1dd   : > { %v5305_v35 = vpop.eup %5304  ;;  %5324 = vrcp.f32 %v2861_v3  ;;  %v2394_v14 = vadd.f32 1.0, %v5303_v29 }
 0x1de   : > { %v5307_v24 = vpop.eup %5306  ;;  %v2524_v42 = vmul.f32 %v7079_v4, %v2486_v51  ;;  %v2860_v47 = vadd.f32 1.0, %v5305_v35  ;;  %5326 = vpow2.f32 %v4088_v40 }
 0x1df   : > { %v5309_v57 = vpop.eup %5308  ;;  %v1875_v43 = vmul.f32 %v5307_v24, %v5307_v24  ;;  %v1945_v48 = vmul.f32 %v7398_v26, %v5307_v24  ;;  %5328 = vrcp.f32 %v2394_v14 }
 0x1e0   : > { %v5311_v33 = vpop.eup %5310  ;;  %v2588_v55 = vadd.f32 %v2556_v17, %v2524_v42  ;;  %v2489_v18 = vmul.f32 %v5309_v57, %v5309_v57  ;;  %v2559_v37 = vmul.f32 %v7398_v26, %v5309_v57  ;;  %5330 = vrcp.f32 %v2860_v47 }
 0x1e1   : > { %v5313_v46 = vpop.eup %5312  ;;  %v1913_v49 = vmul.f32 %v7142_v53, %v1875_v43  ;;  %v1874_v59 = vmul.f32 %v5311_v33, %v5311_v33  ;;  %v1944_v39 = vmul.f32 %v7398_v26, %v5311_v33  ;;  %5332 = vpow2.f32 %v4115_v11  ;;  %v7469_v11 = vld [vmem:[%s7949_s10] ss:$0 sm:$0xff] }
 0x1e2   : > { %v5315_v58 = vpop.eup %5314  ;;  %v2620_v50 = vadd.f32 %v5507_v6, %v2588_v55  ;;  %v2527_v40 = vmul.f32 %v7079_v4, %v2489_v18  ;;  %v2488_v8 = vmul.f32 %v5313_v46, %v5313_v46  ;;  %v2558_v3 = vmul.f32 %v7398_v26, %v5313_v46 }
 0x1e3   : > { %v5317_v29 = vpop.eup %5316  ;;  %v1977_v51 = vadd.f32 %v1945_v48, %v1913_v49  ;;  %v1912_v35 = vmul.f32 %v7142_v53, %v1874_v59  ;;  %v2491_v14 = vmul.f32 %v5315_v58, %v5315_v58  ;;  %v2561_v24 = vmul.f32 %v7398_v26, %v5315_v58  ;;  %v7478_v53 = vld [vmem:[%s7946_s7 + $0xf8] sm:$0xff] }
 0x1e4   : > { %v5319_v42 = vpop.eup %5318  ;;  %2652 = vst.msk [vmem:[%s6391_s20 + $0x260] sm:$0xff] %vm1379_vm2, %v2620_v50  ;;  %v2591_v17 = vadd.f32 %v2559_v37, %v2527_v40  ;;  %v2526_v47 = vmul.f32 %v7079_v4, %v2488_v8  ;;  %v2884_v57 = vmul.f32 %v5317_v29, %v5317_v29  ;;  %v2912_v43 = vmul.f32 %v5317_v29, %v7457_v52  ;;  %v5509_v49 = vld [vmem:[%s7946_s7 + $0x78] sm:$0xff] }
 0x1e5   : > { %v5321_v48 = vpop.eup %5320  ;;  %v2009_v33 = vadd.f32 %v7478_v53, %v1977_v51  ;;  %v1976_v55 = vadd.f32 %v1944_v39, %v1912_v35  ;;  %v2529_v18 = vmul.f32 %v7079_v4, %v2491_v14  ;;  %v2490_v46 = vmul.f32 %v5319_v42, %v5319_v42  ;;  %v7492_v39 = vld [vmem:[%s7946_s7 + $0xf0] sm:$0xff] }
 0x1e6   : > { %v5323_v37 = vpop.eup %5322  ;;  %v2623_v59 = vadd.f32 %v5509_v49, %v2591_v17  ;;  %v2590_v58 = vadd.f32 %v2558_v3, %v2526_v47  ;;  %v2898_v6 = vmul.f32 %v7469_v11, %v2884_v57  ;;  %v2560_v50 = vmul.f32 %v7398_v26, %v5319_v42  ;;  %v7498_v3 = vld [vmem:[%s7951_s12 + $0x8] sm:$0xff]  ;;  %v5511_v42 = vld [vmem:[%s7946_s7 + $0x70] sm:$0xff] }
 0x1e7   : > { %v5325_v40 = vpop.eup %5324  ;;  %2041 = vst.msk [vmem:[%s6391_s20 + $0x1f8] sm:$0xff] %vm1379_vm2, %v2009_v33  ;;  %v2008_v8 = vadd.f32 %v7492_v39, %v1976_v55  ;;  %v2593_v29 = vadd.f32 %v2561_v24, %v2529_v18  ;;  %v2528_v51 = vmul.f32 %v7079_v4, %v2490_v46  ;;  %v2883_v35 = vmul.f32 %v5321_v48, %v5321_v48  ;;  %v5512_v55 = vld [vmem:[%s7946_s7 + $0x88] sm:$0xff] }
 0x1e8   : > { %v5327_v14 = vpop.eup %5326  ;;  %2655 = vst.msk [vmem:[%s6391_s20 + $0x278] sm:$0xff] %vm1379_vm2, %v2623_v59  ;;  %v2622_v17 = vadd.f32 %v5511_v42, %v2590_v58  ;;  %v2920_v47 = vadd.f32 %v2912_v43, %v2898_v6  ;;  %v2911_v24 = vmul.f32 %v5321_v48, %v7457_v52  ;;  %v2493_v57 = vmul.f32 %v5323_v37, %v5323_v37  ;;  %v7520_v48 = vld [vmem:[%s7951_s12] sm:$0xff] }
 0x1e9   : > { %v5329_v33 = vpop.eup %5328  ;;  %2040 = vst.msk [vmem:[%s6391_s20 + $0x1f0] sm:$0xff] %vm1379_vm2, %v2008_v8  ;;  %v2625_v18 = vadd.f32 %v5512_v55, %v2593_v29  ;;  %v2592_v46 = vadd.f32 %v2560_v50, %v2528_v51  ;;  %v2897_v49 = vmul.f32 %v7469_v11, %v2883_v35  ;;  %v2563_v59 = vmul.f32 %v7398_v26, %v5323_v37  ;;  %v5513_v37 = vld [vmem:[%s7946_s7 + $0x80] sm:$0xff] }
 0x1ea   : > { %v5331_v58 = vpop.eup %5330  ;;  %2654 = vst.msk [vmem:[%s6391_s20 + $0x270] sm:$0xff] %vm1379_vm2, %v2622_v17  ;;  %v2928_v43 = vadd.f32 %v2920_v47, %v7498_v3  ;;  %v2531_v6 = vmul.f32 %v7079_v4, %v2493_v57  ;;  %v2886_v8 = vmul.f32 %v5325_v40, %v5325_v40  ;;  %v2914_v50 = vmul.f32 %v5325_v40, %v7457_v52 }
 0x1eb   : > { %v5333_v29 = vpop.eup %5332  ;;  %2657 = vst.msk [vmem:[%s6391_s20 + $0x288] sm:$0xff] %vm1379_vm2, %v2625_v18  ;;  %v2624_v51 = vadd.f32 %v5513_v37, %v2592_v46  ;;  %v2919_v35 = vadd.f32 %v2911_v24, %v2897_v49  ;;  %v2492_v42 = vmul.f32 %v5329_v33, %v5329_v33  ;;  %v2562_v17 = vmul.f32 %v7398_v26, %v5329_v33  ;;  %v7537_v18 = vld [vmem:[%s7948_s9 + $0x1] ss:$0 sm:$0xff]  ;;  %v7545_v33 = vld [vmem:[%s7951_s12 + $0x18] sm:$0xff] }
 0x1ec   : > { %2936 = vst.msk [vmem:[%s6391_s20 + $0x308] sm:$0xff] %vm1379_vm2, %v2928_v43  ;;  %v2595_v47 = vadd.f32 %v2563_v59, %v2531_v6  ;;  %v2900_v57 = vmul.f32 %v7469_v11, %v2886_v8  ;;  %v2885_v55 = vmul.f32 %v5331_v58, %v5331_v58  ;;  %v2913_v40 = vmul.f32 %v5331_v58, %v7457_v52  ;;  %v5514_v58 = vld [vmem:[%s7946_s7 + $0x98] sm:$0xff] }
 0x1ed   : > { %2656 = vst.msk [vmem:[%s6391_s20 + $0x280] sm:$0xff] %vm1379_vm2, %v2624_v51  ;;  %v2927_v24 = vadd.f32 %v2919_v35, %v7520_v48  ;;  %v2530_v46 = vmul.f32 %v7079_v4, %v2492_v42  ;;  %v2397_v49 = vadd.f32 1.0, %v5327_v14  ;;  %v2863_v59 = vadd.f32 1.0, %v5333_v29  ;;  %v7558_v4 = vld [vmem:[%s7951_s12 + $0x10] sm:$0xff]  ;;  %v8015_v29 = vld [vmem:[#allocation23_spill] sm:$0xff] }
 0x1ee   : > { %v2627_v43 = vadd.f32 %v5514_v58, %v2595_v47  ;;  %v2922_v6 = vadd.f32 %v2914_v50, %v2900_v57  ;;  %v2899_v8 = vmul.f32 %v7469_v11, %v2885_v55  ;;  %5334 = vpow2.f32 %v7428_v19  ;;  %v8016_v35 = vld [vmem:[#allocation24_spill] sm:$0xff]  ;;  %v8017_v57 = vld [vmem:[#allocation25_spill] sm:$0xff] }
 0x1ef   : > { %2935 = vst.msk [vmem:[%s6391_s20 + $0x300] sm:$0xff] %vm1379_vm2, %v2927_v24  ;;  %v2594_v37 = vadd.f32 %v2562_v17, %v2530_v46  ;;  %5336 = vrcp.f32 %v2397_v49  ;;  %v4089_v14 = vmul.f32 -1.442695, %v7436_v12  ;;  %v3032_v51 = vadd.f32 %v8015_v29, %v7537_v18  ;;  %v5515_v17 = vld [vmem:[%s7946_s7 + $0x90] sm:$0xff]  ;;  %v8018_v46 = vld [vmem:[#allocation2_spill] sm:$0xff] }
 0x1f0   : > { %2659 = vst.msk [vmem:[%s6391_s20 + $0x298] sm:$0xff] %vm1379_vm2, %v2627_v43  ;;  %v2930_v19 = vadd.f32 %v2922_v6, %v7545_v33  ;;  %v2921_v50 = vadd.f32 %v2913_v40, %v2899_v8  ;;  %5338 = vrcp.f32 %v2863_v59  ;;  %v2242_v42 = vadd.f32 %v7344_v22, %v8016_v35  ;;  %v8019_v59 = vld [vmem:[#allocation26_spill] sm:$0xff] }
 0x1f1   : > { %v2626_v47 = vadd.f32 %v5515_v17, %v2594_v37  ;;  %5340 = vpow2.f32 %v7430_v60  ;;  %v4116_v12 = vmul.f32 -1.442695, %v7442_v15  ;;  %v3027_v55 = vadd.f32 %v7537_v18, %v8017_v57  ;;  %v7594_v17 = vld [vmem:[%s7944_s5 + $0x2] ss:$0 sm:$0xff] }
 0x1f2   : > { %2938 = vst.msk [vmem:[%s6391_s20 + $0x318] sm:$0xff] %vm1379_vm2, %v2930_v19  ;;  %v2929_v40 = vadd.f32 %v2921_v50, %v7558_v4  ;;  %5342 = vpow2.f32 %v7432_v54  ;;  %v4092_v24 = vmul.f32 -1.442695, %v7449_v27  ;;  %v2257_v49 = vadd.f32 %v7344_v22, %v8018_v46  ;;  %v8020_v54 = vld [vmem:[#allocation27_spill] sm:$0xff] }
 0x1f3   : > { %2658 = vst.msk [vmem:[%s6391_s20 + $0x290] sm:$0xff] %vm1379_vm2, %v2626_v47  ;;  %5344 = vpow2.f32 %v7438_v2  ;;  %v4139_v60 = vmul.f32 -1.442695, %v3032_v51  ;;  %v4091_v15 = vmul.f32 -1.442695, %v2242_v42  ;;  %v3042_v58 = vadd.f32 %v8019_v59, %v7537_v18 }
 0x1f4   : > { %2937 = vst.msk [vmem:[%s6391_s20 + $0x310] sm:$0xff] %vm1379_vm2, %v2929_v40  ;;  %5346 = vpow2.f32 %v4089_v14  ;;  %v4138_v43 = vmul.f32 -1.442695, %v3027_v55  ;;  %v2252_v27 = vadd.f32 %v7344_v22, %v8020_v54  ;;  %v4094_v6 = vmul.f32 -1.442695, %v2257_v49 }
 0x1f5   : > { %5348 = vpow2.f32 %v4116_v12  ;;  %v4141_v37 = vmul.f32 -1.442695, %v3042_v58  ;;  %v8021_v58 = vld [vmem:[#allocation28_spill] sm:$0xff] }
 0x1f6   : > { %5350 = vpow2.f32 %v4092_v24  ;;  %v4093_v51 = vmul.f32 -1.442695, %v2252_v27 }
 0x1f7   : > { %5352 = vpow2.f32 %v4139_v60 }
 0x1f8   : > { %v5335_v8 = vpop.eup %5334  ;;  %5354 = vpow2.f32 %v4091_v15  ;;  %v7603_v15 = vld [vmem:[%s7951_s12 + $0x28] sm:$0xff] }
 0x1f9   : > { %v5337_v2 = vpop.eup %5336  ;;  %v2396_v29 = vadd.f32 1.0, %v5335_v8  ;;  %5356 = vpow2.f32 %v4138_v43  ;;  %v3037_v43 = vadd.f32 %v7537_v18, %v8021_v58  ;;  %v8022_v8 = vld [vmem:[#allocation3_spill] sm:$0xff] }
 0x1fa   : > { %v5339_v14 = vpop.eup %5338  ;;  %v2495_v19 = vmul.f32 %v5337_v2, %v5337_v2  ;;  %5358 = vpow2.f32 %v4094_v6  ;;  %v2565_v12 = vmul.f32 %v7398_v26, %v5337_v2 }
 0x1fb   : > { %v5341_v50 = vpop.eup %5340  ;;  %v2888_v35 = vmul.f32 %v5339_v14, %v5339_v14  ;;  %5360 = vrcp.f32 %v2396_v29  ;;  %v2916_v24 = vmul.f32 %v5339_v14, %v7457_v52  ;;  %v5517_v29 = vld [vmem:[%s7946_s7 + $0xa8] sm:$0xff] }
 0x1fc   : > { %v5343_v42 = vpop.eup %5342  ;;  %v2533_v47 = vmul.f32 %v7594_v17, %v2495_v19  ;;  %v2862_v57 = vadd.f32 1.0, %v5341_v50  ;;  %5362 = vpow2.f32 %v4141_v37  ;;  %v2267_v37 = vadd.f32 %v7344_v22, %v8022_v8  ;;  %v8023_v19 = vld [vmem:[#allocation4_spill] sm:$0xff] }
 0x1fd   : > { %v5345_v55 = vpop.eup %5344  ;;  %v2902_v40 = vmul.f32 %v7469_v11, %v2888_v35  ;;  %v2399_v46 = vadd.f32 1.0, %v5343_v42  ;;  %5364 = vpow2.f32 %v4093_v51  ;;  %v3052_v50 = vadd.f32 %v8023_v19, %v7537_v18 }
 0x1fe   : > { %v5347_v49 = vpop.eup %5346  ;;  %v2597_v60 = vadd.f32 %v2565_v12, %v2533_v47  ;;  %5366 = vrcp.f32 %v2862_v57  ;;  %v2865_v59 = vadd.f32 1.0, %v5345_v55  ;;  %v2262_v12 = vadd.f32 %v7344_v22, %v7110_v36 }
 0x1ff   : > { %v5349_v54 = vpop.eup %5348  ;;  %v2924_v27 = vadd.f32 %v2916_v24, %v2902_v40  ;;  %5368 = vrcp.f32 %v2399_v46  ;;  %v2398_v6 = vadd.f32 1.0, %v5347_v49  ;;  %v3047_v40 = vadd.f32 %v7537_v18, %v7124_v28 }
 0x200   : > { %v5351_v2 = vpop.eup %5350  ;;  %v2629_v51 = vadd.f32 %v5517_v29, %v2597_v60  ;;  %5370 = vrcp.f32 %v2865_v59  ;;  %v2864_v14 = vadd.f32 1.0, %v5349_v54  ;;  %v2277_v24 = vadd.f32 %v7344_v22, %v7148_v21 }
 0x201   : > { %v5353_v35 = vpop.eup %5352  ;;  %v2932_v42 = vadd.f32 %v2924_v27, %v7603_v15  ;;  %5372 = vrcp.f32 %v2398_v6  ;;  %v2401_v47 = vadd.f32 1.0, %v5351_v2  ;;  %v4140_v36 = vmul.f32 -1.442695, %v3037_v43 }
 0x202   : > { %v5355_v57 = vpop.eup %5354  ;;  %2661 = vst.msk [vmem:[%s6391_s20 + $0x2a8] sm:$0xff] %vm1379_vm2, %v2629_v51  ;;  %5374 = vrcp.f32 %v2864_v14  ;;  %v3090_v55 = vadd.f32 1.0, %v5353_v35  ;;  %v4096_v58 = vmul.f32 -1.442695, %v2267_v37  ;;  %v7625_v6 = vmul.f32 -1.442695, %v3052_v50 }
 0x203   : > { %v5357_v46 = vpop.eup %5356  ;;  %2940 = vst.msk [vmem:[%s6391_s20 + $0x328] sm:$0xff] %vm1379_vm2, %v2932_v42  ;;  %5376 = vrcp.f32 %v2401_v47  ;;  %v2400_v49 = vadd.f32 1.0, %v5355_v57  ;;  %v7627_v8 = vmul.f32 -1.442695, %v2262_v12  ;;  %v7629_v21 = vmul.f32 -1.442695, %v3047_v40 }
 0x204   : > { %v5359_v60 = vpop.eup %5358  ;;  %5378 = vrcp.f32 %v3090_v55  ;;  %v3089_v59 = vadd.f32 1.0, %v5357_v46  ;;  %v7631_v29 = vmul.f32 -1.442695, %v2277_v24  ;;  %v7635_v43 = vadd.f32 %v7150_v61, %v7537_v18 }
 0x205   : > { %v5361_v54 = vpop.eup %5360  ;;  %5380 = vrcp.f32 %v2400_v49  ;;  %v2403_v27 = vadd.f32 1.0, %v5359_v60  ;;  %v7639_v37 = vadd.f32 %v7344_v22, %v7157_v44  ;;  %v7646_v61 = vadd.f32 %v7537_v18, %v7159_v38  ;;  %v5518_v38 = vld [vmem:[%s7946_s7 + $0xa0] sm:$0xff] }
 0x206   : > { %v5363_v28 = vpop.eup %5362  ;;  %v2494_v2 = vmul.f32 %v5361_v54, %v5361_v54  ;;  %5382 = vrcp.f32 %v3089_v59  ;;  %v2564_v35 = vmul.f32 %v7398_v26, %v5361_v54 }
 0x207   : > { %v5365_v51 = vpop.eup %5364  ;;  %5384 = vrcp.f32 %v2403_v27  ;;  %v3092_v14 = vadd.f32 1.0, %v5363_v28 }
 0x208   : > { %v5367_v19 = vpop.eup %5366  ;;  %v2532_v50 = vmul.f32 %v7594_v17, %v2494_v2  ;;  %v2402_v42 = vadd.f32 1.0, %v5365_v51  ;;  %5386 = vpow2.f32 %v4140_v36  ;;  %v7657_v36 = vld [vmem:[%s7951_s12 + $0x20] sm:$0xff] }
 0x209   : > { %v5369_v47 = vpop.eup %5368  ;;  %v2887_v12 = vmul.f32 %v5367_v19, %v5367_v19  ;;  %v2915_v57 = vmul.f32 %v5367_v19, %v7457_v52  ;;  %5388 = vrcp.f32 %v3092_v14 }
 0x20a   : > { %v5371_v55 = vpop.eup %5370  ;;  %v2596_v40 = vadd.f32 %v2564_v35, %v2532_v50  ;;  %v2497_v44 = vmul.f32 %v5369_v47, %v5369_v47  ;;  %v2567_v22 = vmul.f32 %v7398_v26, %v5369_v47  ;;  %5390 = vrcp.f32 %v2402_v42  ;;  %v7668_v42 = vld [vmem:[%s7951_s12 + $0x38] sm:$0xff] }
 0x20b   : > { %v5373_v24 = vpop.eup %5372  ;;  %v2901_v46 = vmul.f32 %v7469_v11, %v2887_v12  ;;  %v2890_v49 = vmul.f32 %v5371_v55, %v5371_v55  ;;  %v2918_v60 = vmul.f32 %v5371_v55, %v7457_v52  ;;  %5392 = vpow2.f32 %v4096_v58  ;;  %v7675_v55 = vld [vmem:[%s7949_s10 + $0x1] ss:$0 sm:$0xff] }
 0x20c   : > { %v5375_v59 = vpop.eup %5374  ;;  %v2628_v18 = vadd.f32 %v5518_v38, %v2596_v40  ;;  %v2535_v54 = vmul.f32 %v7594_v17, %v2497_v44  ;;  %v2496_v27 = vmul.f32 %v5373_v24, %v5373_v24  ;;  %v2566_v28 = vmul.f32 %v7398_v26, %v5373_v24 }
 0x20d   : > { %v5377_v2 = vpop.eup %5376  ;;  %v2923_v51 = vadd.f32 %v2915_v57, %v2901_v46  ;;  %v2904_v58 = vmul.f32 %v7469_v11, %v2890_v49  ;;  %v2889_v14 = vmul.f32 %v5375_v59, %v5375_v59  ;;  %v2917_v19 = vmul.f32 %v5375_v59, %v7457_v52  ;;  %v5519_v59 = vld [vmem:[%s7946_s7 + $0xb8] sm:$0xff] }
 0x20e   : > { %v5379_v50 = vpop.eup %5378  ;;  %2660 = vst.msk [vmem:[%s6391_s20 + $0x2a0] sm:$0xff] %vm1379_vm2, %v2628_v18  ;;  %v2599_v35 = vadd.f32 %v2567_v22, %v2535_v54  ;;  %v2534_v47 = vmul.f32 %v7594_v17, %v2496_v27  ;;  %v2499_v12 = vmul.f32 %v5377_v2, %v5377_v2  ;;  %v2569_v57 = vmul.f32 %v7398_v26, %v5377_v2  ;;  %v7685_v54 = vld [vmem:[%s7951_s12 + $0x30] sm:$0xff] }
 0x20f   : > { %v5381_v40 = vpop.eup %5380  ;;  %v2931_v44 = vadd.f32 %v2923_v51, %v7657_v36  ;;  %v2926_v22 = vadd.f32 %v2918_v60, %v2904_v58  ;;  %v2903_v24 = vmul.f32 %v7469_v11, %v2889_v14  ;;  %v3116_v46 = vmul.f32 %v5379_v50, %v5379_v50 }
 0x210   : > { %v5383_v49 = vpop.eup %5382  ;;  %v2631_v38 = vadd.f32 %v5519_v59, %v2599_v35  ;;  %v2598_v18 = vadd.f32 %v2566_v28, %v2534_v47  ;;  %v2537_v27 = vmul.f32 %v7594_v17, %v2499_v12  ;;  %v3138_v60 = vmul.f32 %v5379_v50, %v7457_v52  ;;  %v5520_v35 = vld [vmem:[%s7946_s7 + $0xb0] sm:$0xff] }
 0x211   : > { %v5385_v11 = vpop.eup %5384  ;;  %2939 = vst.msk [vmem:[%s6391_s20 + $0x320] sm:$0xff] %vm1379_vm2, %v2931_v44  ;;  %v2934_v2 = vadd.f32 %v2926_v22, %v7668_v42  ;;  %v2925_v51 = vadd.f32 %v2917_v19, %v2903_v24  ;;  %v3130_v58 = vmul.f32 %v7675_v55, %v3116_v46  ;;  %v2498_v28 = vmul.f32 %v5381_v40, %v5381_v40 }
 0x212   : > { %v5387_v14 = vpop.eup %5386  ;;  %2663 = vst.msk [vmem:[%s6391_s20 + $0x2b8] sm:$0xff] %vm1379_vm2, %v2631_v38  ;;  %v2630_v47 = vadd.f32 %v5520_v35, %v2598_v18  ;;  %v2601_v12 = vadd.f32 %v2569_v57, %v2537_v27  ;;  %v2568_v50 = vmul.f32 %v7398_v26, %v5381_v40  ;;  %v3115_v44 = vmul.f32 %v5383_v49, %v5383_v49 }
 0x213   : > { %v5389_v59 = vpop.eup %5388  ;;  %2942 = vst.msk [vmem:[%s6391_s20 + $0x338] sm:$0xff] %vm1379_vm2, %v2934_v2  ;;  %v2933_v19 = vadd.f32 %v2925_v51, %v7685_v54  ;;  %v3146_v22 = vadd.f32 %v3138_v60, %v3130_v58  ;;  %v2536_v24 = vmul.f32 %v7594_v17, %v2498_v28  ;;  %v3137_v46 = vmul.f32 %v5383_v49, %v7457_v52 }
 0x214   : > { %v5391_v38 = vpop.eup %5390  ;;  %2662 = vst.msk [vmem:[%s6391_s20 + $0x2b0] sm:$0xff] %vm1379_vm2, %v2630_v47  ;;  %v2633_v57 = vadd.f32 %v7293_v1, %v2601_v12  ;;  %v3129_v40 = vmul.f32 %v7675_v55, %v3115_v44  ;;  %v2501_v18 = vmul.f32 %v5385_v11, %v5385_v11  ;;  %v2571_v27 = vmul.f32 %v7398_v26, %v5385_v11  ;;  %v7720_v11 = vld [vmem:[%s7948_s9 + $0x2] ss:$0 sm:$0xff] }
 0x215   : > { %v5393_v2 = vpop.eup %5392  ;;  %2941 = vst.msk [vmem:[%s6391_s20 + $0x330] sm:$0xff] %vm1379_vm2, %v2933_v19  ;;  %v3154_v60 = vadd.f32 %v3146_v22, %v7498_v3  ;;  %v2600_v51 = vadd.f32 %v2568_v50, %v2536_v24  ;;  %v3118_v58 = vmul.f32 %v5389_v59, %v5389_v59  ;;  %v3140_v49 = vmul.f32 %v5389_v59, %v7457_v52  ;;  %v4176_v19 = vld [vmem:[%s7953_s14] ss:$0 sm:$0xff] }
 0x216   : > { %2665 = vst.msk [vmem:[%s6391_s20 + $0x2c8] sm:$0xff] %vm1379_vm2, %v2633_v57  ;;  %v3145_v28 = vadd.f32 %v3137_v46, %v3129_v40  ;;  %v2539_v1 = vmul.f32 %v7594_v17, %v2501_v18  ;;  %v2500_v35 = vmul.f32 %v5391_v38, %v5391_v38  ;;  %v2570_v47 = vmul.f32 %v7398_v26, %v5391_v38 }
 0x217   : > { %3162 = vst.msk [vmem:[%s6391_s20 + $0x348] sm:$0xff] %vm1379_vm2, %v3154_v60  ;;  %v2632_v12 = vadd.f32 %v7309_v45, %v2600_v51  ;;  %v3132_v50 = vmul.f32 %v7675_v55, %v3118_v58  ;;  %v3091_v44 = vadd.f32 1.0, %v5387_v14  ;;  %v2405_v59 = vadd.f32 1.0, %v5393_v2 }
 0x218   : > { %v3153_v22 = vadd.f32 %v3145_v28, %v7520_v48  ;;  %v2603_v24 = vadd.f32 %v2571_v27, %v2539_v1  ;;  %v2538_v46 = vmul.f32 %v7594_v17, %v2500_v35  ;;  %5394 = vpow2.f32 %v7625_v6 }
 0x219   : > { %2664 = vst.msk [vmem:[%s6391_s20 + $0x2c0] sm:$0xff] %vm1379_vm2, %v2632_v12  ;;  %v3148_v38 = vadd.f32 %v3140_v49, %v3132_v50  ;;  %5396 = vrcp.f32 %v3091_v44  ;;  %v4145_v45 = vmul.f32 -1.442695, %v7635_v43  ;;  %v3258_v14 = vadd.f32 %v7182_v16, %v7720_v11 }
 0x21a   : > { %3161 = vst.msk [vmem:[%s6391_s20 + $0x340] sm:$0xff] %vm1379_vm2, %v3153_v22  ;;  %v2635_v57 = vadd.f32 %v7329_v32, %v2603_v24  ;;  %v2602_v40 = vadd.f32 %v2570_v47, %v2538_v46  ;;  %5398 = vrcp.f32 %v2405_v59  ;;  %v3495_v18 = vadd.f32 %v7184_v20, %v4176_v19 }
 0x21b   : > { %v3156_v6 = vadd.f32 %v3148_v38, %v7545_v33  ;;  %5400 = vpow2.f32 %v7627_v8  ;;  %v4097_v27 = vmul.f32 -1.442695, %v7639_v37  ;;  %v3253_v43 = vadd.f32 %v7720_v11, %v7193_v0 }
 0x21c   : > { %2667 = vst.msk [vmem:[%s6391_s20 + $0x2d8] sm:$0xff] %vm1379_vm2, %v2635_v57  ;;  %v2634_v16 = vadd.f32 %v7353_v62, %v2602_v40  ;;  %5402 = vpow2.f32 %v7629_v21  ;;  %v4144_v32 = vmul.f32 -1.442695, %v7646_v61  ;;  %v3490_v2 = vadd.f32 %v4176_v19, %v7195_v9 }
 0x21d   : > { %3164 = vst.msk [vmem:[%s6391_s20 + $0x358] sm:$0xff] %vm1379_vm2, %v3156_v6  ;;  %5404 = vpow2.f32 %v7631_v29  ;;  %v4167_v20 = vmul.f32 -1.442695, %v3258_v14  ;;  %v4178_v8 = vmul.f32 -1.442695, %v3495_v18  ;;  %v3268_v0 = vadd.f32 %v7223_v25, %v7720_v11 }
 0x21e   : > { %2666 = vst.msk [vmem:[%s6391_s20 + $0x2d0] sm:$0xff] %vm1379_vm2, %v2634_v16  ;;  %5406 = vpow2.f32 %v4145_v45  ;;  %v4166_v62 = vmul.f32 -1.442695, %v3253_v43  ;;  %v3263_v21 = vadd.f32 %v7720_v11, %v7229_v30  ;;  %v4177_v37 = vmul.f32 -1.442695, %v3490_v2 }
 0x21f   : > { %5408 = vpow2.f32 %v4097_v27  ;;  %v4169_v61 = vmul.f32 -1.442695, %v3268_v0  ;;  %v3278_v14 = vadd.f32 %v7250_v5, %v7720_v11  ;;  %v3273_v6 = vadd.f32 %v7720_v11, %v7257_v34 }
 0x220   : > { %5410 = vpow2.f32 %v4144_v32  ;;  %v4168_v51 = vmul.f32 -1.442695, %v3263_v21  ;;  %v3288_v32 = vadd.f32 %v7265_v10, %v7720_v11  ;;  %v4220_v10 = vld [vmem:[%s7953_s14 + $0x2] ss:$0 sm:$0xff] }
 0x221   : > { %5412 = vpow2.f32 %v4167_v20  ;;  %v4198_v20 = vld [vmem:[%s7953_s14 + $0x1] ss:$0 sm:$0xff]  ;;  %v4171_v21 = vmul.f32 -1.442695, %v3278_v14 }
 0x222   : > { %v5395_v9 = vpop.eup %5394  ;;  %5414 = vpow2.f32 %v4178_v8 }
 0x223   : > { %v5397_v29 = vpop.eup %5396  ;;  %v3094_v60 = vadd.f32 1.0, %v5395_v9  ;;  %5416 = vpow2.f32 %v4166_v62 }
 0x224   : > { %v5399_v58 = vpop.eup %5398  ;;  %v3117_v49 = vmul.f32 %v5397_v29, %v5397_v29  ;;  %5418 = vpow2.f32 %v4177_v37  ;;  %v3139_v30 = vmul.f32 %v5397_v29, %v7457_v52  ;;  %v4170_v37 = vmul.f32 -1.442695, %v3273_v6 }
 0x225   : > { %v5401_v28 = vpop.eup %5400  ;;  %v2503_v25 = vmul.f32 %v5399_v58, %v5399_v58  ;;  %5420 = vrcp.f32 %v3094_v60  ;;  %v2573_v44 = vmul.f32 %v7398_v26, %v5399_v58  ;;  %v7785_v29 = vmul.f32 -1.442695, %v3288_v32 }
 0x226   : > { %v5403_v1 = vpop.eup %5402  ;;  %v3131_v35 = vmul.f32 %v7675_v55, %v3117_v49  ;;  %v2404_v47 = vadd.f32 1.0, %v5401_v28  ;;  %5422 = vpow2.f32 %v4169_v61  ;;  %v3632_v60 = vadd.f32 %v7358_v63, %v4198_v20 }
 0x227   : > { %v5405_v12 = vpop.eup %5404  ;;  %v2541_v50 = vmul.f32 %v7594_v17, %v2503_v25  ;;  %v3093_v59 = vadd.f32 1.0, %v5403_v1  ;;  %5424 = vpow2.f32 %v4168_v51  ;;  %v7797_v1 = vadd.f32 %v4220_v10, %v7371_v7 }
 0x228   : > { %v5407_v19 = vpop.eup %5406  ;;  %v3147_v22 = vadd.f32 %v3139_v30, %v3131_v35  ;;  %5426 = vrcp.f32 %v2404_v47  ;;  %v2407_v24 = vadd.f32 1.0, %v5405_v12 }
 0x229   : > { %v5409_v46 = vpop.eup %5408  ;;  %v2605_v38 = vadd.f32 %v2573_v44, %v2541_v50  ;;  %5428 = vrcp.f32 %v3093_v59  ;;  %v3096_v45 = vadd.f32 1.0, %v5407_v19  ;;  %v7802_v50 = vmul.f32 -1.442695, %v3632_v60 }
 0x22a   : > { %v5411_v57 = vpop.eup %5410  ;;  %v3155_v40 = vadd.f32 %v3147_v22, %v7558_v4  ;;  %5430 = vrcp.f32 %v2407_v24  ;;  %v2406_v18 = vadd.f32 1.0, %v5409_v46 }
 0x22b   : > { %v5413_v27 = vpop.eup %5412  ;;  %v2637_v43 = vadd.f32 %v7378_v31, %v2605_v38  ;;  %5432 = vrcp.f32 %v3096_v45  ;;  %v3095_v16 = vadd.f32 1.0, %v5411_v57  ;;  %v3283_v31 = vadd.f32 %v7720_v11, %v7286_v56 }
 0x22c   : > { %v5415_v2 = vpop.eup %5414  ;;  %3163 = vst.msk [vmem:[%s6391_s20 + $0x350] sm:$0xff] %vm1379_vm2, %v3155_v40  ;;  %5434 = vrcp.f32 %v2406_v18  ;;  %v3316_v5 = vadd.f32 1.0, %v5413_v27  ;;  %v7789_v56 = vadd.f32 %v7360_v23, %v4220_v10  ;;  %v7792_v11 = vadd.f32 %v4198_v20, %v7369_v41 }
 0x22d   : > { %v5417_v8 = vpop.eup %5416  ;;  %2669 = vst.msk [vmem:[%s6391_s20 + $0x2e8] sm:$0xff] %vm1379_vm2, %v2637_v43  ;;  %5436 = vrcp.f32 %v3095_v16  ;;  %v3505_v34 = vadd.f32 1.0, %v5415_v2  ;;  %v7794_v25 = vmul.f32 -1.442695, %v3283_v31  ;;  %v7819_v31 = vld [vmem:[%s7949_s10 + $0x2] ss:$0 sm:$0xff] }
 0x22e   : > { %v5419_v0 = vpop.eup %5418  ;;  %5438 = vrcp.f32 %v3316_v5  ;;  %v3315_v62 = vadd.f32 1.0, %v5417_v8 }
 0x22f   : > { %v5421_v9 = vpop.eup %5420  ;;  %5440 = vrcp.f32 %v3505_v34  ;;  %v3504_v61 = vadd.f32 1.0, %v5419_v0 }
 0x230   : > { %v5423_v51 = vpop.eup %5422  ;;  %v3120_v58 = vmul.f32 %v5421_v9, %v5421_v9  ;;  %5442 = vrcp.f32 %v3315_v62  ;;  %v3142_v30 = vmul.f32 %v5421_v9, %v7457_v52 }
 0x231   : > { %v5425_v49 = vpop.eup %5424  ;;  %5444 = vrcp.f32 %v3504_v61  ;;  %v3318_v28 = vadd.f32 1.0, %v5423_v51 }
 0x232   : > { %v5427_v35 = vpop.eup %5426  ;;  %v3134_v63 = vmul.f32 %v7675_v55, %v3120_v58  ;;  %v3317_v47 = vadd.f32 1.0, %v5425_v49  ;;  %5446 = vpow2.f32 %v4171_v21 }
 0x233   : > { %v5429_v23 = vpop.eup %5428  ;;  %v2502_v12 = vmul.f32 %v5427_v35, %v5427_v35  ;;  %v2572_v41 = vmul.f32 %v7398_v26, %v5427_v35  ;;  %5448 = vrcp.f32 %v3318_v28 }
 0x234   : > { %v5431_v44 = vpop.eup %5430  ;;  %v3150_v59 = vadd.f32 %v3142_v30, %v3134_v63  ;;  %v3119_v19 = vmul.f32 %v5429_v23, %v5429_v23  ;;  %v3141_v7 = vmul.f32 %v5429_v23, %v7457_v52  ;;  %5450 = vrcp.f32 %v3317_v47 }
 0x235   : > { %v5433_v22 = vpop.eup %5432  ;;  %v2540_v24 = vmul.f32 %v7594_v17, %v2502_v12  ;;  %v2505_v46 = vmul.f32 %v5431_v44, %v5431_v44  ;;  %v2575_v38 = vmul.f32 %v7398_v26, %v5431_v44  ;;  %5452 = vpow2.f32 %v4170_v37  ;;  %v7826_v37 = vld [vmem:[%s7955_s16] ss:$0 sm:$0xff] }
 0x236   : > { %v5435_v45 = vpop.eup %5434  ;;  %v3158_v14 = vadd.f32 %v3150_v59, %v7603_v15  ;;  %v3133_v57 = vmul.f32 %v7675_v55, %v3119_v19  ;;  %v3122_v40 = vmul.f32 %v5433_v22, %v5433_v22  ;;  %v3144_v18 = vmul.f32 %v5433_v22, %v7457_v52 }
 0x237   : > { %v5437_v6 = vpop.eup %5436  ;;  %v2604_v27 = vadd.f32 %v2572_v41, %v2540_v24  ;;  %v2543_v43 = vmul.f32 %v7594_v17, %v2505_v46  ;;  %v2504_v16 = vmul.f32 %v5435_v45, %v5435_v45  ;;  %v2574_v32 = vmul.f32 %v7398_v26, %v5435_v45  ;;  %v7852_v24 = vld [vmem:[%s7956_s17 + $0x8] sm:$0xff] }
 0x238   : > { %v5439_v2 = vpop.eup %5438  ;;  %3166 = vst.msk [vmem:[%s6391_s20 + $0x368] sm:$0xff] %vm1379_vm2, %v3158_v14  ;;  %v3149_v5 = vadd.f32 %v3141_v7, %v3133_v57  ;;  %v3136_v20 = vmul.f32 %v7675_v55, %v3122_v40  ;;  %v3121_v8 = vmul.f32 %v5437_v6, %v5437_v6  ;;  %v3143_v34 = vmul.f32 %v5437_v6, %v7457_v52 }
 0x239   : > { %v5441_v10 = vpop.eup %5440  ;;  %v2636_v0 = vadd.f32 %v7415_v13, %v2604_v27  ;;  %v2607_v62 = vadd.f32 %v2575_v38, %v2543_v43  ;;  %v2542_v26 = vmul.f32 %v7594_v17, %v2504_v16  ;;  %v3342_v21 = vmul.f32 %v5439_v2, %v5439_v2  ;;  %v4179_v13 = vld [vmem:[%s7954_s15] ss:$0 sm:$0xff] }
 0x23a   : > { %v5443_v9 = vpop.eup %5442  ;;  %v3157_v61 = vadd.f32 %v3149_v5, %v7657_v36  ;;  %v3152_v60 = vadd.f32 %v3144_v18, %v3136_v20  ;;  %v3135_v51 = vmul.f32 %v7675_v55, %v3121_v8  ;;  %v3364_v58 = vmul.f32 %v5439_v2, %v7457_v52 }
 0x23b   : > { %v5445_v17 = vpop.eup %5444  ;;  %2668 = vst.msk [vmem:[%s6391_s20 + $0x2e0] sm:$0xff] %vm1379_vm2, %v2636_v0  ;;  %v2639_v49 = vadd.f32 %v7478_v53, %v2607_v62  ;;  %v2606_v28 = vadd.f32 %v2574_v32, %v2542_v26  ;;  %v3356_v35 = vmul.f32 %v7819_v31, %v3342_v21  ;;  %v3512_v63 = vmul.f32 %v5441_v10, %v5441_v10 }
 0x23c   : > { %v5447_v30 = vpop.eup %5446  ;;  %3165 = vst.msk [vmem:[%s6391_s20 + $0x360] sm:$0xff] %vm1379_vm2, %v3157_v61  ;;  %v3160_v55 = vadd.f32 %v3152_v60, %v7668_v42  ;;  %v3151_v47 = vadd.f32 %v3143_v34, %v3135_v51  ;;  %v3528_v23 = vmul.f32 %v5441_v10, %v7826_v37  ;;  %v3341_v12 = vmul.f32 %v5443_v9, %v5443_v9 }
 0x23d   : > { %v5449_v41 = vpop.eup %5448  ;;  %2671 = vst.msk [vmem:[%s6391_s20 + $0x2f8] sm:$0xff] %vm1379_vm2, %v2639_v49  ;;  %v2638_v53 = vadd.f32 %v7492_v39, %v2606_v28  ;;  %v3372_v44 = vadd.f32 %v3364_v58, %v3356_v35  ;;  %v3520_v59 = vmul.f32 %v4179_v13, %v3512_v63  ;;  %v3363_v19 = vmul.f32 %v5443_v9, %v7457_v52 }
 0x23e   : > { %v5451_v7 = vpop.eup %5450  ;;  %3168 = vst.msk [vmem:[%s6391_s20 + $0x378] sm:$0xff] %vm1379_vm2, %v3160_v55  ;;  %v3159_v22 = vadd.f32 %v3151_v47, %v7685_v54  ;;  %v3355_v46 = vmul.f32 %v7819_v31, %v3341_v12  ;;  %v3511_v38 = vmul.f32 %v5445_v17, %v5445_v17  ;;  %v3527_v39 = vmul.f32 %v5445_v17, %v7826_v37 }
 0x23f   : > { %v5453_v45 = vpop.eup %5452  ;;  %2670 = vst.msk [vmem:[%s6391_s20 + $0x2f0] sm:$0xff] %vm1379_vm2, %v2638_v53  ;;  %v3380_v14 = vadd.f32 %v3372_v44, %v7498_v3  ;;  %v3530_v57 = vadd.f32 %v3528_v23, %v3520_v59  ;;  %v3344_v40 = vmul.f32 %v5449_v41, %v5449_v41  ;;  %v3366_v18 = vmul.f32 %v5449_v41, %v7457_v52  ;;  %v7869_v3 = vld [vmem:[%s7956_s17] sm:$0xff] }
 0x240   : > { %3167 = vst.msk [vmem:[%s6391_s20 + $0x370] sm:$0xff] %vm1379_vm2, %v3159_v22  ;;  %v3371_v6 = vadd.f32 %v3363_v19, %v3355_v46  ;;  %v3519_v27 = vmul.f32 %v4179_v13, %v3511_v38  ;;  %v3343_v43 = vmul.f32 %v5451_v7, %v5451_v7  ;;  %v3365_v16 = vmul.f32 %v5451_v7, %v7457_v52  ;;  %v5521_v19 = vld [vmem:[%s7950_s11] ss:$0 sm:$0xff] }
 0x241   : > { %3388 = vst.msk [vmem:[%s6391_s20 + $0x388] sm:$0xff] %vm1379_vm2, %v3380_v14  ;;  %v3532_v32 = vadd.f32 %v3530_v57, %v7852_v24  ;;  %v3358_v2 = vmul.f32 %v7819_v31, %v3344_v40  ;;  %v3320_v5 = vadd.f32 1.0, %v5447_v30  ;;  %v3319_v20 = vadd.f32 1.0, %v5453_v45  ;;  %v4224_v40 = vld [vmem:[%s7954_s15 + $0x2] ss:$0 sm:$0xff] }
 0x242   : > { %v3379_v8 = vadd.f32 %v3371_v6, %v7520_v48  ;;  %v3529_v34 = vadd.f32 %v3527_v39, %v3519_v27  ;;  %v3357_v10 = vmul.f32 %v7819_v31, %v3343_v43  ;;  %5454 = vpow2.f32 %v7785_v29 }
 0x243   : > { %3534 = vst.msk [vmem:[%s6391_s20 + $0x3c8] sm:$0xff] %vm1379_vm2, %v3532_v32  ;;  %v3374_v0 = vadd.f32 %v3366_v18, %v3358_v2  ;;  %5456 = vrcp.f32 %v3320_v5  ;;  %v4222_v62 = vmul.f32 -1.442695, %v7789_v56  ;;  %v4199_v48 = vmul.f32 -1.442695, %v7792_v11 }
 0x244   : > { %3387 = vst.msk [vmem:[%s6391_s20 + $0x380] sm:$0xff] %vm1379_vm2, %v3379_v8  ;;  %v3531_v26 = vadd.f32 %v3529_v34, %v7869_v3  ;;  %v3373_v21 = vadd.f32 %v3365_v16, %v3357_v10  ;;  %5458 = vrcp.f32 %v3319_v20  ;;  %v4221_v29 = vmul.f32 -1.442695, %v7797_v1 }
 0x245   : > { %v3382_v9 = vadd.f32 %v3374_v0, %v7545_v33  ;;  %5460 = vpow2.f32 %v7794_v25 }
 0x246   : > { %3533 = vst.msk [vmem:[%s6391_s20 + $0x3c0] sm:$0xff] %vm1379_vm2, %v3531_v26  ;;  %v3381_v61 = vadd.f32 %v3373_v21, %v7558_v4  ;;  %5462 = vpow2.f32 %v7802_v50 }
 0x247   : > { %3390 = vst.msk [vmem:[%s6391_s20 + $0x398] sm:$0xff] %vm1379_vm2, %v3382_v9  ;;  %5464 = vpow2.f32 %v4222_v62 }
 0x248   : > { %3389 = vst.msk [vmem:[%s6391_s20 + $0x390] sm:$0xff] %vm1379_vm2, %v3381_v61  ;;  %5466 = vpow2.f32 %v4199_v48 }
 0x249   : > { %5468 = vpow2.f32 %v4221_v29 }
 0x24c   : > { %v5455_v56 = vpop.eup %5454 }
 0x24d   : > { %v5457_v11 = vpop.eup %5456  ;;  %v3322_v33 = vadd.f32 1.0, %v5455_v56 }
 0x24e   : > { %v5459_v60 = vpop.eup %5458  ;;  %v3346_v25 = vmul.f32 %v5457_v11, %v5457_v11  ;;  %v3368_v1 = vmul.f32 %v5457_v11, %v7457_v52 }
 0x24f   : > { %v5461_v51 = vpop.eup %5460  ;;  %v3345_v58 = vmul.f32 %v5459_v60, %v5459_v60  ;;  %v3367_v4 = vmul.f32 %v5459_v60, %v7457_v52  ;;  %5470 = vrcp.f32 %v3322_v33 }
 0x250   : > { %v5463_v50 = vpop.eup %5462  ;;  %v3360_v13 = vmul.f32 %v7819_v31, %v3346_v25  ;;  %v3321_v17 = vadd.f32 1.0, %v5461_v51 }
 0x251   : > { %v5465_v49 = vpop.eup %5464  ;;  %v3359_v28 = vmul.f32 %v7819_v31, %v3345_v58  ;;  %v3642_v35 = vadd.f32 1.0, %v5463_v50 }
 0x252   : > { %v5467_v63 = vpop.eup %5466  ;;  %v3376_v30 = vadd.f32 %v3368_v1, %v3360_v13  ;;  %5472 = vrcp.f32 %v3321_v17  ;;  %v3774_v55 = vadd.f32 1.0, %v5465_v49 }
 0x253   : > { %v5469_v47 = vpop.eup %5468  ;;  %v3375_v23 = vadd.f32 %v3367_v4, %v3359_v28  ;;  %5474 = vrcp.f32 %v3642_v35  ;;  %v3641_v12 = vadd.f32 1.0, %v5467_v63 }
 0x254   : > { %v3384_v52 = vadd.f32 %v3376_v30, %v7603_v15  ;;  %5476 = vrcp.f32 %v3774_v55  ;;  %v3773_v41 = vadd.f32 1.0, %v5469_v47 }
 0x255   : > { %v3383_v53 = vadd.f32 %v3375_v23, %v7657_v36  ;;  %5478 = vrcp.f32 %v3641_v12  ;;  %v4202_v36 = vld [vmem:[%s7954_s15 + $0x1] ss:$0 sm:$0xff] }
 0x256   : > { %3392 = vst.msk [vmem:[%s6391_s20 + $0x3a8] sm:$0xff] %vm1379_vm2, %v3384_v52  ;;  %5480 = vrcp.f32 %v3773_v41 }
 0x257   : > { %3391 = vst.msk [vmem:[%s6391_s20 + $0x3a0] sm:$0xff] %vm1379_vm2, %v3383_v53 }
 0x259   : > { %v5471_v44 = vpop.eup %5470 }
 0x25a   : > { %v3348_v59 = vmul.f32 %v5471_v44, %v5471_v44  ;;  %v3370_v7 = vmul.f32 %v5521_v19, %v5471_v44 }
 0x25c   : > { %v5473_v22 = vpop.eup %5472  ;;  %v3362_v15 = vmul.f32 %v7819_v31, %v3348_v59 }
 0x25d   : > { %v5475_v46 = vpop.eup %5474  ;;  %v3347_v38 = vmul.f32 %v5473_v22, %v5473_v22  ;;  %v3369_v39 = vmul.f32 %v5521_v19, %v5473_v22 }
 0x25e   : > { %v5477_v45 = vpop.eup %5476  ;;  %v3378_v14 = vadd.f32 %v3370_v7, %v3362_v15  ;;  %v3650_v57 = vmul.f32 %v5475_v46, %v5475_v46  ;;  %v3660_v2 = vmul.f32 %v5475_v46, %v7826_v37 }
 0x25f   : > { %v5479_v18 = vpop.eup %5478  ;;  %v3361_v6 = vmul.f32 %v7819_v31, %v3347_v38  ;;  %v3782_v27 = vmul.f32 %v5477_v45, %v5477_v45  ;;  %v3792_v34 = vmul.f32 %v5477_v45, %v7826_v37 }
 0x260   : > { %v5481_v43 = vpop.eup %5480  ;;  %v3386_v16 = vadd.f32 %v3378_v14, %v7668_v42  ;;  %v3658_v32 = vmul.f32 %v4202_v36, %v3650_v57  ;;  %v3649_v5 = vmul.f32 %v5479_v18, %v5479_v18  ;;  %v3659_v42 = vmul.f32 %v5479_v18, %v7826_v37 }
 0x261   : > { %v3377_v20 = vadd.f32 %v3369_v39, %v3361_v6  ;;  %v3790_v8 = vmul.f32 %v4224_v40, %v3782_v27  ;;  %v3781_v10 = vmul.f32 %v5481_v43, %v5481_v43  ;;  %v3791_v48 = vmul.f32 %v5481_v43, %v7826_v37 }
 0x262   : > { %3394 = vst.msk [vmem:[%s6391_s20 + $0x3b8] sm:$0xff] %vm1379_vm2, %v3386_v16  ;;  %v3662_v0 = vadd.f32 %v3660_v2, %v3658_v32  ;;  %v3657_v31 = vmul.f32 %v4202_v36, %v3649_v5 }
 0x263   : > { %v3385_v62 = vadd.f32 %v3377_v20, %v7685_v54  ;;  %v3794_v26 = vadd.f32 %v3792_v34, %v3790_v8  ;;  %v3789_v21 = vmul.f32 %v4224_v40, %v3781_v10 }
 0x264   : > { %v3664_v9 = vadd.f32 %v3662_v0, %v7852_v24  ;;  %v3661_v29 = vadd.f32 %v3659_v42, %v3657_v31 }
 0x265   : > { %3393 = vst.msk [vmem:[%s6391_s20 + $0x3b0] sm:$0xff] %vm1379_vm2, %v3385_v62  ;;  %v3796_v61 = vadd.f32 %v3794_v26, %v7852_v24  ;;  %v3793_v56 = vadd.f32 %v3791_v48, %v3789_v21 }
 0x266   : > { %3666 = vst.msk [vmem:[%s6391_s20 + $0x3d8] sm:$0xff] %vm1379_vm2, %v3664_v9  ;;  %v3663_v11 = vadd.f32 %v3661_v29, %v7869_v3 }
 0x267   : > { %3798 = vst.msk [vmem:[%s6391_s20 + $0x3e8] sm:$0xff] %vm1379_vm2, %v3796_v61  ;;  %v3795_v54 = vadd.f32 %v3793_v56, %v7869_v3 }
 0x268   : > { %3665 = vst.msk [vmem:[%s6391_s20 + $0x3d0] sm:$0xff] %vm1379_vm2, %v3663_v11 }
 0x269   : > { %3797 = vst.msk [vmem:[%s6391_s20 + $0x3e0] sm:$0xff] %vm1379_vm2, %v3795_v54 }
 0x26a PF: > { %s28_s27 = sadd.s32 1, %s5528_s27  }
 0x26b   : > { %p25_p4 = scmp.ge.s32.totalorder %s28_s27, 4  }
 0x26d   :  { %27 = sbr.rel (!%p25_p4) target bundleno = 4 (0x4), region = 146 }

</bundles_post_ra>
